<compile_context>
chip_gen: v7x
topology: tpu7x:2x2x1
jax: 0.10.0
libtpu: 0.0.40
codegen_flags: <defaults>
</compile_context>

<pallas_src>
import functools

import jax
import jax.numpy as jnp
from jax.experimental import pallas as pl
from jax.experimental.pallas import tpu as pltpu


def _round_up(x, m):
    return (x + m - 1) // m * m


def _cdiv(a, b):
    return (a + b - 1) // b


def _pad_axis(a, axis, target):
    pad = target - a.shape[axis]
    if pad == 0:
        return a
    widths = [(0, 0)] * a.ndim
    widths[axis] = (0, pad)
    return jnp.pad(a, widths)


# ---------------------------------------------------------------------------
# Fast path: full w1/w2/b1/b2 resident in VMEM; grid = (row_tiles,).
# ---------------------------------------------------------------------------
def _ffn_resident_kernel(x_ref, w1_ref, b1_ref, w2_ref, b2_ref, out_ref):
    h = jnp.dot(x_ref[...], w1_ref[...], preferred_element_type=jnp.float32)
    h = jnp.maximum(h + b1_ref[...], 0.0)           # bias (f32) + ReLU
    # TODO(synk): dropout is identity in eval mode; training-mode stochastic
    # masking (pltpu.prng_seed / prng_random_bits) intentionally omitted.
    out = jnp.dot(h.astype(w2_ref.dtype), w2_ref[...],
                  preferred_element_type=jnp.float32)
    out_ref[...] = (out + b2_ref[...]).astype(out_ref.dtype)


# ---------------------------------------------------------------------------
# Reduction path: hidden dim tiled; grid = (row_tiles, ff_tiles); f32 acc
# resident across the last (reduction / "arbitrary") grid axis.
# ---------------------------------------------------------------------------
def _ffn_reduce_kernel(x_ref, w1_ref, b1_ref, w2_ref, b2_ref, out_ref, acc_ref):
    k = pl.program_id(1)

    @pl.when(k == 0)
    def _():
        acc_ref[...] = jnp.zeros_like(acc_ref)

    h = jnp.dot(x_ref[...], w1_ref[...], preferred_element_type=jnp.float32)
    h = jnp.maximum(h + b1_ref[...], 0.0)           # bias (f32) + ReLU
    # TODO(synk): dropout (training mode) omitted — identity in eval mode.
    acc_ref[...] += jnp.dot(h.astype(w2_ref.dtype), w2_ref[...],
                            preferred_element_type=jnp.float32)

    @pl.when(k == pl.num_programs(1) - 1)
    def _():
        out_ref[...] = (acc_ref[...] + b2_ref[...]).astype(out_ref.dtype)


@functools.partial(
    jax.jit,
    static_argnames=("tm", "tf", "compute_dtype", "max_resident_weight_bytes"))
def feed_forward(x, w1, b1, w2, b2, *, tm=256, tf=512,
                 compute_dtype=jnp.bfloat16,
                 max_resident_weight_bytes=16 * 1024 * 1024):
    """x: (batch, seq, d_model); w1: (d_model, dim_ff); w2: (dim_ff, d_model)."""
    batch, seq, d_model = x.shape
    dim_ff = w1.shape[1]
    out_dtype = x.dtype

    # --- row tiling (pad rows so every shape works; padded rows are dropped).
    n_rows = batch * seq
    tm_cap = _round_up(n_rows, 8)                   # multiple of 8 sublanes
    tm_eff = min(tm, tm_cap)
    # Ensure the "parallel" row axis has >= 2 programs when there is enough
    # work, so v7x's two TensorCores both participate.
    if tm_eff == tm_cap and n_rows > 8:
        tm_eff = _round_up(_cdiv(n_rows, 2), 8)
    n_rows_pad = _round_up(n_rows, tm_eff)

    x2d = _pad_axis(x.reshape(n_rows, d_model).astype(compute_dtype),
                    0, n_rows_pad)
    w1c = w1.astype(compute_dtype)
    w2c = w2.astype(compute_dtype)
    b1_2d = b1.astype(jnp.float32).reshape(1, dim_ff)
    b2_2d = b2.astype(jnp.float32).reshape(1, d_model)

    # 48 MiB scoped VMEM: < v7x's 64 MiB physical, plenty on v5e/v6e (128 MiB).
    vmem_limit = 48 * 1024 * 1024

    itemsize = jnp.dtype(compute_dtype).itemsize
    weight_bytes = 2 * d_model * dim_ff * itemsize

    # Advisory cost estimate for the XLA scheduler (2 matmuls over all rows).
    flops = 2 * 2 * n_rows_pad * d_model * dim_ff
    bytes_accessed = (
        2 * n_rows_pad * d_model * itemsize      # x in + out
        + weight_bytes                            # w1 + w2
        + 4 * (dim_ff + d_model))                 # f32 biases
    cost = pl.CostEstimate(flops=flops, transcendentals=0,
                           bytes_accessed=bytes_accessed)

    if weight_bytes <= max_resident_weight_bytes:
        # ------------------ fast path: weights stay resident ------------------
        # (Pallas still allocates 2 buffers per input, so budget ~2x weights.)
        out2d = pl.pallas_call(
            _ffn_resident_kernel,
            out_shape=jax.ShapeDtypeStruct((n_rows_pad, d_model), out_dtype),
            grid_spec=pltpu.PrefetchScalarGridSpec(
                num_scalar_prefetch=0,
                grid=(n_rows_pad // tm_eff,),
                in_specs=[
                    pl.BlockSpec((tm_eff, d_model), lambda i: (i, 0)),   # x rows
                    pl.BlockSpec((d_model, dim_ff), lambda i: (0, 0)),   # w1 (resident)
                    pl.BlockSpec((1, dim_ff),       lambda i: (0, 0)),   # b1
                    pl.BlockSpec((dim_ff, d_model), lambda i: (0, 0)),   # w2 (resident)
                    pl.BlockSpec((1, d_model),      lambda i: (0, 0)),   # b2
                ],
                out_specs=pl.BlockSpec((tm_eff, d_model), lambda i: (i, 0)),
            ),
            compiler_params=pltpu.CompilerParams(
                dimension_semantics=("parallel",),      # shards rows across TCs
                vmem_limit_bytes=vmem_limit),
            cost_estimate=cost,
        )(x2d, w1c, b1_2d, w2c, b2_2d)
    else:
        # --------------- reduction path: tile the hidden dimension ------------
        tf_eff = _round_up(min(tf, _round_up(dim_ff, 128)), 128)
        dim_ff_pad = _round_up(dim_ff, tf_eff)
        # Zero-padding the hidden dim is exact: relu(x@0 + 0) = 0 contributes 0.
        w1p = _pad_axis(w1c, 1, dim_ff_pad)
        w2p = _pad_axis(w2c, 0, dim_ff_pad)
        b1p = _pad_axis(b1_2d, 1, dim_ff_pad)

        out2d = pl.pallas_call(
            _ffn_reduce_kernel,
            out_shape=jax.ShapeDtypeStruct((n_rows_pad, d_model), out_dtype),
            grid_spec=pltpu.PrefetchScalarGridSpec(
                num_scalar_prefetch=0,
                grid=(n_rows_pad // tm_eff, dim_ff_pad // tf_eff),
                in_specs=[
                    pl.BlockSpec((tm_eff, d_model), lambda i, k: (i, 0)),  # x rows
                    pl.BlockSpec((d_model, tf_eff), lambda i, k: (0, k)),  # w1 slice
                    pl.BlockSpec((1, tf_eff),       lambda i, k: (0, k)),  # b1 slice
                    pl.BlockSpec((tf_eff, d_model), lambda i, k: (k, 0)),  # w2 slice
                    pl.BlockSpec((1, d_model),      lambda i, k: (0, 0)),  # b2
                ],
                out_specs=pl.BlockSpec((tm_eff, d_model), lambda i, k: (i, 0)),
                scratch_shapes=[pltpu.VMEM((tm_eff, d_model), jnp.float32)],
            ),
            compiler_params=pltpu.CompilerParams(
                dimension_semantics=("parallel", "arbitrary"),
                vmem_limit_bytes=vmem_limit),
            cost_estimate=cost,
        )(x2d, w1p, b1p, w2p, b2_2d)

    return out2d[:n_rows].reshape(batch, seq, d_model)


def reference_ffn(x, w1, b1, w2, b2):
    h = jnp.maximum(x @ w1 + b1, 0.0)
    return h @ w2 + b2


if __name__ == "__main__":
    # Shapes consistent with the module: d_model=512, dim_feedforward=2048.
    batch, seq, d_model, dim_ff = 2, 8, 512, 2048

    key = jax.random.PRNGKey(0)
    kx, kw1, kb1, kw2, kb2 = jax.random.split(key, 5)

    x = jax.random.normal(kx, (batch, seq, d_model), dtype=jnp.float32)
    # PyTorch nn.Linear weight shape is (out, in); we store transposed (in, out).
    w1 = jax.random.normal(kw1, (d_model, dim_ff), dtype=jnp.float32) * 0.02
    b1 = jax.random.normal(kb1, (dim_ff,), dtype=jnp.float32) * 0.02
    w2 = jax.random.normal(kw2, (dim_ff, d_model), dtype=jnp.float32) * 0.02
    b2 = jax.random.normal(kb2, (d_model,), dtype=jnp.float32) * 0.02

    ref = reference_ffn(x, w1, b1, w2, b2)

    # 1) Default config: bf16 compute, resident-weights fast path.
    out_fast = jax.block_until_ready(feed_forward(x, w1, b1, w2, b2))
    assert out_fast.shape == (batch, seq, d_model)
    assert jnp.allclose(out_fast, ref, atol=3e-2, rtol=3e-2), "fast path (bf16) mismatch"

    # 2) f32 compute, fast path — tight correctness check.
    out_f32 = jax.block_until_ready(
        feed_forward(x, w1, b1, w2, b2, compute_dtype=jnp.float32))
    assert jnp.allclose(out_f32, ref, atol=5e-3, rtol=5e-3), "fast path (f32) mismatch"

    # 3) Forced reduction path (hidden dim tiled) with ragged row count
    #    (exercises row padding); bf16 compute.
    x_odd = jax.random.normal(kx, (3, 5, d_model), dtype=jnp.float32)
    ref_odd = reference_ffn(x_odd, w1, b1, w2, b2)
    out_red = jax.block_until_ready(
        feed_forward(x_odd, w1, b1, w2, b2, max_resident_weight_bytes=0))
    assert out_red.shape == (3, 5, d_model)
    assert jnp.allclose(out_red, ref_odd, atol=3e-2, rtol=3e-2), "reduction path mismatch"

    print("KERNEL_OK")
</pallas_src>

<mosaic_0001>
module attributes {stable_mosaic.version = 11 : i64} {
  func.func @_ffn_resident_kernel(%arg0: i32, %arg1: memref<8x512xbf16, #tpu.memory_space<vmem>>, %arg2: memref<512x2048xbf16, #tpu.memory_space<vmem>>, %arg3: memref<1x2048xf32, #tpu.memory_space<vmem>>, %arg4: memref<2048x512xbf16, #tpu.memory_space<vmem>>, %arg5: memref<1x512xf32, #tpu.memory_space<vmem>>, %arg6: memref<8x512xf32, #tpu.memory_space<vmem>>) attributes {dimension_semantics = [#tpu.dimension_semantics<parallel>], iteration_bounds = array<i64: 2>, scalar_prefetch = 0 : i64, scratch_operands = 0 : i64, tpu.core_type = #tpu.core_type<tc>, window_params = [{transform_indices = @transform_0, window_bounds = array<i64: 8, 512>}, {pipeline_mode = #tpu.pipeline_mode<synchronous>, transform_indices = @transform_1, window_bounds = array<i64: 512, 2048>}, {pipeline_mode = #tpu.pipeline_mode<synchronous>, transform_indices = @transform_2, window_bounds = array<i64: 1, 2048>}, {pipeline_mode = #tpu.pipeline_mode<synchronous>, transform_indices = @transform_3, window_bounds = array<i64: 2048, 512>}, {pipeline_mode = #tpu.pipeline_mode<synchronous>, transform_indices = @transform_4, window_bounds = array<i64: 1, 512>}, {transform_indices = @transform_5, window_bounds = array<i64: 8, 512>}]} {
    %c0 = arith.constant 0 : index
    %c0_0 = arith.constant 0 : index
    %0 = vector.load %arg1[%c0, %c0_0] : memref<8x512xbf16, #tpu.memory_space<vmem>>, vector<8x512xbf16>
    %c0_1 = arith.constant 0 : index
    %c0_2 = arith.constant 0 : index
    %1 = vector.load %arg2[%c0_1, %c0_2] : memref<512x2048xbf16, #tpu.memory_space<vmem>>, vector<512x2048xbf16>
    %cst = arith.constant dense<0.000000e+00> : vector<8x2048xf32>
    %2 = tpu.matmul %0, %1, %cst {dimension_numbers = #tpu.dot_dimension_numbers<[1], [0], [0], [1], [0, 0, 1, 1], [], []>} : vector<8x512xbf16>, vector<512x2048xbf16>, vector<8x2048xf32> -> vector<8x2048xf32>
    %c0_3 = arith.constant 0 : index
    %c0_4 = arith.constant 0 : index
    %3 = vector.load %arg3[%c0_3, %c0_4] : memref<1x2048xf32, #tpu.memory_space<vmem>>, vector<1x2048xf32>
    %4 = vector.broadcast %3 : vector<1x2048xf32> to vector<8x2048xf32>
    %5 = arith.addf %2, %4 : vector<8x2048xf32>
    %cst_5 = arith.constant 0.000000e+00 : f32
    %6 = vector.broadcast %cst_5 : f32 to vector<8x2048xf32>
    %7 = arith.maximumf %5, %6 : vector<8x2048xf32>
    %8 = arith.truncf %7 : vector<8x2048xf32> to vector<8x2048xbf16>
    %c0_6 = arith.constant 0 : index
    %c0_7 = arith.constant 0 : index
    %9 = vector.load %arg4[%c0_6, %c0_7] : memref<2048x512xbf16, #tpu.memory_space<vmem>>, vector<2048x512xbf16>
    %cst_8 = arith.constant dense<0.000000e+00> : vector<8x512xf32>
    %10 = tpu.matmul %8, %9, %cst_8 {dimension_numbers = #tpu.dot_dimension_numbers<[1], [0], [0], [1], [0, 0, 1, 1], [], []>} : vector<8x2048xbf16>, vector<2048x512xbf16>, vector<8x512xf32> -> vector<8x512xf32>
    %c0_9 = arith.constant 0 : index
    %c0_10 = arith.constant 0 : index
    %11 = vector.load %arg5[%c0_9, %c0_10] : memref<1x512xf32, #tpu.memory_space<vmem>>, vector<1x512xf32>
    %12 = vector.broadcast %11 : vector<1x512xf32> to vector<8x512xf32>
    %13 = arith.addf %10, %12 : vector<8x512xf32>
    %c0_11 = arith.constant 0 : index
    %c0_12 = arith.constant 0 : index
    %14 = vector.load %arg6[%c0_11, %c0_12] : memref<8x512xf32, #tpu.memory_space<vmem>>, vector<8x512xf32>
    tpu.vector_store %arg6[%c0_11, %c0_12], %13 {strides = array<i32>} : memref<8x512xf32, #tpu.memory_space<vmem>>, vector<8x512xf32>,
    return
  }
  func.func @transform_0(%arg0: i32) -> (i32, i32) {
    %c0_i32 = arith.constant 0 : i32
    %c0_i32_0 = arith.constant 0 : i32
    return %arg0, %c0_i32 : i32, i32
  }
  func.func @transform_1(%arg0: i32) -> (i32, i32) {
    %c0_i32 = arith.constant 0 : i32
    %c0_i32_0 = arith.constant 0 : i32
    %c0_i32_1 = arith.constant 0 : i32
    return %c0_i32, %c0_i32_0 : i32, i32
  }
  func.func @transform_2(%arg0: i32) -> (i32, i32) {
    %c0_i32 = arith.constant 0 : i32
    %c0_i32_0 = arith.constant 0 : i32
    %c0_i32_1 = arith.constant 0 : i32
    return %c0_i32, %c0_i32_0 : i32, i32
  }
  func.func @transform_3(%arg0: i32) -> (i32, i32) {
    %c0_i32 = arith.constant 0 : i32
    %c0_i32_0 = arith.constant 0 : i32
    %c0_i32_1 = arith.constant 0 : i32
    return %c0_i32, %c0_i32_0 : i32, i32
  }
  func.func @transform_4(%arg0: i32) -> (i32, i32) {
    %c0_i32 = arith.constant 0 : i32
    %c0_i32_0 = arith.constant 0 : i32
    %c0_i32_1 = arith.constant 0 : i32
    return %c0_i32, %c0_i32_0 : i32, i32
  }
  func.func @transform_5(%arg0: i32) -> (i32, i32) {
    %c0_i32 = arith.constant 0 : i32
    %c0_i32_0 = arith.constant 0 : i32
    return %arg0, %c0_i32 : i32, i32
  }
}

</mosaic_0001>

<bundles_post_ra>
// kernel: feed_forward.1
= control target key start
LH: loop header
LB: loop body
LE: loop exit
PB: predicated region body
PF: predicated region fallthrough
CT: control target
= control target key end

     0   :  { %10 = vsyncpa [#allocation3], 0  ;;  %s13324_s0 = inlined_call_operand.vmem [shape: bf16[16,512], index: 0, kind: input, shape index: {}]   ;;  %s13325_s1 = inlined_call_operand.vmem [shape: bf16[512,2048], index: 1, kind: input, shape index: {}]   ;;  %s13326_s2 = inlined_call_operand.vmem [shape: f32[1,2048], index: 2, kind: input, shape index: {}]   ;;  %s13327_s3 = inlined_call_operand.vmem [shape: bf16[2048,512], index: 3, kind: input, shape index: {}]   ;;  %s13328_s4 = inlined_call_operand.vmem [shape: f32[1,512], index: 4, kind: input, shape index: {}]   ;;  %s13329_s5 = inlined_call_operand.hbm [shape: f32[16,512], index: 5, kind: output, shape index: {}]  }
   0x1   :  { %12 = vsyncpa [#allocation3 + $0x1], 0  ;;  %s9969_s18 = smov 0   ;;  %s9971_s19 = smov 0  }
   0x2   :  { %s9973_s20 = smov 0   ;;  %s9975_s21 = smov 0  }
   0x3 LB: > { %s9990_s22 = sadd.s32 4294967295, %s9936_s21   ;;  %s7911_s23 = sadd.s32 4294967294, %s9936_s21   ;;  %s9936_s21 = sphi %s9975_s21, %s13335_s21   ;;  %s9932_s20 = sphi %s9973_s20, %s13334_s20   ;;  %s9928_s19 = sphi %s9971_s19, %s13333_s19   ;;  %s9924_s18 = sphi %s9969_s18, %s13332_s18  }
   0x4   : > { %s9994_s24 = sadd.s32 1, %s9936_s21   ;;  %s135_s25 = sadd.s32 1, %s9932_s20 }
   0x5   : > { %s132_s26 = ssub.s32 %s9936_s21, %s9994_s24  ;;  %p145_p0 = scmp.ne.s32.totalorder %s9932_s20, %s9928_s19 }
   0x6   : > { %p133_p1 = scmp.eq.s32.totalorder %s132_s26, 0  ;;  %p146_p2 = scmp.eq.s32.totalorder %s9990_s22, 1 }
   0x7   : > { %p151_p3 = scmp.ne.s32.totalorder %s9928_s19, %s9924_s18  ;;  %p152_p4 = scmp.eq.s32.totalorder %s7911_s23, 1 }
   0x8   : > { %s10005_s27 = scalar_select %p133_p1, %s9932_s20, %s135_s25  }
   0x9   : > { %p10007_p5 = por %p146_p2, %p145_p0  ;;  %p10011_p6 = por %p152_p4, %p151_p3 }
   0xa   : > { %p7914_p7 = scmp.ge.s32.totalorder %s9936_s21, 1  ;;  %p190_p8 = scmp.lt.s32.totalorder %s9936_s21, 3 }
   0xc   : > { %p191_p9 = pnand %p7914_p7, %p190_p8 }
   0xd   : > { %v225_v0 = vld [vmem:[%s13325_s1] sm:$0xff] (!%p191_p9)  ;;  %v226_v2 = vld [vmem:[%s13325_s1 + $0x8] sm:$0xff] (!%p191_p9)  ;;  %p218_p10 = scmp.lt.s32.totalorder (!%p191_p9), %s9990_s22, 1  ;;  %s215_s7 = sand.u32 (!%p191_p9), 1, %s9928_s19  }
   0xe   : > { %194 = sbr.rel (%p191_p9) target bundleno = 1271 (0x4f7), region = 40  ;;  %v233_v1 = vld [vmem:[%s13325_s1 + $0x40] sm:$0xff] (!%p191_p9)  ;;  %v234_v4 = vld [vmem:[%s13325_s1 + $0x48] sm:$0xff] (!%p191_p9)  ;;  %s7915_s8 = sshll.u32 (!%p191_p9), %s215_s7, 5 }
   0xf   : > { %v7923_v3 = vcombine.high (!%p191_p9), %v225_v0, %v233_v1  ;;  %v7922_v5 = vcombine.low (!%p191_p9), %v225_v0, %v233_v1  ;;  %v241_v6 = vld [vmem:[%s13325_s1 + $0x80] sm:$0xff] (!%p191_p9)  ;;  %v7925_v8 = vcombine.high (!%p191_p9), %v226_v2, %v234_v4  ;;  %v7924_v9 = vcombine.low (!%p191_p9), %v226_v2, %v234_v4  ;;  %v242_v11 = vld [vmem:[%s13325_s1 + $0x88] sm:$0xff] (!%p191_p9)  ;;  %s8952_s11 = sshll.u32 (!%p191_p9), %s9990_s22, 9  ;;  %s217_s12 = scalar_lea.vmem (!%p191_p9), [#allocation2], %s7915_s8 }
  0x10   : > { %v249_v7 = vld [vmem:[%s13325_s1 + $0xc0] sm:$0xff] (!%p191_p9)  ;;  %v250_v12 = vld [vmem:[%s13325_s1 + $0xc8] sm:$0xff] (!%p191_p9)  ;;  %s7852_s14 = sshll.u32 (!%p191_p9), %s217_s12, 4  ;;  %s13282_s17 = scalar_lea.hbm (!%p191_p9), %s13329_s5, %s8952_s11  ;;  %s13284_s14 = int_to_ptr.vmem [resolvable:$true] %s7852_s14 }
  0x11   : > { %v7939_v10 = vcombine.high (!%p191_p9), %v241_v6, %v249_v7  ;;  %v257_v13 = vld [vmem:[%s13325_s1 + $0x100] sm:$0xff] (!%p191_p9)  ;;  %3395 = vmatprep.subr.bf16.mxu0 (!%p191_p9), %v7923_v3  ;;  %v7941_v14 = vcombine.high (!%p191_p9), %v242_v11, %v250_v12  ;;  %v258_v16 = vld [vmem:[%s13325_s1 + $0x108] sm:$0xff] (!%p191_p9)  ;;  %3477 = vmatprep.subr.bf16.mxu1 (!%p191_p9), %v7925_v8  ;;  %v7938_v18 = vcombine.low (!%p191_p9), %v241_v6, %v249_v7  ;;  %s9874_s23 = scalar_lea.vmem (!%p191_p9), %s13284_s14, 512  ;;  %s9938_s25 = smov (!%p191_p9), [#allocation2]  }
  0x12   : > { %v265_v15 = vld [vmem:[%s13325_s1 + $0x140] sm:$0xff] (!%p191_p9)  ;;  %v266_v17 = vld [vmem:[%s13325_s1 + $0x148] sm:$0xff] (!%p191_p9)  ;;  %3396 = vmatpush1.bf16.msra.mxu0 (!%p191_p9), %v7922_v5  ;;  %3478 = vmatpush1.bf16.msra.mxu1 (!%p191_p9), %v7924_v9  ;;  %v7940_v19 = vcombine.low (!%p191_p9), %v242_v11, %v250_v12  ;;  %p9875_p11 = scmp.ne.s32.totalorder (!%p191_p9), %s13284_s14, %s9874_s23  ;;  %s9878_s26 = sshll.u32 (!%p191_p9), %s9938_s25, 4  ;;  %s9879_s26 = int_to_ptr.vmem [resolvable:$false] %s9878_s26 }
  0x13   : > { %3397 = vmatprep.subr.bf16.mxu0 (!%p191_p9), %v7939_v10  ;;  %v7955_v20 = vcombine.high (!%p191_p9), %v257_v13, %v265_v15  ;;  %3479 = vmatprep.subr.bf16.mxu1 (!%p191_p9), %v7941_v14  ;;  %v7957_v21 = vcombine.high (!%p191_p9), %v258_v16, %v266_v17  ;;  %v273_v22 = vld [vmem:[%s13325_s1 + $0x180] sm:$0xff] (!%p191_p9)  ;;  %v274_v24 = vld [vmem:[%s13325_s1 + $0x188] sm:$0xff] (!%p191_p9)  ;;  %v7954_v26 = vcombine.low (!%p191_p9), %v257_v13, %v265_v15  ;;  %s9880_s30 = scalar_lea.vmem (!%p191_p9), %s9879_s26, 1024  ;;  %p9881_p0 = scmp.lt.s32.totalorder (!%p191_p9), %s13284_s14, %s9879_s26 }
  0x14   : > { %v281_v23 = vld [vmem:[%s13325_s1 + $0x1c0] sm:$0xff] (!%p191_p9)  ;;  %v282_v25 = vld [vmem:[%s13325_s1 + $0x1c8] sm:$0xff] (!%p191_p9)  ;;  %v7956_v27 = vcombine.low (!%p191_p9), %v258_v16, %v266_v17  ;;  %p9876_p12 = pnand (!%p191_p9), %p9875_p11, %p10007_p5  ;;  %p9882_p1 = scmp.lt.s32.totalorder (!%p191_p9), %s9880_s30, %s9874_s23 }
  0x15   : > { %v7971_v28 = vcombine.high %v273_v22, %v281_v23  ;;  %v7973_v29 = vcombine.high %v274_v24, %v282_v25  ;;  %v289_v30 = vld [vmem:[%s13325_s1 + $0x200] sm:$0xff]  ;;  %v290_v32 = vld [vmem:[%s13325_s1 + $0x208] sm:$0xff]  ;;  %s219_s13 = scalar_select %p218_p10, %s9990_s22, 1  ;;  %v7970_v34 = vcombine.low %v273_v22, %v281_v23  ;;  %v7972_v35 = vcombine.low %v274_v24, %v282_v25 }
  0x16   : > { %3398 = vmatpush1.bf16.msra.mxu0 %v7938_v18  ;;  %3480 = vmatpush1.bf16.msra.mxu1 %v7940_v19  ;;  %v297_v31 = vld [vmem:[%s13325_s1 + $0x240] sm:$0xff]  ;;  %v298_v33 = vld [vmem:[%s13325_s1 + $0x248] sm:$0xff]  ;;  %s7838_s22 = scalar_lea.sflag [#allocation3], %s215_s7  ;;  %p9877_p13 = pneg %p9876_p12 }
  0x17   : > { %3399 = vmatprep.subr.bf16.mxu0 %v7955_v20  ;;  %3481 = vmatprep.subr.bf16.mxu1 %v7957_v21  ;;  %v7987_v36 = vcombine.high %v289_v30, %v297_v31  ;;  %v7989_v37 = vcombine.high %v290_v32, %v298_v33  ;;  %v305_v38 = vld [vmem:[%s13325_s1 + $0x280] sm:$0xff]  ;;  %v306_v40 = vld [vmem:[%s13325_s1 + $0x288] sm:$0xff]  ;;  %s8951_s6 = sshll.u32 %s219_s13, 4  ;;  %v7986_v42 = vcombine.low %v289_v30, %v297_v31  ;;  %p9883_p2 = por %p9882_p1, %p9881_p0 }
  0x18   : > { %v313_v39 = vld [vmem:[%s13325_s1 + $0x2c0] sm:$0xff]  ;;  %v314_v41 = vld [vmem:[%s13325_s1 + $0x2c8] sm:$0xff]  ;;  %v7988_v43 = vcombine.low %v290_v32, %v298_v33  ;;  %s10100_s13 = scalar_lea.vmem %s13324_s0, %s8951_s6 }
  0x19   : > { %v8003_v44 = vcombine.high %v305_v38, %v313_v39  ;;  %v8005_v45 = vcombine.high %v306_v40, %v314_v41  ;;  %v321_v46 = vld [vmem:[%s13325_s1 + $0x300] sm:$0xff]  ;;  %v322_v48 = vld [vmem:[%s13325_s1 + $0x308] sm:$0xff]  ;;  %v8002_v50 = vcombine.low %v305_v38, %v313_v39  ;;  %v8004_v51 = vcombine.low %v306_v40, %v314_v41  ;;  %p9884_p3 = pnand %p9883_p2, %p9877_p13 }
  0x1a   : > { %3400 = vmatpush1.bf16.msra.mxu0 %v7954_v26  ;;  %3482 = vmatpush1.bf16.msra.mxu1 %v7956_v27  ;;  %v329_v47 = vld [vmem:[%s13325_s1 + $0x340] sm:$0xff]  ;;  %v330_v49 = vld [vmem:[%s13325_s1 + $0x348] sm:$0xff] }
  0x1b   : > { %3401 = vmatprep.subr.bf16.mxu0 %v7971_v28  ;;  %3483 = vmatprep.subr.bf16.mxu1 %v7973_v29  ;;  %v8019_v52 = vcombine.high %v321_v46, %v329_v47  ;;  %v10109_v53 = vld [vmem:[%s10100_s13] sm:$0xff]  ;;  %v8021_v54 = vcombine.high %v322_v48, %v330_v49  ;;  %v338_v58 = vld [vmem:[%s13325_s1 + $0x388] sm:$0xff]  ;;  %v8018_v60 = vcombine.low %v321_v46, %v329_v47 }
  0x1c   : > { %v337_v55 = vld [vmem:[%s13325_s1 + $0x380] sm:$0xff]  ;;  %v10119_v57 = vcombine.high %v10109_v53, %v10109_v53  ;;  %v346_v59 = vld [vmem:[%s13325_s1 + $0x3c8] sm:$0xff]  ;;  %v8020_v61 = vcombine.low %v322_v48, %v330_v49 }
  0x1d   : > { %v345_v56 = vld [vmem:[%s13325_s1 + $0x3c0] sm:$0xff]  ;;  %v8037_v63 = vcombine.high %v338_v58, %v346_v59  ;;  %v354_v2 = vld [vmem:[%s13325_s1 + $0x408] sm:$0xff]  ;;  %v8036_v5 = vcombine.low %v338_v58, %v346_v59 }
  0x1e   : > { %3402 = vmatpush1.bf16.msra.mxu0 %v7970_v34  ;;  %3484 = vmatpush1.bf16.msra.mxu1 %v7972_v35  ;;  %v8035_v62 = vcombine.high %v337_v55, %v345_v56  ;;  %v353_v0 = vld [vmem:[%s13325_s1 + $0x400] sm:$0xff]  ;;  %v362_v3 = vld [vmem:[%s13325_s1 + $0x448] sm:$0xff]  ;;  %v8034_v4 = vcombine.low %v337_v55, %v345_v56 }
  0x1f   : > { %3403 = vmatprep.subr.bf16.mxu0 %v7987_v36  ;;  %3485 = vmatprep.subr.bf16.mxu1 %v7989_v37  ;;  %v361_v1 = vld [vmem:[%s13325_s1 + $0x440] sm:$0xff]  ;;  %v8053_v7 = vcombine.high %v354_v2, %v362_v3  ;;  %v370_v10 = vld [vmem:[%s13325_s1 + $0x488] sm:$0xff]  ;;  %v8052_v13 = vcombine.low %v354_v2, %v362_v3 }
  0x20   : > { %3427 = vmatprep.mubr.bf16.mxu0 %v10119_v57  ;;  %3509 = vmatprep.mubr.bf16.mxu1 %v10119_v57  ;;  %v8051_v6 = vcombine.high %v353_v0, %v361_v1  ;;  %v369_v8 = vld [vmem:[%s13325_s1 + $0x480] sm:$0xff]  ;;  %v378_v11 = vld [vmem:[%s13325_s1 + $0x4c8] sm:$0xff]  ;;  %v8050_v12 = vcombine.low %v353_v0, %v361_v1 }
  0x21   : > { %v377_v9 = vld [vmem:[%s13325_s1 + $0x4c0] sm:$0xff]  ;;  %v8069_v15 = vcombine.high %v370_v10, %v378_v11  ;;  %v386_v18 = vld [vmem:[%s13325_s1 + $0x508] sm:$0xff]  ;;  %v8068_v21 = vcombine.low %v370_v10, %v378_v11 }
  0x22   : > { %3404 = vmatpush1.bf16.msra.mxu0 %v7986_v42  ;;  %3486 = vmatpush1.bf16.msra.mxu1 %v7988_v43  ;;  %v8067_v14 = vcombine.high %v369_v8, %v377_v9  ;;  %v385_v16 = vld [vmem:[%s13325_s1 + $0x500] sm:$0xff]  ;;  %v394_v19 = vld [vmem:[%s13325_s1 + $0x548] sm:$0xff]  ;;  %v8066_v20 = vcombine.low %v369_v8, %v377_v9 }
  0x23   : > { %3405 = vmatprep.subr.bf16.mxu0 %v8003_v44  ;;  %3487 = vmatprep.subr.bf16.mxu1 %v8005_v45  ;;  %v393_v17 = vld [vmem:[%s13325_s1 + $0x540] sm:$0xff]  ;;  %v8085_v23 = vcombine.high %v386_v18, %v394_v19  ;;  %v402_v26 = vld [vmem:[%s13325_s1 + $0x588] sm:$0xff]  ;;  %v8084_v29 = vcombine.low %v386_v18, %v394_v19 }
  0x24   : > { %v8083_v22 = vcombine.high %v385_v16, %v393_v17  ;;  %v401_v24 = vld [vmem:[%s13325_s1 + $0x580] sm:$0xff]  ;;  %v410_v27 = vld [vmem:[%s13325_s1 + $0x5c8] sm:$0xff]  ;;  %v8082_v28 = vcombine.low %v385_v16, %v393_v17 }
  0x25   : > { %v409_v25 = vld [vmem:[%s13325_s1 + $0x5c0] sm:$0xff]  ;;  %v8101_v31 = vcombine.high %v402_v26, %v410_v27  ;;  %v418_v34 = vld [vmem:[%s13325_s1 + $0x608] sm:$0xff]  ;;  %v8100_v37 = vcombine.low %v402_v26, %v410_v27 }
  0x26   : > { %3406 = vmatpush1.bf16.msra.mxu0 %v8002_v50  ;;  %3488 = vmatpush1.bf16.msra.mxu1 %v8004_v51  ;;  %v8099_v30 = vcombine.high %v401_v24, %v409_v25  ;;  %v417_v32 = vld [vmem:[%s13325_s1 + $0x600] sm:$0xff]  ;;  %v426_v35 = vld [vmem:[%s13325_s1 + $0x648] sm:$0xff]  ;;  %v8098_v36 = vcombine.low %v401_v24, %v409_v25 }
  0x27   : > { %3407 = vmatprep.subr.bf16.mxu0 %v8019_v52  ;;  %3489 = vmatprep.subr.bf16.mxu1 %v8021_v54  ;;  %v425_v33 = vld [vmem:[%s13325_s1 + $0x640] sm:$0xff]  ;;  %v8117_v39 = vcombine.high %v418_v34, %v426_v35  ;;  %v434_v42 = vld [vmem:[%s13325_s1 + $0x688] sm:$0xff]  ;;  %v8116_v45 = vcombine.low %v418_v34, %v426_v35 }
  0x28   : > { %v8115_v38 = vcombine.high %v417_v32, %v425_v33  ;;  %v433_v40 = vld [vmem:[%s13325_s1 + $0x680] sm:$0xff]  ;;  %v442_v43 = vld [vmem:[%s13325_s1 + $0x6c8] sm:$0xff]  ;;  %v8114_v44 = vcombine.low %v417_v32, %v425_v33 }
  0x29   : > { %v441_v41 = vld [vmem:[%s13325_s1 + $0x6c0] sm:$0xff]  ;;  %v8133_v47 = vcombine.high %v434_v42, %v442_v43  ;;  %v450_v50 = vld [vmem:[%s13325_s1 + $0x708] sm:$0xff]  ;;  %v8132_v54 = vcombine.low %v434_v42, %v442_v43 }
  0x2a   : > { %3408 = vmatpush1.bf16.msra.mxu0 %v8018_v60  ;;  %3490 = vmatpush1.bf16.msra.mxu1 %v8020_v61  ;;  %v8131_v46 = vcombine.high %v433_v40, %v441_v41  ;;  %v449_v48 = vld [vmem:[%s13325_s1 + $0x700] sm:$0xff]  ;;  %v458_v51 = vld [vmem:[%s13325_s1 + $0x748] sm:$0xff]  ;;  %v8130_v52 = vcombine.low %v433_v40, %v441_v41 }
  0x2b   : > { %3409 = vmatprep.subr.bf16.mxu0 %v8035_v62  ;;  %3491 = vmatprep.subr.bf16.mxu1 %v8037_v63  ;;  %v457_v49 = vld [vmem:[%s13325_s1 + $0x740] sm:$0xff]  ;;  %v8149_v56 = vcombine.high %v450_v50, %v458_v51  ;;  %v466_v60 = vld [vmem:[%s13325_s1 + $0x788] sm:$0xff]  ;;  %v8148_v63 = vcombine.low %v450_v50, %v458_v51 }
  0x2c   : > { %v8147_v55 = vcombine.high %v449_v48, %v457_v49  ;;  %v465_v58 = vld [vmem:[%s13325_s1 + $0x780] sm:$0xff]  ;;  %v474_v61 = vld [vmem:[%s13325_s1 + $0x7c8] sm:$0xff]  ;;  %v8146_v62 = vcombine.low %v449_v48, %v457_v49 }
  0x2d   : > { %v473_v59 = vld [vmem:[%s13325_s1 + $0x7c0] sm:$0xff]  ;;  %v8165_v1 = vcombine.high %v466_v60, %v474_v61 }
  0x2e   : > { %3410 = vmatpush1.bf16.msra.mxu0 %v8034_v4  ;;  %3492 = vmatpush1.bf16.msra.mxu1 %v8036_v5  ;;  %v8163_v0 = vcombine.high %v465_v58, %v473_v59  ;;  %v481_v2 = vld [vmem:[%s13325_s1 + $0x800] sm:$0xff]  ;;  %v482_v4 = vld [vmem:[%s13325_s1 + $0x808] sm:$0xff] }
  0x2f   : > { %3411 = vmatprep.subr.bf16.mxu0 %v8051_v6  ;;  %3493 = vmatprep.subr.bf16.mxu1 %v8053_v7  ;;  %v489_v3 = vld [vmem:[%s13325_s1 + $0x840] sm:$0xff]  ;;  %v490_v5 = vld [vmem:[%s13325_s1 + $0x848] sm:$0xff]  ;;  %v8162_v6 = vcombine.low %v465_v58, %v473_v59  ;;  %v8164_v7 = vcombine.low %v466_v60, %v474_v61 }
  0x30   : > { %v8179_v8 = vcombine.high %v481_v2, %v489_v3  ;;  %v8181_v9 = vcombine.high %v482_v4, %v490_v5  ;;  %v497_v10 = vld [vmem:[%s13325_s1 + $0x880] sm:$0xff]  ;;  %v8178_v16 = vcombine.low %v481_v2, %v489_v3  ;;  %v8180_v17 = vcombine.low %v482_v4, %v490_v5 }
  0x31   : > { %v505_v11 = vld [vmem:[%s13325_s1 + $0x8c0] sm:$0xff] }
  0x32   : > { %3412 = vmatpush1.bf16.msra.mxu0 %v8050_v12  ;;  %3494 = vmatpush1.bf16.msra.mxu1 %v8052_v13  ;;  %v10245_v12 = vcombine.low %v10109_v53, %v10109_v53  ;;  %v498_v13 = vld [vmem:[%s13325_s1 + $0x888] sm:$0xff]  ;;  %v8195_v18 = vcombine.high %v497_v10, %v505_v11  ;;  %v513_v53 = vld [vmem:[%s13325_s1 + $0x900] sm:$0xff]  ;;  %v8194_v24 = vcombine.low %v497_v10, %v505_v11 }
  0x33   : > { %3413 = vmatprep.subr.bf16.mxu0 %v8067_v14  ;;  %3495 = vmatprep.subr.bf16.mxu1 %v8069_v15  ;;  %v506_v14 = vld [vmem:[%s13325_s1 + $0x8c8] sm:$0xff]  ;;  %v521_v19 = vld [vmem:[%s13325_s1 + $0x940] sm:$0xff] }
  0x34   : > { %v10254_v15 = vld [vmem:[%s10100_s13 + $0x8] sm:$0xff]  ;;  %v8196_v25 = vcombine.low %v498_v13, %v506_v14  ;;  %v8211_v26 = vcombine.high %v513_v53, %v521_v19  ;;  %v529_v27 = vld [vmem:[%s13325_s1 + $0x980] sm:$0xff]  ;;  %v8210_v32 = vcombine.low %v513_v53, %v521_v19 }
  0x35   : > { %v545_v35 = vld [vmem:[%s13325_s1 + $0xa00] sm:$0xff]  ;;  %v634_v53 = vld [vmem:[%s13325_s1 + $0xcc8] sm:$0xff] }
  0x36   : > { %3414 = vmatpush1.bf16.msra.mxu0 %v8066_v20  ;;  %3496 = vmatpush1.bf16.msra.mxu1 %v8068_v21  ;;  %v514_v20 = vld [vmem:[%s13325_s1 + $0x908] sm:$0xff]  ;;  %v8197_v21 = vcombine.high %v498_v13, %v506_v14  ;;  %v561_v43 = vld [vmem:[%s13325_s1 + $0xa80] sm:$0xff] }
  0x37   : > { %3415 = vmatprep.subr.bf16.mxu0 %v8083_v22  ;;  %3497 = vmatprep.subr.bf16.mxu1 %v8085_v23  ;;  %v522_v22 = vld [vmem:[%s13325_s1 + $0x948] sm:$0xff]  ;;  %v10270_v23 = vcombine.high %v10254_v15, %v10254_v15  ;;  %v577_v51 = vld [vmem:[%s13325_s1 + $0xb00] sm:$0xff] }
  0x38   : > { %v8212_v33 = vcombine.low %v514_v20, %v522_v22  ;;  %v593_v61 = vld [vmem:[%s13325_s1 + $0xb80] sm:$0xff] }
  0x39   : > { %v609_v5 = vld [vmem:[%s13325_s1 + $0xc00] sm:$0xff] }
  0x3a   : > { %3416 = vmatpush1.bf16.msra.mxu0 %v8082_v28  ;;  %3498 = vmatpush1.bf16.msra.mxu1 %v8084_v29  ;;  %v537_v28 = vld [vmem:[%s13325_s1 + $0x9c0] sm:$0xff]  ;;  %v530_v29 = vld [vmem:[%s13325_s1 + $0x988] sm:$0xff] }
  0x3b   : > { %3417 = vmatprep.subr.bf16.mxu0 %v8099_v30  ;;  %3499 = vmatprep.subr.bf16.mxu1 %v8101_v31  ;;  %v8213_v30 = vcombine.high %v514_v20, %v522_v22  ;;  %v538_v31 = vld [vmem:[%s13325_s1 + $0x9c8] sm:$0xff]  ;;  %v8227_v34 = vcombine.high %v529_v27, %v537_v28  ;;  %v8226_v40 = vcombine.low %v529_v27, %v537_v28  ;;  %v625_v14 = vld [vmem:[%s13325_s1 + $0xc80] sm:$0xff] }
  0x3c   : > { %v8228_v41 = vcombine.low %v530_v29, %v538_v31  ;;  %v641_v22 = vld [vmem:[%s13325_s1 + $0xd00] sm:$0xff]  ;;  %v650_v27 = vld [vmem:[%s13325_s1 + $0xd48] sm:$0xff] }
  0x3e   : > { %3418 = vmatpush1.bf16.msra.mxu0 %v8098_v36  ;;  %3500 = vmatpush1.bf16.msra.mxu1 %v8100_v37  ;;  %v553_v36 = vld [vmem:[%s13325_s1 + $0xa40] sm:$0xff]  ;;  %v546_v37 = vld [vmem:[%s13325_s1 + $0xa08] sm:$0xff] }
  0x3f   : > { %3419 = vmatprep.subr.bf16.mxu0 %v8115_v38  ;;  %3501 = vmatprep.subr.bf16.mxu1 %v8117_v39  ;;  %v8229_v38 = vcombine.high %v530_v29, %v538_v31  ;;  %v554_v39 = vld [vmem:[%s13325_s1 + $0xa48] sm:$0xff]  ;;  %v8243_v42 = vcombine.high %v545_v35, %v553_v36  ;;  %v8242_v48 = vcombine.low %v545_v35, %v553_v36  ;;  %v657_v31 = vld [vmem:[%s13325_s1 + $0xd80] sm:$0xff] }
  0x40   : > { %v8244_v49 = vcombine.low %v546_v37, %v554_v39  ;;  %v666_v35 = vld [vmem:[%s13325_s1 + $0xdc8] sm:$0xff] }
  0x42   : > { %3420 = vmatpush1.bf16.msra.mxu0 %v8114_v44  ;;  %3502 = vmatpush1.bf16.msra.mxu1 %v8116_v45  ;;  %v569_v44 = vld [vmem:[%s13325_s1 + $0xac0] sm:$0xff]  ;;  %v562_v45 = vld [vmem:[%s13325_s1 + $0xa88] sm:$0xff] }
  0x43   : > { %3421 = vmatprep.subr.bf16.mxu0 %v8131_v46  ;;  %3503 = vmatprep.subr.bf16.mxu1 %v8133_v47  ;;  %v8245_v46 = vcombine.high %v546_v37, %v554_v39  ;;  %v570_v47 = vld [vmem:[%s13325_s1 + $0xac8] sm:$0xff]  ;;  %v8259_v50 = vcombine.high %v561_v43, %v569_v44  ;;  %v8258_v58 = vcombine.low %v561_v43, %v569_v44  ;;  %v673_v39 = vld [vmem:[%s13325_s1 + $0xe00] sm:$0xff] }
  0x44   : > { %v8260_v59 = vcombine.low %v562_v45, %v570_v47  ;;  %v682_v43 = vld [vmem:[%s13325_s1 + $0xe48] sm:$0xff] }
  0x46   : > { %3422 = vmatpush1.bf16.msra.mxu0 %v8130_v52  ;;  %3504 = vmatpush1.bf16.msra.mxu1 %v8132_v54  ;;  %v585_v52 = vld [vmem:[%s13325_s1 + $0xb40] sm:$0xff]  ;;  %v578_v54 = vld [vmem:[%s13325_s1 + $0xb08] sm:$0xff] }
  0x47   : > { %3423 = vmatprep.subr.bf16.mxu0 %v8147_v55  ;;  %3505 = vmatprep.subr.bf16.mxu1 %v8149_v56  ;;  %v8261_v55 = vcombine.high %v562_v45, %v570_v47  ;;  %v586_v56 = vld [vmem:[%s13325_s1 + $0xb48] sm:$0xff]  ;;  %v8275_v60 = vcombine.high %v577_v51, %v585_v52  ;;  %v8274_v2 = vcombine.low %v577_v51, %v585_v52  ;;  %v689_v47 = vld [vmem:[%s13325_s1 + $0xe80] sm:$0xff] }
  0x48   : > { %v8276_v3 = vcombine.low %v578_v54, %v586_v56  ;;  %v698_v51 = vld [vmem:[%s13325_s1 + $0xec8] sm:$0xff] }
  0x4a   : > { %3424 = vmatpush1.bf16.msra.mxu0 %v8146_v62  ;;  %3506 = vmatpush1.bf16.msra.mxu1 %v8148_v63  ;;  %v601_v62 = vld [vmem:[%s13325_s1 + $0xbc0] sm:$0xff]  ;;  %v594_v63 = vld [vmem:[%s13325_s1 + $0xb88] sm:$0xff] }
  0x4b   : > { %3425 = vmatprep.subr.bf16.mxu0 %v8163_v0  ;;  %3507 = vmatprep.subr.bf16.mxu1 %v8165_v1  ;;  %v8277_v0 = vcombine.high %v578_v54, %v586_v56  ;;  %v602_v1 = vld [vmem:[%s13325_s1 + $0xbc8] sm:$0xff]  ;;  %v8291_v4 = vcombine.high %v593_v61, %v601_v62  ;;  %v8290_v10 = vcombine.low %v593_v61, %v601_v62  ;;  %v705_v56 = vld [vmem:[%s13325_s1 + $0xf00] sm:$0xff] }
  0x4c   : > { %v8292_v11 = vcombine.low %v594_v63, %v602_v1  ;;  %v714_v61 = vld [vmem:[%s13325_s1 + $0xf48] sm:$0xff] }
  0x4e   : > { %3426 = vmatpush1.bf16.msra.mxu0 %v8162_v6  ;;  %3508 = vmatpush1.bf16.msra.mxu1 %v8164_v7  ;;  %v617_v6 = vld [vmem:[%s13325_s1 + $0xc40] sm:$0xff]  ;;  %v610_v7 = vld [vmem:[%s13325_s1 + $0xc08] sm:$0xff] }
  0x4f   : > { %3436 = vmatprep.subr.bf16.mxu0 %v8179_v8  ;;  %3518 = vmatprep.subr.bf16.mxu1 %v8181_v9  ;;  %v8293_v8 = vcombine.high %v594_v63, %v602_v1  ;;  %v618_v9 = vld [vmem:[%s13325_s1 + $0xc48] sm:$0xff]  ;;  %v8307_v13 = vcombine.high %v609_v5, %v617_v6  ;;  %v8306_v19 = vcombine.low %v609_v5, %v617_v6  ;;  %v721_v1 = vld [vmem:[%s13325_s1 + $0xf80] sm:$0xff] }
  0x50   : > { %v8308_v20 = vcombine.low %v610_v7, %v618_v9  ;;  %v730_v5 = vld [vmem:[%s13325_s1 + $0xfc8] sm:$0xff] }
  0x51   : > { %3428 = vmatmul.mubr.bf16.vlgmr.msra.gmra.mrb[0].mxu0 %v10245_v12  ;;  %3510 = vmatmul.mubr.bf16.vlgmr.msra.gmra.mrb[0].mxu1 %v10245_v12 }
  0x52   : > { %3437 = vmatpush1.bf16.msra.mxu0 %v8178_v16  ;;  %3519 = vmatpush1.bf16.msra.mxu1 %v8180_v17  ;;  %v633_v16 = vld [vmem:[%s13325_s1 + $0xcc0] sm:$0xff]  ;;  %v626_v17 = vld [vmem:[%s13325_s1 + $0xc88] sm:$0xff] }
  0x53   : > { %3438 = vmatprep.subr.bf16.mxu0 %v8195_v18  ;;  %3520 = vmatprep.subr.bf16.mxu1 %v8197_v21  ;;  %v8309_v18 = vcombine.high %v610_v7, %v618_v9  ;;  %v8323_v21 = vcombine.high %v625_v14, %v633_v16  ;;  %v8322_v28 = vcombine.low %v625_v14, %v633_v16  ;;  %v227_v9 = vld [vmem:[%s13325_s1 + $0x10] sm:$0xff]  ;;  %v236_v14 = vld [vmem:[%s13325_s1 + $0x58] sm:$0xff] }
  0x54   : > { %3468 = vmatprep.mubr.bf16.mxu0 %v10270_v23  ;;  %3550 = vmatprep.mubr.bf16.mxu1 %v10270_v23  ;;  %v8324_v29 = vcombine.low %v626_v17, %v634_v53 }
  0x56   : > { %3439 = vmatpush1.bf16.msra.mxu0 %v8194_v24  ;;  %3521 = vmatpush1.bf16.msra.mxu1 %v8196_v25  ;;  %v649_v24 = vld [vmem:[%s13325_s1 + $0xd40] sm:$0xff]  ;;  %v642_v25 = vld [vmem:[%s13325_s1 + $0xd08] sm:$0xff] }
  0x57   : > { %3440 = vmatprep.subr.bf16.mxu0 %v8211_v26  ;;  %3522 = vmatprep.subr.bf16.mxu1 %v8213_v30  ;;  %v8325_v26 = vcombine.high %v626_v17, %v634_v53  ;;  %v8339_v30 = vcombine.high %v641_v22, %v649_v24  ;;  %v8338_v36 = vcombine.low %v641_v22, %v649_v24  ;;  %v243_v53 = vld [vmem:[%s13325_s1 + $0x90] sm:$0xff]  ;;  %v252_v22 = vld [vmem:[%s13325_s1 + $0xd8] sm:$0xff] }
  0x58   : > { %v8340_v37 = vcombine.low %v642_v25, %v650_v27  ;;  %v10458_v24 = vcombine.low %v10254_v15, %v10254_v15 }
  0x5a   : > { %3441 = vmatpush1.bf16.msra.mxu0 %v8210_v32  ;;  %3523 = vmatpush1.bf16.msra.mxu1 %v8212_v33  ;;  %v665_v32 = vld [vmem:[%s13325_s1 + $0xdc0] sm:$0xff]  ;;  %v658_v33 = vld [vmem:[%s13325_s1 + $0xd88] sm:$0xff] }
  0x5b   : > { %3442 = vmatprep.subr.bf16.mxu0 %v8227_v34  ;;  %3524 = vmatprep.subr.bf16.mxu1 %v8229_v38  ;;  %v8341_v34 = vcombine.high %v642_v25, %v650_v27  ;;  %v8355_v38 = vcombine.high %v657_v31, %v665_v32  ;;  %v8354_v44 = vcombine.low %v657_v31, %v665_v32  ;;  %v268_v31 = vld [vmem:[%s13325_s1 + $0x158] sm:$0xff] }
  0x5c   : > { %v8356_v45 = vcombine.low %v658_v33, %v666_v35 }
  0x5e   : > { %3443 = vmatpush1.bf16.msra.mxu0 %v8226_v40  ;;  %3525 = vmatpush1.bf16.msra.mxu1 %v8228_v41  ;;  %v681_v40 = vld [vmem:[%s13325_s1 + $0xe40] sm:$0xff]  ;;  %v674_v41 = vld [vmem:[%s13325_s1 + $0xe08] sm:$0xff] }
  0x5f   : > { %3444 = vmatprep.subr.bf16.mxu0 %v8243_v42  ;;  %3526 = vmatprep.subr.bf16.mxu1 %v8245_v46  ;;  %v8357_v42 = vcombine.high %v658_v33, %v666_v35  ;;  %v8371_v46 = vcombine.high %v673_v39, %v681_v40  ;;  %v8370_v52 = vcombine.low %v673_v39, %v681_v40  ;;  %v275_v35 = vld [vmem:[%s13325_s1 + $0x190] sm:$0xff]  ;;  %v284_v39 = vld [vmem:[%s13325_s1 + $0x1d8] sm:$0xff] }
  0x60   : > { %v8372_v54 = vcombine.low %v674_v41, %v682_v43 }
  0x62   : > { %3445 = vmatpush1.bf16.msra.mxu0 %v8242_v48  ;;  %3527 = vmatpush1.bf16.msra.mxu1 %v8244_v49  ;;  %v697_v48 = vld [vmem:[%s13325_s1 + $0xec0] sm:$0xff]  ;;  %v690_v49 = vld [vmem:[%s13325_s1 + $0xe88] sm:$0xff] }
  0x63   : > { %3446 = vmatprep.subr.bf16.mxu0 %v8259_v50  ;;  %3528 = vmatprep.subr.bf16.mxu1 %v8261_v55  ;;  %v8373_v50 = vcombine.high %v674_v41, %v682_v43  ;;  %v8387_v55 = vcombine.high %v689_v47, %v697_v48  ;;  %v8386_v62 = vcombine.low %v689_v47, %v697_v48  ;;  %v291_v43 = vld [vmem:[%s13325_s1 + $0x210] sm:$0xff]  ;;  %v300_v47 = vld [vmem:[%s13325_s1 + $0x258] sm:$0xff] }
  0x64   : > { %v8388_v63 = vcombine.low %v690_v49, %v698_v51 }
  0x66   : > { %3447 = vmatpush1.bf16.msra.mxu0 %v8258_v58  ;;  %3529 = vmatpush1.bf16.msra.mxu1 %v8260_v59  ;;  %v713_v58 = vld [vmem:[%s13325_s1 + $0xf40] sm:$0xff]  ;;  %v706_v59 = vld [vmem:[%s13325_s1 + $0xf08] sm:$0xff] }
  0x67   : > { %3448 = vmatprep.subr.bf16.mxu0 %v8275_v60  ;;  %3530 = vmatprep.subr.bf16.mxu1 %v8277_v0  ;;  %v8389_v60 = vcombine.high %v690_v49, %v698_v51  ;;  %v8403_v0 = vcombine.high %v705_v56, %v713_v58  ;;  %v8402_v6 = vcombine.low %v705_v56, %v713_v58  ;;  %v307_v51 = vld [vmem:[%s13325_s1 + $0x290] sm:$0xff]  ;;  %v316_v56 = vld [vmem:[%s13325_s1 + $0x2d8] sm:$0xff] }
  0x68   : > { %v8404_v7 = vcombine.low %v706_v59, %v714_v61 }
  0x6a   : > { %3449 = vmatpush1.bf16.msra.mxu0 %v8274_v2  ;;  %3531 = vmatpush1.bf16.msra.mxu1 %v8276_v3  ;;  %v729_v2 = vld [vmem:[%s13325_s1 + $0xfc0] sm:$0xff]  ;;  %v722_v3 = vld [vmem:[%s13325_s1 + $0xf88] sm:$0xff] }
  0x6b   : > { %3450 = vmatprep.subr.bf16.mxu0 %v8291_v4  ;;  %3532 = vmatprep.subr.bf16.mxu1 %v8293_v8  ;;  %v8405_v4 = vcombine.high %v706_v59, %v714_v61  ;;  %v8419_v8 = vcombine.high %v721_v1, %v729_v2  ;;  %v8418_v16 = vcombine.low %v721_v1, %v729_v2  ;;  %v323_v61 = vld [vmem:[%s13325_s1 + $0x310] sm:$0xff]  ;;  %v332_v1 = vld [vmem:[%s13325_s1 + $0x358] sm:$0xff] }
  0x6c   : > { %v8420_v17 = vcombine.low %v722_v3, %v730_v5 }
  0x6e   : > { %3451 = vmatpush1.bf16.msra.mxu0 %v8290_v10  ;;  %3533 = vmatpush1.bf16.msra.mxu1 %v8292_v11  ;;  %v235_v10 = vld [vmem:[%s13325_s1 + $0x50] sm:$0xff]  ;;  %v228_v11 = vld [vmem:[%s13325_s1 + $0x18] sm:$0xff] }
  0x6f   : > { %3452 = vmatprep.subr.bf16.mxu0 %v8307_v13  ;;  %3534 = vmatprep.subr.bf16.mxu1 %v8309_v18  ;;  %v8421_v13 = vcombine.high %v722_v3, %v730_v5  ;;  %v7927_v18 = vcombine.high %v227_v9, %v235_v10  ;;  %v7926_v25 = vcombine.low %v227_v9, %v235_v10  ;;  %v339_v5 = vld [vmem:[%s13325_s1 + $0x390] sm:$0xff]  ;;  %v348_v9 = vld [vmem:[%s13325_s1 + $0x3d8] sm:$0xff] }
  0x72   : > { %3453 = vmatpush1.bf16.msra.mxu0 %v8306_v19  ;;  %3535 = vmatpush1.bf16.msra.mxu1 %v8308_v20  ;;  %v251_v19 = vld [vmem:[%s13325_s1 + $0xd0] sm:$0xff]  ;;  %v244_v20 = vld [vmem:[%s13325_s1 + $0x98] sm:$0xff] }
  0x73   : > { %3454 = vmatprep.subr.bf16.mxu0 %v8323_v21  ;;  %3536 = vmatprep.subr.bf16.mxu1 %v8325_v26  ;;  %v7929_v21 = vcombine.high %v228_v11, %v236_v14  ;;  %v7928_v26 = vcombine.low %v228_v11, %v236_v14  ;;  %v7943_v27 = vcombine.high %v243_v53, %v251_v19  ;;  %v355_v14 = vld [vmem:[%s13325_s1 + $0x410] sm:$0xff] }
  0x74   : > { %v7945_v15 = vcombine.high %v244_v20, %v252_v22  ;;  %v7942_v32 = vcombine.low %v243_v53, %v251_v19  ;;  %v7944_v33 = vcombine.low %v244_v20, %v252_v22  ;;  %v364_v53 = vld [vmem:[%s13325_s1 + $0x458] sm:$0xff]  ;;  %v371_v22 = vld [vmem:[%s13325_s1 + $0x490] sm:$0xff] }
  0x76   : > { %3455 = vmatpush1.bf16.msra.mxu0 %v8322_v28  ;;  %3537 = vmatpush1.bf16.msra.mxu1 %v8324_v29  ;;  %v259_v28 = vld [vmem:[%s13325_s1 + $0x110] sm:$0xff] }
  0x77   : > { %3456 = vmatprep.subr.bf16.mxu0 %v8339_v30  ;;  %3538 = vmatprep.subr.bf16.mxu1 %v8341_v34  ;;  %v267_v29 = vld [vmem:[%s13325_s1 + $0x150] sm:$0xff]  ;;  %v260_v30 = vld [vmem:[%s13325_s1 + $0x118] sm:$0xff] }
  0x78   : > { %v7959_v34 = vcombine.high %v259_v28, %v267_v29  ;;  %v7958_v40 = vcombine.low %v259_v28, %v267_v29  ;;  %v7960_v41 = vcombine.low %v260_v30, %v268_v31  ;;  %v380_v28 = vld [vmem:[%s13325_s1 + $0x4d8] sm:$0xff] }
  0x7a   : > { %3457 = vmatpush1.bf16.msra.mxu0 %v8338_v36  ;;  %3539 = vmatpush1.bf16.msra.mxu1 %v8340_v37  ;;  %v283_v36 = vld [vmem:[%s13325_s1 + $0x1d0] sm:$0xff]  ;;  %v276_v37 = vld [vmem:[%s13325_s1 + $0x198] sm:$0xff] }
  0x7b   : > { %3458 = vmatprep.subr.bf16.mxu0 %v8355_v38  ;;  %3540 = vmatprep.subr.bf16.mxu1 %v8357_v42  ;;  %v7961_v38 = vcombine.high %v260_v30, %v268_v31  ;;  %v7975_v42 = vcombine.high %v275_v35, %v283_v36  ;;  %v7974_v48 = vcombine.low %v275_v35, %v283_v36  ;;  %v387_v31 = vld [vmem:[%s13325_s1 + $0x510] sm:$0xff]  ;;  %v396_v35 = vld [vmem:[%s13325_s1 + $0x558] sm:$0xff] }
  0x7c   : > { %v7976_v49 = vcombine.low %v276_v37, %v284_v39 }
  0x7e   : > { %3459 = vmatpush1.bf16.msra.mxu0 %v8354_v44  ;;  %3541 = vmatpush1.bf16.msra.mxu1 %v8356_v45  ;;  %v299_v44 = vld [vmem:[%s13325_s1 + $0x250] sm:$0xff]  ;;  %v292_v45 = vld [vmem:[%s13325_s1 + $0x218] sm:$0xff] }
  0x7f   : > { %3460 = vmatprep.subr.bf16.mxu0 %v8371_v46  ;;  %3542 = vmatprep.subr.bf16.mxu1 %v8373_v50  ;;  %v7977_v46 = vcombine.high %v276_v37, %v284_v39  ;;  %v7991_v50 = vcombine.high %v291_v43, %v299_v44  ;;  %v7990_v58 = vcombine.low %v291_v43, %v299_v44  ;;  %v403_v39 = vld [vmem:[%s13325_s1 + $0x590] sm:$0xff]  ;;  %v412_v43 = vld [vmem:[%s13325_s1 + $0x5d8] sm:$0xff] }
  0x80   : > { %v7992_v59 = vcombine.low %v292_v45, %v300_v47 }
  0x82   : > { %3461 = vmatpush1.bf16.msra.mxu0 %v8370_v52  ;;  %3543 = vmatpush1.bf16.msra.mxu1 %v8372_v54  ;;  %v315_v52 = vld [vmem:[%s13325_s1 + $0x2d0] sm:$0xff]  ;;  %v308_v54 = vld [vmem:[%s13325_s1 + $0x298] sm:$0xff] }
  0x83   : > { %3462 = vmatprep.subr.bf16.mxu0 %v8387_v55  ;;  %3544 = vmatprep.subr.bf16.mxu1 %v8389_v60  ;;  %v7993_v55 = vcombine.high %v292_v45, %v300_v47  ;;  %v8007_v60 = vcombine.high %v307_v51, %v315_v52  ;;  %v8006_v2 = vcombine.low %v307_v51, %v315_v52  ;;  %v419_v47 = vld [vmem:[%s13325_s1 + $0x610] sm:$0xff]  ;;  %v428_v51 = vld [vmem:[%s13325_s1 + $0x658] sm:$0xff] }
  0x84   : > { %v8008_v3 = vcombine.low %v308_v54, %v316_v56 }
  0x86   : > { %3463 = vmatpush1.bf16.msra.mxu0 %v8386_v62  ;;  %3545 = vmatpush1.bf16.msra.mxu1 %v8388_v63  ;;  %v331_v62 = vld [vmem:[%s13325_s1 + $0x350] sm:$0xff]  ;;  %v324_v63 = vld [vmem:[%s13325_s1 + $0x318] sm:$0xff] }
  0x87   : > { %3464 = vmatprep.subr.bf16.mxu0 %v8403_v0  ;;  %3546 = vmatprep.subr.bf16.mxu1 %v8405_v4  ;;  %v8009_v0 = vcombine.high %v308_v54, %v316_v56  ;;  %v8023_v4 = vcombine.high %v323_v61, %v331_v62  ;;  %v8022_v10 = vcombine.low %v323_v61, %v331_v62  ;;  %v435_v56 = vld [vmem:[%s13325_s1 + $0x690] sm:$0xff]  ;;  %v444_v61 = vld [vmem:[%s13325_s1 + $0x6d8] sm:$0xff] }
  0x88   : > { %v8024_v11 = vcombine.low %v324_v63, %v332_v1 }
  0x8a   : > { %3465 = vmatpush1.bf16.msra.mxu0 %v8402_v6  ;;  %3547 = vmatpush1.bf16.msra.mxu1 %v8404_v7  ;;  %v347_v6 = vld [vmem:[%s13325_s1 + $0x3d0] sm:$0xff]  ;;  %v340_v7 = vld [vmem:[%s13325_s1 + $0x398] sm:$0xff] }
  0x8b   : > { %3466 = vmatprep.subr.bf16.mxu0 %v8419_v8  ;;  %3548 = vmatprep.subr.bf16.mxu1 %v8421_v13  ;;  %v8025_v8 = vcombine.high %v324_v63, %v332_v1  ;;  %v8039_v13 = vcombine.high %v339_v5, %v347_v6  ;;  %v8038_v19 = vcombine.low %v339_v5, %v347_v6  ;;  %v451_v1 = vld [vmem:[%s13325_s1 + $0x710] sm:$0xff]  ;;  %v460_v5 = vld [vmem:[%s13325_s1 + $0x758] sm:$0xff] }
  0x8c   : > { %v8040_v20 = vcombine.low %v340_v7, %v348_v9 }
  0x8e   : > { %3467 = vmatpush1.bf16.msra.mxu0 %v8418_v16  ;;  %3549 = vmatpush1.bf16.msra.mxu1 %v8420_v17  ;;  %v363_v16 = vld [vmem:[%s13325_s1 + $0x450] sm:$0xff]  ;;  %v356_v17 = vld [vmem:[%s13325_s1 + $0x418] sm:$0xff] }
  0x8f   : > { %3559 = vmatprep.subr.bf16.mxu0 %v7927_v18  ;;  %3641 = vmatprep.subr.bf16.mxu1 %v7929_v21  ;;  %v8041_v18 = vcombine.high %v340_v7, %v348_v9  ;;  %v8055_v21 = vcombine.high %v355_v14, %v363_v16  ;;  %v8054_v29 = vcombine.low %v355_v14, %v363_v16  ;;  %v467_v9 = vld [vmem:[%s13325_s1 + $0x790] sm:$0xff]  ;;  %v476_v14 = vld [vmem:[%s13325_s1 + $0x7d8] sm:$0xff] }
  0x90   : > { %v8056_v30 = vcombine.low %v356_v17, %v364_v53 }
  0x91   : > { %3469 = vmatmul.mubr.bf16.vlgmr.msra.gmra.mrb[0].mxu0 %v10458_v24  ;;  %3551 = vmatmul.mubr.bf16.vlgmr.msra.gmra.mrb[0].mxu1 %v10458_v24 }
  0x92   : > { %3560 = vmatpush1.bf16.msra.mxu0 %v7926_v25  ;;  %3642 = vmatpush1.bf16.msra.mxu1 %v7928_v26  ;;  %v379_v25 = vld [vmem:[%s13325_s1 + $0x4d0] sm:$0xff]  ;;  %v372_v26 = vld [vmem:[%s13325_s1 + $0x498] sm:$0xff] }
  0x93   : > { %3561 = vmatprep.subr.bf16.mxu0 %v7943_v27  ;;  %3643 = vmatprep.subr.bf16.mxu1 %v7945_v15  ;;  %v8057_v27 = vcombine.high %v356_v17, %v364_v53  ;;  %v8071_v15 = vcombine.high %v371_v22, %v379_v25  ;;  %v8070_v36 = vcombine.low %v371_v22, %v379_v25  ;;  %v483_v53 = vld [vmem:[%s13325_s1 + $0x810] sm:$0xff]  ;;  %v492_v22 = vld [vmem:[%s13325_s1 + $0x858] sm:$0xff] }
  0x94   : > { %3591 = vmatprep.mubr.bf16.mxu0 %v10119_v57  ;;  %3673 = vmatprep.mubr.bf16.mxu1 %v10119_v57  ;;  %v8072_v37 = vcombine.low %v372_v26, %v380_v28 }
  0x96   : > { %3562 = vmatpush1.bf16.msra.mxu0 %v7942_v32  ;;  %3644 = vmatpush1.bf16.msra.mxu1 %v7944_v33  ;;  %v395_v32 = vld [vmem:[%s13325_s1 + $0x550] sm:$0xff]  ;;  %v388_v33 = vld [vmem:[%s13325_s1 + $0x518] sm:$0xff] }
  0x97   : > { %3563 = vmatprep.subr.bf16.mxu0 %v7959_v34  ;;  %3645 = vmatprep.subr.bf16.mxu1 %v7961_v38  ;;  %v8073_v34 = vcombine.high %v372_v26, %v380_v28  ;;  %v8087_v38 = vcombine.high %v387_v31, %v395_v32  ;;  %v8086_v44 = vcombine.low %v387_v31, %v395_v32  ;;  %v499_v28 = vld [vmem:[%s13325_s1 + $0x890] sm:$0xff]  ;;  %v508_v31 = vld [vmem:[%s13325_s1 + $0x8d8] sm:$0xff] }
  0x98   : > { %v8088_v45 = vcombine.low %v388_v33, %v396_v35 }
  0x9a   : > { %3564 = vmatpush1.bf16.msra.mxu0 %v7958_v40  ;;  %3646 = vmatpush1.bf16.msra.mxu1 %v7960_v41  ;;  %v411_v40 = vld [vmem:[%s13325_s1 + $0x5d0] sm:$0xff]  ;;  %v404_v41 = vld [vmem:[%s13325_s1 + $0x598] sm:$0xff] }
  0x9b   : > { %3565 = vmatprep.subr.bf16.mxu0 %v7975_v42  ;;  %3647 = vmatprep.subr.bf16.mxu1 %v7977_v46  ;;  %v8089_v42 = vcombine.high %v388_v33, %v396_v35  ;;  %v8103_v46 = vcombine.high %v403_v39, %v411_v40  ;;  %v8102_v52 = vcombine.low %v403_v39, %v411_v40  ;;  %v515_v35 = vld [vmem:[%s13325_s1 + $0x910] sm:$0xff]  ;;  %v524_v39 = vld [vmem:[%s13325_s1 + $0x958] sm:$0xff] }
  0x9c   : > { %v8104_v54 = vcombine.low %v404_v41, %v412_v43 }
  0x9e   : > { %3566 = vmatpush1.bf16.msra.mxu0 %v7974_v48  ;;  %3648 = vmatpush1.bf16.msra.mxu1 %v7976_v49  ;;  %v427_v48 = vld [vmem:[%s13325_s1 + $0x650] sm:$0xff]  ;;  %v420_v49 = vld [vmem:[%s13325_s1 + $0x618] sm:$0xff] }
  0x9f   : > { %3567 = vmatprep.subr.bf16.mxu0 %v7991_v50  ;;  %3649 = vmatprep.subr.bf16.mxu1 %v7993_v55  ;;  %v8105_v50 = vcombine.high %v404_v41, %v412_v43  ;;  %v8119_v55 = vcombine.high %v419_v47, %v427_v48  ;;  %v8118_v62 = vcombine.low %v419_v47, %v427_v48  ;;  %v531_v43 = vld [vmem:[%s13325_s1 + $0x990] sm:$0xff]  ;;  %v540_v47 = vld [vmem:[%s13325_s1 + $0x9d8] sm:$0xff] }
  0xa0   : > { %v8120_v63 = vcombine.low %v420_v49, %v428_v51 }
  0xa2   : > { %3568 = vmatpush1.bf16.msra.mxu0 %v7990_v58  ;;  %3650 = vmatpush1.bf16.msra.mxu1 %v7992_v59  ;;  %v443_v58 = vld [vmem:[%s13325_s1 + $0x6d0] sm:$0xff]  ;;  %v436_v59 = vld [vmem:[%s13325_s1 + $0x698] sm:$0xff] }
  0xa3   : > { %3569 = vmatprep.subr.bf16.mxu0 %v8007_v60  ;;  %3651 = vmatprep.subr.bf16.mxu1 %v8009_v0  ;;  %v8121_v60 = vcombine.high %v420_v49, %v428_v51  ;;  %v8135_v0 = vcombine.high %v435_v56, %v443_v58  ;;  %v8134_v6 = vcombine.low %v435_v56, %v443_v58  ;;  %v547_v51 = vld [vmem:[%s13325_s1 + $0xa10] sm:$0xff]  ;;  %v556_v56 = vld [vmem:[%s13325_s1 + $0xa58] sm:$0xff] }
  0xa4   : > { %v8136_v7 = vcombine.low %v436_v59, %v444_v61 }
  0xa6   : > { %3570 = vmatpush1.bf16.msra.mxu0 %v8006_v2  ;;  %3652 = vmatpush1.bf16.msra.mxu1 %v8008_v3  ;;  %v459_v2 = vld [vmem:[%s13325_s1 + $0x750] sm:$0xff]  ;;  %v452_v3 = vld [vmem:[%s13325_s1 + $0x718] sm:$0xff] }
  0xa7   : > { %3571 = vmatprep.subr.bf16.mxu0 %v8023_v4  ;;  %3653 = vmatprep.subr.bf16.mxu1 %v8025_v8  ;;  %v8137_v4 = vcombine.high %v436_v59, %v444_v61  ;;  %v8151_v8 = vcombine.high %v451_v1, %v459_v2  ;;  %v8150_v16 = vcombine.low %v451_v1, %v459_v2  ;;  %v563_v61 = vld [vmem:[%s13325_s1 + $0xa90] sm:$0xff]  ;;  %v572_v1 = vld [vmem:[%s13325_s1 + $0xad8] sm:$0xff] }
  0xa8   : > { %v8152_v17 = vcombine.low %v452_v3, %v460_v5 }
  0xaa   : > { %3572 = vmatpush1.bf16.msra.mxu0 %v8022_v10  ;;  %3654 = vmatpush1.bf16.msra.mxu1 %v8024_v11  ;;  %v475_v10 = vld [vmem:[%s13325_s1 + $0x7d0] sm:$0xff]  ;;  %v468_v11 = vld [vmem:[%s13325_s1 + $0x798] sm:$0xff] }
  0xab   : > { %3573 = vmatprep.subr.bf16.mxu0 %v8039_v13  ;;  %3655 = vmatprep.subr.bf16.mxu1 %v8041_v18  ;;  %v8153_v13 = vcombine.high %v452_v3, %v460_v5  ;;  %v8167_v18 = vcombine.high %v467_v9, %v475_v10  ;;  %v8166_v25 = vcombine.low %v467_v9, %v475_v10  ;;  %v579_v5 = vld [vmem:[%s13325_s1 + $0xb10] sm:$0xff]  ;;  %v588_v9 = vld [vmem:[%s13325_s1 + $0xb58] sm:$0xff] }
  0xac   : > { %v8168_v26 = vcombine.low %v468_v11, %v476_v14 }
  0xae   : > { %3574 = vmatpush1.bf16.msra.mxu0 %v8038_v19  ;;  %3656 = vmatpush1.bf16.msra.mxu1 %v8040_v20  ;;  %v491_v19 = vld [vmem:[%s13325_s1 + $0x850] sm:$0xff]  ;;  %v484_v20 = vld [vmem:[%s13325_s1 + $0x818] sm:$0xff] }
  0xaf   : > { %3575 = vmatprep.subr.bf16.mxu0 %v8055_v21  ;;  %3657 = vmatprep.subr.bf16.mxu1 %v8057_v27  ;;  %v8169_v21 = vcombine.high %v468_v11, %v476_v14  ;;  %v8183_v27 = vcombine.high %v483_v53, %v491_v19  ;;  %v8182_v32 = vcombine.low %v483_v53, %v491_v19  ;;  %v595_v14 = vld [vmem:[%s13325_s1 + $0xb90] sm:$0xff]  ;;  %v604_v53 = vld [vmem:[%s13325_s1 + $0xbd8] sm:$0xff] }
  0xb0   : > { %v8184_v33 = vcombine.low %v484_v20, %v492_v22 }
  0xb2   : > { %3576 = vmatpush1.bf16.msra.mxu0 %v8054_v29  ;;  %3658 = vmatpush1.bf16.msra.mxu1 %v8056_v30  ;;  %v507_v29 = vld [vmem:[%s13325_s1 + $0x8d0] sm:$0xff]  ;;  %v500_v30 = vld [vmem:[%s13325_s1 + $0x898] sm:$0xff] }
  0xb3   : > { %3577 = vmatprep.subr.bf16.mxu0 %v8071_v15  ;;  %3659 = vmatprep.subr.bf16.mxu1 %v8073_v34  ;;  %v8185_v15 = vcombine.high %v484_v20, %v492_v22  ;;  %v8199_v34 = vcombine.high %v499_v28, %v507_v29  ;;  %v8198_v40 = vcombine.low %v499_v28, %v507_v29  ;;  %v611_v22 = vld [vmem:[%s13325_s1 + $0xc10] sm:$0xff]  ;;  %v620_v28 = vld [vmem:[%s13325_s1 + $0xc58] sm:$0xff] }
  0xb4   : > { %v8200_v41 = vcombine.low %v500_v30, %v508_v31 }
  0xb6   : > { %3578 = vmatpush1.bf16.msra.mxu0 %v8070_v36  ;;  %3660 = vmatpush1.bf16.msra.mxu1 %v8072_v37  ;;  %v523_v36 = vld [vmem:[%s13325_s1 + $0x950] sm:$0xff]  ;;  %v516_v37 = vld [vmem:[%s13325_s1 + $0x918] sm:$0xff] }
  0xb7   : > { %3579 = vmatprep.subr.bf16.mxu0 %v8087_v38  ;;  %3661 = vmatprep.subr.bf16.mxu1 %v8089_v42  ;;  %v8201_v38 = vcombine.high %v500_v30, %v508_v31  ;;  %v8215_v42 = vcombine.high %v515_v35, %v523_v36  ;;  %v8214_v48 = vcombine.low %v515_v35, %v523_v36  ;;  %v627_v31 = vld [vmem:[%s13325_s1 + $0xc90] sm:$0xff]  ;;  %v636_v35 = vld [vmem:[%s13325_s1 + $0xcd8] sm:$0xff] }
  0xb8   : > { %v8216_v49 = vcombine.low %v516_v37, %v524_v39 }
  0xba   : > { %3580 = vmatpush1.bf16.msra.mxu0 %v8086_v44  ;;  %3662 = vmatpush1.bf16.msra.mxu1 %v8088_v45  ;;  %v539_v44 = vld [vmem:[%s13325_s1 + $0x9d0] sm:$0xff]  ;;  %v532_v45 = vld [vmem:[%s13325_s1 + $0x998] sm:$0xff] }
  0xbb   : > { %3581 = vmatprep.subr.bf16.mxu0 %v8103_v46  ;;  %3663 = vmatprep.subr.bf16.mxu1 %v8105_v50  ;;  %v8217_v46 = vcombine.high %v516_v37, %v524_v39  ;;  %v8231_v50 = vcombine.high %v531_v43, %v539_v44  ;;  %v8230_v58 = vcombine.low %v531_v43, %v539_v44  ;;  %v643_v39 = vld [vmem:[%s13325_s1 + $0xd10] sm:$0xff]  ;;  %v652_v43 = vld [vmem:[%s13325_s1 + $0xd58] sm:$0xff] }
  0xbc   : > { %v8232_v59 = vcombine.low %v532_v45, %v540_v47 }
  0xbe   : > { %3582 = vmatpush1.bf16.msra.mxu0 %v8102_v52  ;;  %3664 = vmatpush1.bf16.msra.mxu1 %v8104_v54  ;;  %v555_v52 = vld [vmem:[%s13325_s1 + $0xa50] sm:$0xff]  ;;  %v548_v54 = vld [vmem:[%s13325_s1 + $0xa18] sm:$0xff] }
  0xbf   : > { %3583 = vmatprep.subr.bf16.mxu0 %v8119_v55  ;;  %3665 = vmatprep.subr.bf16.mxu1 %v8121_v60  ;;  %v8233_v55 = vcombine.high %v532_v45, %v540_v47  ;;  %v8247_v60 = vcombine.high %v547_v51, %v555_v52  ;;  %v8246_v2 = vcombine.low %v547_v51, %v555_v52  ;;  %v659_v47 = vld [vmem:[%s13325_s1 + $0xd90] sm:$0xff]  ;;  %v668_v51 = vld [vmem:[%s13325_s1 + $0xdd8] sm:$0xff] }
  0xc0   : > { %v8248_v3 = vcombine.low %v548_v54, %v556_v56 }
  0xc2   : > { %3584 = vmatpush1.bf16.msra.mxu0 %v8118_v62  ;;  %3666 = vmatpush1.bf16.msra.mxu1 %v8120_v63  ;;  %v571_v62 = vld [vmem:[%s13325_s1 + $0xad0] sm:$0xff]  ;;  %v564_v63 = vld [vmem:[%s13325_s1 + $0xa98] sm:$0xff] }
  0xc3   : > { %3585 = vmatprep.subr.bf16.mxu0 %v8135_v0  ;;  %3667 = vmatprep.subr.bf16.mxu1 %v8137_v4  ;;  %v8249_v0 = vcombine.high %v548_v54, %v556_v56  ;;  %v8263_v4 = vcombine.high %v563_v61, %v571_v62  ;;  %v8262_v10 = vcombine.low %v563_v61, %v571_v62  ;;  %v675_v56 = vld [vmem:[%s13325_s1 + $0xe10] sm:$0xff]  ;;  %v684_v61 = vld [vmem:[%s13325_s1 + $0xe58] sm:$0xff] }
  0xc4   : > { %v8264_v11 = vcombine.low %v564_v63, %v572_v1 }
  0xc6   : > { %3586 = vmatpush1.bf16.msra.mxu0 %v8134_v6  ;;  %3668 = vmatpush1.bf16.msra.mxu1 %v8136_v7  ;;  %v587_v6 = vld [vmem:[%s13325_s1 + $0xb50] sm:$0xff]  ;;  %v580_v7 = vld [vmem:[%s13325_s1 + $0xb18] sm:$0xff] }
  0xc7   : > { %3587 = vmatprep.subr.bf16.mxu0 %v8151_v8  ;;  %3669 = vmatprep.subr.bf16.mxu1 %v8153_v13  ;;  %v8265_v8 = vcombine.high %v564_v63, %v572_v1  ;;  %v8279_v13 = vcombine.high %v579_v5, %v587_v6  ;;  %v8278_v19 = vcombine.low %v579_v5, %v587_v6  ;;  %v691_v1 = vld [vmem:[%s13325_s1 + $0xe90] sm:$0xff]  ;;  %v700_v5 = vld [vmem:[%s13325_s1 + $0xed8] sm:$0xff] }
  0xc8   : > { %v8280_v20 = vcombine.low %v580_v7, %v588_v9 }
  0xca   : > { %3588 = vmatpush1.bf16.msra.mxu0 %v8150_v16  ;;  %3670 = vmatpush1.bf16.msra.mxu1 %v8152_v17  ;;  %v603_v16 = vld [vmem:[%s13325_s1 + $0xbd0] sm:$0xff]  ;;  %v8281_v17 = vcombine.high %v580_v7, %v588_v9 }
  0xcb   : > { %3589 = vmatprep.subr.bf16.mxu0 %v8167_v18  ;;  %3671 = vmatprep.subr.bf16.mxu1 %v8169_v21  ;;  %v596_v18 = vld [vmem:[%s13325_s1 + $0xb98] sm:$0xff]  ;;  %v8295_v21 = vcombine.high %v595_v14, %v603_v16  ;;  %v8294_v29 = vcombine.low %v595_v14, %v603_v16  ;;  %v707_v9 = vld [vmem:[%s13325_s1 + $0xf10] sm:$0xff] }
  0xcc   : > { %v8296_v30 = vcombine.low %v596_v18, %v604_v53  ;;  %v716_v14 = vld [vmem:[%s13325_s1 + $0xf58] sm:$0xff] }
  0xce   : > { %3590 = vmatpush1.bf16.msra.mxu0 %v8166_v25  ;;  %3672 = vmatpush1.bf16.msra.mxu1 %v8168_v26  ;;  %v619_v25 = vld [vmem:[%s13325_s1 + $0xc50] sm:$0xff]  ;;  %v612_v26 = vld [vmem:[%s13325_s1 + $0xc18] sm:$0xff] }
  0xcf   : > { %3600 = vmatprep.subr.bf16.mxu0 %v8183_v27  ;;  %3682 = vmatprep.subr.bf16.mxu1 %v8185_v15  ;;  %v8297_v27 = vcombine.high %v596_v18, %v604_v53  ;;  %v8311_v15 = vcombine.high %v611_v22, %v619_v25  ;;  %v8310_v36 = vcombine.low %v611_v22, %v619_v25  ;;  %v723_v53 = vld [vmem:[%s13325_s1 + $0xf90] sm:$0xff]  ;;  %v732_v22 = vld [vmem:[%s13325_s1 + $0xfd8] sm:$0xff] }
  0xd0   : > { %v8312_v37 = vcombine.low %v612_v26, %v620_v28 }
  0xd1   : > { %3592 = vmatmul.mubr.bf16.vlgmr.msra.gmra.mrb[4].mxu0 %v10245_v12  ;;  %3674 = vmatmul.mubr.bf16.vlgmr.msra.gmra.mrb[4].mxu1 %v10245_v12 }
  0xd2   : > { %3601 = vmatpush1.bf16.msra.mxu0 %v8182_v32  ;;  %3683 = vmatpush1.bf16.msra.mxu1 %v8184_v33  ;;  %v635_v32 = vld [vmem:[%s13325_s1 + $0xcd0] sm:$0xff]  ;;  %v628_v33 = vld [vmem:[%s13325_s1 + $0xc98] sm:$0xff] }
  0xd3   : > { %3602 = vmatprep.subr.bf16.mxu0 %v8199_v34  ;;  %3684 = vmatprep.subr.bf16.mxu1 %v8201_v38  ;;  %v8313_v34 = vcombine.high %v612_v26, %v620_v28  ;;  %v8327_v38 = vcombine.high %v627_v31, %v635_v32  ;;  %v8326_v44 = vcombine.low %v627_v31, %v635_v32  ;;  %v229_v28 = vld [vmem:[%s13325_s1 + $0x20] sm:$0xff]  ;;  %v238_v31 = vld [vmem:[%s13325_s1 + $0x68] sm:$0xff] }
  0xd4   : > { %3632 = vmatprep.mubr.bf16.mxu0 %v10270_v23  ;;  %3714 = vmatprep.mubr.bf16.mxu1 %v10270_v23  ;;  %v8328_v45 = vcombine.low %v628_v33, %v636_v35 }
  0xd6   : > { %3603 = vmatpush1.bf16.msra.mxu0 %v8198_v40  ;;  %3685 = vmatpush1.bf16.msra.mxu1 %v8200_v41  ;;  %v651_v40 = vld [vmem:[%s13325_s1 + $0xd50] sm:$0xff]  ;;  %v644_v41 = vld [vmem:[%s13325_s1 + $0xd18] sm:$0xff] }
  0xd7   : > { %3604 = vmatprep.subr.bf16.mxu0 %v8215_v42  ;;  %3686 = vmatprep.subr.bf16.mxu1 %v8217_v46  ;;  %v8329_v42 = vcombine.high %v628_v33, %v636_v35  ;;  %v8343_v46 = vcombine.high %v643_v39, %v651_v40  ;;  %v8342_v52 = vcombine.low %v643_v39, %v651_v40  ;;  %v245_v35 = vld [vmem:[%s13325_s1 + $0xa0] sm:$0xff]  ;;  %v254_v39 = vld [vmem:[%s13325_s1 + $0xe8] sm:$0xff] }
  0xd8   : > { %v8344_v54 = vcombine.low %v644_v41, %v652_v43 }
  0xda   : > { %3605 = vmatpush1.bf16.msra.mxu0 %v8214_v48  ;;  %3687 = vmatpush1.bf16.msra.mxu1 %v8216_v49  ;;  %v667_v48 = vld [vmem:[%s13325_s1 + $0xdd0] sm:$0xff]  ;;  %v660_v49 = vld [vmem:[%s13325_s1 + $0xd98] sm:$0xff] }
  0xdb   : > { %3606 = vmatprep.subr.bf16.mxu0 %v8231_v50  ;;  %3688 = vmatprep.subr.bf16.mxu1 %v8233_v55  ;;  %v8345_v50 = vcombine.high %v644_v41, %v652_v43  ;;  %v8359_v55 = vcombine.high %v659_v47, %v667_v48  ;;  %v8358_v62 = vcombine.low %v659_v47, %v667_v48  ;;  %v261_v43 = vld [vmem:[%s13325_s1 + $0x120] sm:$0xff]  ;;  %v270_v47 = vld [vmem:[%s13325_s1 + $0x168] sm:$0xff] }
  0xdc   : > { %v8360_v63 = vcombine.low %v660_v49, %v668_v51 }
  0xde   : > { %3607 = vmatpush1.bf16.msra.mxu0 %v8230_v58  ;;  %3689 = vmatpush1.bf16.msra.mxu1 %v8232_v59  ;;  %v683_v58 = vld [vmem:[%s13325_s1 + $0xe50] sm:$0xff]  ;;  %v676_v59 = vld [vmem:[%s13325_s1 + $0xe18] sm:$0xff] }
  0xdf   : > { %3608 = vmatprep.subr.bf16.mxu0 %v8247_v60  ;;  %3690 = vmatprep.subr.bf16.mxu1 %v8249_v0  ;;  %v8361_v60 = vcombine.high %v660_v49, %v668_v51  ;;  %v8375_v0 = vcombine.high %v675_v56, %v683_v58  ;;  %v8374_v6 = vcombine.low %v675_v56, %v683_v58  ;;  %v277_v51 = vld [vmem:[%s13325_s1 + $0x1a0] sm:$0xff]  ;;  %v286_v56 = vld [vmem:[%s13325_s1 + $0x1e8] sm:$0xff] }
  0xe0   : > { %v8376_v7 = vcombine.low %v676_v59, %v684_v61 }
  0xe2   : > { %3609 = vmatpush1.bf16.msra.mxu0 %v8246_v2  ;;  %3691 = vmatpush1.bf16.msra.mxu1 %v8248_v3  ;;  %v699_v2 = vld [vmem:[%s13325_s1 + $0xed0] sm:$0xff]  ;;  %v692_v3 = vld [vmem:[%s13325_s1 + $0xe98] sm:$0xff] }
  0xe3   : > { %3610 = vmatprep.subr.bf16.mxu0 %v8263_v4  ;;  %3692 = vmatprep.subr.bf16.mxu1 %v8265_v8  ;;  %v8377_v4 = vcombine.high %v676_v59, %v684_v61  ;;  %v8391_v8 = vcombine.high %v691_v1, %v699_v2  ;;  %v8390_v16 = vcombine.low %v691_v1, %v699_v2  ;;  %v293_v61 = vld [vmem:[%s13325_s1 + $0x220] sm:$0xff]  ;;  %v302_v1 = vld [vmem:[%s13325_s1 + $0x268] sm:$0xff] }
  0xe6   : > { %3611 = vmatpush1.bf16.msra.mxu0 %v8262_v10  ;;  %3693 = vmatpush1.bf16.msra.mxu1 %v8264_v11  ;;  %v715_v10 = vld [vmem:[%s13325_s1 + $0xf50] sm:$0xff]  ;;  %v708_v11 = vld [vmem:[%s13325_s1 + $0xf18] sm:$0xff] }
  0xe7   : > { %3612 = vmatprep.subr.bf16.mxu0 %v8279_v13  ;;  %3694 = vmatprep.subr.bf16.mxu1 %v8281_v17  ;;  %v8393_v13 = vcombine.high %v692_v3, %v700_v5  ;;  %v8392_v17 = vcombine.low %v692_v3, %v700_v5  ;;  %v8407_v18 = vcombine.high %v707_v9, %v715_v10  ;;  %v309_v5 = vld [vmem:[%s13325_s1 + $0x2a0] sm:$0xff] }
  0xe8   : > { %v8406_v25 = vcombine.low %v707_v9, %v715_v10  ;;  %v8408_v26 = vcombine.low %v708_v11, %v716_v14  ;;  %v318_v9 = vld [vmem:[%s13325_s1 + $0x2e8] sm:$0xff] }
  0xea   : > { %3613 = vmatpush1.bf16.msra.mxu0 %v8278_v19  ;;  %3695 = vmatpush1.bf16.msra.mxu1 %v8280_v20  ;;  %v731_v19 = vld [vmem:[%s13325_s1 + $0xfd0] sm:$0xff]  ;;  %v724_v20 = vld [vmem:[%s13325_s1 + $0xf98] sm:$0xff] }
  0xeb   : > { %3614 = vmatprep.subr.bf16.mxu0 %v8295_v21  ;;  %3696 = vmatprep.subr.bf16.mxu1 %v8297_v27  ;;  %v8409_v21 = vcombine.high %v708_v11, %v716_v14  ;;  %v8423_v27 = vcombine.high %v723_v53, %v731_v19  ;;  %v8422_v32 = vcombine.low %v723_v53, %v731_v19  ;;  %v325_v14 = vld [vmem:[%s13325_s1 + $0x320] sm:$0xff]  ;;  %v334_v53 = vld [vmem:[%s13325_s1 + $0x368] sm:$0xff] }
  0xec   : > { %v8424_v33 = vcombine.low %v724_v20, %v732_v22 }
  0xee   : > { %3615 = vmatpush1.bf16.msra.mxu0 %v8294_v29  ;;  %3697 = vmatpush1.bf16.msra.mxu1 %v8296_v30  ;;  %v237_v29 = vld [vmem:[%s13325_s1 + $0x60] sm:$0xff]  ;;  %v230_v30 = vld [vmem:[%s13325_s1 + $0x28] sm:$0xff] }
  0xef   : > { %3616 = vmatprep.subr.bf16.mxu0 %v8311_v15  ;;  %3698 = vmatprep.subr.bf16.mxu1 %v8313_v34  ;;  %v8425_v15 = vcombine.high %v724_v20, %v732_v22  ;;  %v7931_v34 = vcombine.high %v229_v28, %v237_v29  ;;  %v7930_v40 = vcombine.low %v229_v28, %v237_v29  ;;  %v341_v22 = vld [vmem:[%s13325_s1 + $0x3a0] sm:$0xff]  ;;  %v350_v28 = vld [vmem:[%s13325_s1 + $0x3e8] sm:$0xff] }
  0xf0   : > { %v7932_v41 = vcombine.low %v230_v30, %v238_v31 }
  0xf2   : > { %3617 = vmatpush1.bf16.msra.mxu0 %v8310_v36  ;;  %3699 = vmatpush1.bf16.msra.mxu1 %v8312_v37  ;;  %v253_v36 = vld [vmem:[%s13325_s1 + $0xe0] sm:$0xff]  ;;  %v246_v37 = vld [vmem:[%s13325_s1 + $0xa8] sm:$0xff] }
  0xf3   : > { %3618 = vmatprep.subr.bf16.mxu0 %v8327_v38  ;;  %3700 = vmatprep.subr.bf16.mxu1 %v8329_v42  ;;  %v7933_v38 = vcombine.high %v230_v30, %v238_v31  ;;  %v7947_v42 = vcombine.high %v245_v35, %v253_v36  ;;  %v7946_v48 = vcombine.low %v245_v35, %v253_v36  ;;  %v357_v31 = vld [vmem:[%s13325_s1 + $0x420] sm:$0xff]  ;;  %v366_v35 = vld [vmem:[%s13325_s1 + $0x468] sm:$0xff] }
  0xf4   : > { %v7948_v49 = vcombine.low %v246_v37, %v254_v39 }
  0xf6   : > { %3619 = vmatpush1.bf16.msra.mxu0 %v8326_v44  ;;  %3701 = vmatpush1.bf16.msra.mxu1 %v8328_v45  ;;  %v269_v44 = vld [vmem:[%s13325_s1 + $0x160] sm:$0xff]  ;;  %v262_v45 = vld [vmem:[%s13325_s1 + $0x128] sm:$0xff] }
  0xf7   : > { %3620 = vmatprep.subr.bf16.mxu0 %v8343_v46  ;;  %3702 = vmatprep.subr.bf16.mxu1 %v8345_v50  ;;  %v7949_v46 = vcombine.high %v246_v37, %v254_v39  ;;  %v7963_v50 = vcombine.high %v261_v43, %v269_v44  ;;  %v7962_v58 = vcombine.low %v261_v43, %v269_v44  ;;  %v373_v39 = vld [vmem:[%s13325_s1 + $0x4a0] sm:$0xff]  ;;  %v382_v43 = vld [vmem:[%s13325_s1 + $0x4e8] sm:$0xff] }
  0xf8   : > { %v7964_v59 = vcombine.low %v262_v45, %v270_v47 }
  0xfa   : > { %3621 = vmatpush1.bf16.msra.mxu0 %v8342_v52  ;;  %3703 = vmatpush1.bf16.msra.mxu1 %v8344_v54  ;;  %v285_v52 = vld [vmem:[%s13325_s1 + $0x1e0] sm:$0xff]  ;;  %v278_v54 = vld [vmem:[%s13325_s1 + $0x1a8] sm:$0xff] }
  0xfb   : > { %3622 = vmatprep.subr.bf16.mxu0 %v8359_v55  ;;  %3704 = vmatprep.subr.bf16.mxu1 %v8361_v60  ;;  %v7965_v55 = vcombine.high %v262_v45, %v270_v47  ;;  %v7979_v60 = vcombine.high %v277_v51, %v285_v52  ;;  %v7978_v2 = vcombine.low %v277_v51, %v285_v52  ;;  %v389_v47 = vld [vmem:[%s13325_s1 + $0x520] sm:$0xff]  ;;  %v398_v51 = vld [vmem:[%s13325_s1 + $0x568] sm:$0xff] }
  0xfc   : > { %v7980_v3 = vcombine.low %v278_v54, %v286_v56 }
  0xfe   : > { %3623 = vmatpush1.bf16.msra.mxu0 %v8358_v62  ;;  %3705 = vmatpush1.bf16.msra.mxu1 %v8360_v63  ;;  %v301_v62 = vld [vmem:[%s13325_s1 + $0x260] sm:$0xff]  ;;  %v294_v63 = vld [vmem:[%s13325_s1 + $0x228] sm:$0xff] }
  0xff   : > { %3624 = vmatprep.subr.bf16.mxu0 %v8375_v0  ;;  %3706 = vmatprep.subr.bf16.mxu1 %v8377_v4  ;;  %v7981_v0 = vcombine.high %v278_v54, %v286_v56  ;;  %v7995_v4 = vcombine.high %v293_v61, %v301_v62  ;;  %v7994_v10 = vcombine.low %v293_v61, %v301_v62  ;;  %v405_v56 = vld [vmem:[%s13325_s1 + $0x5a0] sm:$0xff]  ;;  %v414_v61 = vld [vmem:[%s13325_s1 + $0x5e8] sm:$0xff] }
 0x100   : > { %v7996_v11 = vcombine.low %v294_v63, %v302_v1 }
 0x102   : > { %3625 = vmatpush1.bf16.msra.mxu0 %v8374_v6  ;;  %3707 = vmatpush1.bf16.msra.mxu1 %v8376_v7  ;;  %v317_v6 = vld [vmem:[%s13325_s1 + $0x2e0] sm:$0xff]  ;;  %v310_v7 = vld [vmem:[%s13325_s1 + $0x2a8] sm:$0xff] }
 0x103   : > { %3626 = vmatprep.subr.bf16.mxu0 %v8391_v8  ;;  %3708 = vmatprep.subr.bf16.mxu1 %v8393_v13  ;;  %v7997_v8 = vcombine.high %v294_v63, %v302_v1  ;;  %v8011_v13 = vcombine.high %v309_v5, %v317_v6  ;;  %v8010_v19 = vcombine.low %v309_v5, %v317_v6  ;;  %v421_v1 = vld [vmem:[%s13325_s1 + $0x620] sm:$0xff]  ;;  %v430_v5 = vld [vmem:[%s13325_s1 + $0x668] sm:$0xff] }
 0x104   : > { %v8012_v20 = vcombine.low %v310_v7, %v318_v9 }
 0x106   : > { %3627 = vmatpush1.bf16.msra.mxu0 %v8390_v16  ;;  %3709 = vmatpush1.bf16.msra.mxu1 %v8392_v17  ;;  %v333_v16 = vld [vmem:[%s13325_s1 + $0x360] sm:$0xff]  ;;  %v326_v17 = vld [vmem:[%s13325_s1 + $0x328] sm:$0xff] }
 0x107   : > { %3628 = vmatprep.subr.bf16.mxu0 %v8407_v18  ;;  %3710 = vmatprep.subr.bf16.mxu1 %v8409_v21  ;;  %v8013_v18 = vcombine.high %v310_v7, %v318_v9  ;;  %v8027_v21 = vcombine.high %v325_v14, %v333_v16  ;;  %v8026_v29 = vcombine.low %v325_v14, %v333_v16  ;;  %v437_v9 = vld [vmem:[%s13325_s1 + $0x6a0] sm:$0xff]  ;;  %v446_v14 = vld [vmem:[%s13325_s1 + $0x6e8] sm:$0xff] }
 0x108   : > { %v8028_v30 = vcombine.low %v326_v17, %v334_v53 }
 0x10a   : > { %3629 = vmatpush1.bf16.msra.mxu0 %v8406_v25  ;;  %3711 = vmatpush1.bf16.msra.mxu1 %v8408_v26  ;;  %v349_v25 = vld [vmem:[%s13325_s1 + $0x3e0] sm:$0xff]  ;;  %v342_v26 = vld [vmem:[%s13325_s1 + $0x3a8] sm:$0xff] }
 0x10b   : > { %3630 = vmatprep.subr.bf16.mxu0 %v8423_v27  ;;  %3712 = vmatprep.subr.bf16.mxu1 %v8425_v15  ;;  %v8029_v27 = vcombine.high %v326_v17, %v334_v53  ;;  %v8043_v15 = vcombine.high %v341_v22, %v349_v25  ;;  %v8042_v36 = vcombine.low %v341_v22, %v349_v25  ;;  %v453_v53 = vld [vmem:[%s13325_s1 + $0x720] sm:$0xff]  ;;  %v462_v22 = vld [vmem:[%s13325_s1 + $0x768] sm:$0xff] }
 0x10c   : > { %v8044_v37 = vcombine.low %v342_v26, %v350_v28 }
 0x10e   : > { %3631 = vmatpush1.bf16.msra.mxu0 %v8422_v32  ;;  %3713 = vmatpush1.bf16.msra.mxu1 %v8424_v33  ;;  %v365_v32 = vld [vmem:[%s13325_s1 + $0x460] sm:$0xff]  ;;  %v358_v33 = vld [vmem:[%s13325_s1 + $0x428] sm:$0xff] }
 0x10f   : > { %3723 = vmatprep.subr.bf16.mxu0 %v7931_v34  ;;  %3805 = vmatprep.subr.bf16.mxu1 %v7933_v38  ;;  %v8045_v34 = vcombine.high %v342_v26, %v350_v28  ;;  %v8059_v38 = vcombine.high %v357_v31, %v365_v32  ;;  %v8058_v44 = vcombine.low %v357_v31, %v365_v32  ;;  %v469_v28 = vld [vmem:[%s13325_s1 + $0x7a0] sm:$0xff]  ;;  %v478_v31 = vld [vmem:[%s13325_s1 + $0x7e8] sm:$0xff] }
 0x110   : > { %v8060_v45 = vcombine.low %v358_v33, %v366_v35 }
 0x111   : > { %3633 = vmatmul.mubr.bf16.vlgmr.msra.gmra.mrb[4].mxu0 %v10458_v24  ;;  %3715 = vmatmul.mubr.bf16.vlgmr.msra.gmra.mrb[4].mxu1 %v10458_v24 }
 0x112   : > { %3724 = vmatpush1.bf16.msra.mxu0 %v7930_v40  ;;  %3806 = vmatpush1.bf16.msra.mxu1 %v7932_v41  ;;  %v381_v40 = vld [vmem:[%s13325_s1 + $0x4e0] sm:$0xff]  ;;  %v374_v41 = vld [vmem:[%s13325_s1 + $0x4a8] sm:$0xff] }
 0x113   : > { %3725 = vmatprep.subr.bf16.mxu0 %v7947_v42  ;;  %3807 = vmatprep.subr.bf16.mxu1 %v7949_v46  ;;  %v8061_v42 = vcombine.high %v358_v33, %v366_v35  ;;  %v8075_v46 = vcombine.high %v373_v39, %v381_v40  ;;  %v8074_v52 = vcombine.low %v373_v39, %v381_v40  ;;  %v485_v35 = vld [vmem:[%s13325_s1 + $0x820] sm:$0xff]  ;;  %v494_v39 = vld [vmem:[%s13325_s1 + $0x868] sm:$0xff] }
 0x114   : > { %3755 = vmatprep.mubr.bf16.mxu0 %v10119_v57  ;;  %3837 = vmatprep.mubr.bf16.mxu1 %v10119_v57  ;;  %v8076_v54 = vcombine.low %v374_v41, %v382_v43 }
 0x116   : > { %3726 = vmatpush1.bf16.msra.mxu0 %v7946_v48  ;;  %3808 = vmatpush1.bf16.msra.mxu1 %v7948_v49  ;;  %v397_v48 = vld [vmem:[%s13325_s1 + $0x560] sm:$0xff]  ;;  %v390_v49 = vld [vmem:[%s13325_s1 + $0x528] sm:$0xff] }
 0x117   : > { %3727 = vmatprep.subr.bf16.mxu0 %v7963_v50  ;;  %3809 = vmatprep.subr.bf16.mxu1 %v7965_v55  ;;  %v8077_v50 = vcombine.high %v374_v41, %v382_v43  ;;  %v8091_v55 = vcombine.high %v389_v47, %v397_v48  ;;  %v8090_v62 = vcombine.low %v389_v47, %v397_v48  ;;  %v501_v43 = vld [vmem:[%s13325_s1 + $0x8a0] sm:$0xff]  ;;  %v510_v47 = vld [vmem:[%s13325_s1 + $0x8e8] sm:$0xff] }
 0x118   : > { %v8092_v63 = vcombine.low %v390_v49, %v398_v51 }
 0x11a   : > { %3728 = vmatpush1.bf16.msra.mxu0 %v7962_v58  ;;  %3810 = vmatpush1.bf16.msra.mxu1 %v7964_v59  ;;  %v413_v58 = vld [vmem:[%s13325_s1 + $0x5e0] sm:$0xff]  ;;  %v406_v59 = vld [vmem:[%s13325_s1 + $0x5a8] sm:$0xff] }
 0x11b   : > { %3729 = vmatprep.subr.bf16.mxu0 %v7979_v60  ;;  %3811 = vmatprep.subr.bf16.mxu1 %v7981_v0  ;;  %v8093_v60 = vcombine.high %v390_v49, %v398_v51  ;;  %v8107_v0 = vcombine.high %v405_v56, %v413_v58  ;;  %v8106_v6 = vcombine.low %v405_v56, %v413_v58  ;;  %v526_v56 = vld [vmem:[%s13325_s1 + $0x968] sm:$0xff] }
 0x11c   : > { %v8108_v7 = vcombine.low %v406_v59, %v414_v61 }
 0x11e   : > { %3730 = vmatpush1.bf16.msra.mxu0 %v7978_v2  ;;  %3812 = vmatpush1.bf16.msra.mxu1 %v7980_v3  ;;  %v429_v2 = vld [vmem:[%s13325_s1 + $0x660] sm:$0xff]  ;;  %v422_v3 = vld [vmem:[%s13325_s1 + $0x628] sm:$0xff] }
 0x11f   : > { %3731 = vmatprep.subr.bf16.mxu0 %v7995_v4  ;;  %3813 = vmatprep.subr.bf16.mxu1 %v7997_v8  ;;  %v8109_v4 = vcombine.high %v406_v59, %v414_v61  ;;  %v8123_v8 = vcombine.high %v421_v1, %v429_v2  ;;  %v8122_v16 = vcombine.low %v421_v1, %v429_v2  ;;  %v542_v1 = vld [vmem:[%s13325_s1 + $0x9e8] sm:$0xff] }
 0x120   : > { %v8124_v17 = vcombine.low %v422_v3, %v430_v5 }
 0x122   : > { %3732 = vmatpush1.bf16.msra.mxu0 %v7994_v10  ;;  %3814 = vmatpush1.bf16.msra.mxu1 %v7996_v11  ;;  %v445_v10 = vld [vmem:[%s13325_s1 + $0x6e0] sm:$0xff]  ;;  %v438_v11 = vld [vmem:[%s13325_s1 + $0x6a8] sm:$0xff] }
 0x123   : > { %3733 = vmatprep.subr.bf16.mxu0 %v8011_v13  ;;  %3815 = vmatprep.subr.bf16.mxu1 %v8013_v18  ;;  %v8125_v13 = vcombine.high %v422_v3, %v430_v5  ;;  %v8139_v18 = vcombine.high %v437_v9, %v445_v10  ;;  %v8138_v25 = vcombine.low %v437_v9, %v445_v10  ;;  %v558_v9 = vld [vmem:[%s13325_s1 + $0xa68] sm:$0xff] }
 0x124   : > { %v8140_v26 = vcombine.low %v438_v11, %v446_v14 }
 0x126   : > { %3734 = vmatpush1.bf16.msra.mxu0 %v8010_v19  ;;  %3816 = vmatpush1.bf16.msra.mxu1 %v8012_v20  ;;  %v461_v19 = vld [vmem:[%s13325_s1 + $0x760] sm:$0xff]  ;;  %v454_v20 = vld [vmem:[%s13325_s1 + $0x728] sm:$0xff] }
 0x127   : > { %3735 = vmatprep.subr.bf16.mxu0 %v8027_v21  ;;  %3817 = vmatprep.subr.bf16.mxu1 %v8029_v27  ;;  %v8141_v21 = vcombine.high %v438_v11, %v446_v14  ;;  %v8155_v27 = vcombine.high %v453_v53, %v461_v19  ;;  %v8154_v32 = vcombine.low %v453_v53, %v461_v19  ;;  %v574_v53 = vld [vmem:[%s13325_s1 + $0xae8] sm:$0xff] }
 0x128   : > { %v8156_v33 = vcombine.low %v454_v20, %v462_v22 }
 0x12a   : > { %3736 = vmatpush1.bf16.msra.mxu0 %v8026_v29  ;;  %3818 = vmatpush1.bf16.msra.mxu1 %v8028_v30  ;;  %v477_v29 = vld [vmem:[%s13325_s1 + $0x7e0] sm:$0xff]  ;;  %v470_v30 = vld [vmem:[%s13325_s1 + $0x7a8] sm:$0xff] }
 0x12b   : > { %3737 = vmatprep.subr.bf16.mxu0 %v8043_v15  ;;  %3819 = vmatprep.subr.bf16.mxu1 %v8045_v34  ;;  %v8157_v15 = vcombine.high %v454_v20, %v462_v22  ;;  %v8171_v34 = vcombine.high %v469_v28, %v477_v29  ;;  %v8170_v40 = vcombine.low %v469_v28, %v477_v29  ;;  %v590_v28 = vld [vmem:[%s13325_s1 + $0xb68] sm:$0xff] }
 0x12c   : > { %v8172_v41 = vcombine.low %v470_v30, %v478_v31 }
 0x12e   : > { %3738 = vmatpush1.bf16.msra.mxu0 %v8042_v36  ;;  %3820 = vmatpush1.bf16.msra.mxu1 %v8044_v37  ;;  %v493_v36 = vld [vmem:[%s13325_s1 + $0x860] sm:$0xff]  ;;  %v486_v37 = vld [vmem:[%s13325_s1 + $0x828] sm:$0xff] }
 0x12f   : > { %3739 = vmatprep.subr.bf16.mxu0 %v8059_v38  ;;  %3821 = vmatprep.subr.bf16.mxu1 %v8061_v42  ;;  %v8173_v38 = vcombine.high %v470_v30, %v478_v31  ;;  %v8187_v42 = vcombine.high %v485_v35, %v493_v36  ;;  %v8186_v48 = vcombine.low %v485_v35, %v493_v36 }
 0x130   : > { %v8188_v49 = vcombine.low %v486_v37, %v494_v39 }
 0x132   : > { %3740 = vmatpush1.bf16.msra.mxu0 %v8058_v44  ;;  %3822 = vmatpush1.bf16.msra.mxu1 %v8060_v45  ;;  %v509_v44 = vld [vmem:[%s13325_s1 + $0x8e0] sm:$0xff]  ;;  %v502_v45 = vld [vmem:[%s13325_s1 + $0x8a8] sm:$0xff] }
 0x133   : > { %3741 = vmatprep.subr.bf16.mxu0 %v8075_v46  ;;  %3823 = vmatprep.subr.bf16.mxu1 %v8077_v50  ;;  %v8189_v46 = vcombine.high %v486_v37, %v494_v39  ;;  %v8203_v50 = vcombine.high %v501_v43, %v509_v44  ;;  %v8205_v51 = vcombine.high %v502_v45, %v510_v47  ;;  %v598_v37 = vld [vmem:[%s13325_s1 + $0xba8] sm:$0xff] }
 0x134   : > { %v8202_v58 = vcombine.low %v501_v43, %v509_v44  ;;  %v8204_v59 = vcombine.low %v502_v45, %v510_v47 }
 0x136   : > { %3742 = vmatpush1.bf16.msra.mxu0 %v8074_v52  ;;  %3824 = vmatpush1.bf16.msra.mxu1 %v8076_v54  ;;  %v517_v52 = vld [vmem:[%s13325_s1 + $0x920] sm:$0xff] }
 0x137   : > { %3743 = vmatprep.subr.bf16.mxu0 %v8091_v55  ;;  %3825 = vmatprep.subr.bf16.mxu1 %v8093_v60  ;;  %v525_v54 = vld [vmem:[%s13325_s1 + $0x960] sm:$0xff]  ;;  %v518_v55 = vld [vmem:[%s13325_s1 + $0x928] sm:$0xff] }
 0x138   : > { %v8219_v60 = vcombine.high %v517_v52, %v525_v54  ;;  %v8221_v61 = vcombine.high %v518_v55, %v526_v56  ;;  %v8218_v2 = vcombine.low %v517_v52, %v525_v54  ;;  %v8220_v3 = vcombine.low %v518_v55, %v526_v56 }
 0x13a   : > { %3744 = vmatpush1.bf16.msra.mxu0 %v8090_v62  ;;  %3826 = vmatpush1.bf16.msra.mxu1 %v8092_v63  ;;  %v533_v62 = vld [vmem:[%s13325_s1 + $0x9a0] sm:$0xff] }
 0x13b   : > { %3745 = vmatprep.subr.bf16.mxu0 %v8107_v0  ;;  %3827 = vmatprep.subr.bf16.mxu1 %v8109_v4  ;;  %v541_v63 = vld [vmem:[%s13325_s1 + $0x9e0] sm:$0xff]  ;;  %v534_v0 = vld [vmem:[%s13325_s1 + $0x9a8] sm:$0xff] }
 0x13c   : > { %v8235_v4 = vcombine.high %v533_v62, %v541_v63  ;;  %v8237_v5 = vcombine.high %v534_v0, %v542_v1  ;;  %v8234_v10 = vcombine.low %v533_v62, %v541_v63  ;;  %v8236_v11 = vcombine.low %v534_v0, %v542_v1 }
 0x13e   : > { %3746 = vmatpush1.bf16.msra.mxu0 %v8106_v6  ;;  %3828 = vmatpush1.bf16.msra.mxu1 %v8108_v7  ;;  %v549_v6 = vld [vmem:[%s13325_s1 + $0xa20] sm:$0xff] }
 0x13f   : > { %3747 = vmatprep.subr.bf16.mxu0 %v8123_v8  ;;  %3829 = vmatprep.subr.bf16.mxu1 %v8125_v13  ;;  %v557_v7 = vld [vmem:[%s13325_s1 + $0xa60] sm:$0xff]  ;;  %v550_v8 = vld [vmem:[%s13325_s1 + $0xa28] sm:$0xff] }
 0x140   : > { %v8251_v13 = vcombine.high %v549_v6, %v557_v7  ;;  %v8253_v14 = vcombine.high %v550_v8, %v558_v9  ;;  %v8250_v19 = vcombine.low %v549_v6, %v557_v7  ;;  %v8252_v20 = vcombine.low %v550_v8, %v558_v9 }
 0x142   : > { %3748 = vmatpush1.bf16.msra.mxu0 %v8122_v16  ;;  %3830 = vmatpush1.bf16.msra.mxu1 %v8124_v17  ;;  %v565_v16 = vld [vmem:[%s13325_s1 + $0xaa0] sm:$0xff] }
 0x143   : > { %3749 = vmatprep.subr.bf16.mxu0 %v8139_v18  ;;  %3831 = vmatprep.subr.bf16.mxu1 %v8141_v21  ;;  %v573_v17 = vld [vmem:[%s13325_s1 + $0xae0] sm:$0xff]  ;;  %v566_v18 = vld [vmem:[%s13325_s1 + $0xaa8] sm:$0xff] }
 0x144   : > { %v8267_v21 = vcombine.high %v565_v16, %v573_v17  ;;  %v8269_v22 = vcombine.high %v566_v18, %v574_v53  ;;  %v8266_v29 = vcombine.low %v565_v16, %v573_v17  ;;  %v8268_v30 = vcombine.low %v566_v18, %v574_v53 }
 0x146   : > { %3750 = vmatpush1.bf16.msra.mxu0 %v8138_v25  ;;  %3832 = vmatpush1.bf16.msra.mxu1 %v8140_v26  ;;  %v581_v25 = vld [vmem:[%s13325_s1 + $0xb20] sm:$0xff] }
 0x147   : > { %3751 = vmatprep.subr.bf16.mxu0 %v8155_v27  ;;  %3833 = vmatprep.subr.bf16.mxu1 %v8157_v15  ;;  %v589_v26 = vld [vmem:[%s13325_s1 + $0xb60] sm:$0xff]  ;;  %v582_v27 = vld [vmem:[%s13325_s1 + $0xb28] sm:$0xff] }
 0x148   : > { %v8283_v15 = vcombine.high %v581_v25, %v589_v26  ;;  %v8284_v44 = vcombine.low %v582_v27, %v590_v28 }
 0x14a   : > { %3752 = vmatpush1.bf16.msra.mxu0 %v8154_v32  ;;  %3834 = vmatpush1.bf16.msra.mxu1 %v8156_v33  ;;  %v8285_v32 = vcombine.high %v582_v27, %v590_v28  ;;  %v597_v33 = vld [vmem:[%s13325_s1 + $0xba0] sm:$0xff] }
 0x14b   : > { %3753 = vmatprep.subr.bf16.mxu0 %v8171_v34  ;;  %3835 = vmatprep.subr.bf16.mxu1 %v8173_v38  ;;  %v605_v34 = vld [vmem:[%s13325_s1 + $0xbe0] sm:$0xff]  ;;  %v606_v38 = vld [vmem:[%s13325_s1 + $0xbe8] sm:$0xff] }
 0x14c   : > { %v8299_v45 = vcombine.high %v597_v33, %v605_v34  ;;  %v8301_v47 = vcombine.high %v598_v37, %v606_v38  ;;  %v8298_v52 = vcombine.low %v597_v33, %v605_v34  ;;  %v8300_v54 = vcombine.low %v598_v37, %v606_v38 }
 0x14e   : > { %3754 = vmatpush1.bf16.msra.mxu0 %v8170_v40  ;;  %3836 = vmatpush1.bf16.msra.mxu1 %v8172_v41  ;;  %v8282_v41 = vcombine.low %v581_v25, %v589_v26 }
 0x14f   : > { %3764 = vmatprep.subr.bf16.mxu0 %v8187_v42  ;;  %3846 = vmatprep.subr.bf16.mxu1 %v8189_v46 }
 0x151   : > { %3756 = vmatmul.mubr.bf16.vlgmr.msra.gmra.mrb[8].mxu0 %v10245_v12  ;;  %3838 = vmatmul.mubr.bf16.vlgmr.msra.gmra.mrb[8].mxu1 %v10245_v12 }
 0x152   : > { %3765 = vmatpush1.bf16.msra.mxu0 %v8186_v48  ;;  %3847 = vmatpush1.bf16.msra.mxu1 %v8188_v49  ;;  %v613_v48 = vld [vmem:[%s13325_s1 + $0xc20] sm:$0xff] }
 0x153   : > { %3766 = vmatprep.subr.bf16.mxu0 %v8203_v50  ;;  %3848 = vmatprep.subr.bf16.mxu1 %v8205_v51  ;;  %v621_v49 = vld [vmem:[%s13325_s1 + $0xc60] sm:$0xff]  ;;  %v614_v50 = vld [vmem:[%s13325_s1 + $0xc28] sm:$0xff] }
 0x154   : > { %3796 = vmatprep.mubr.bf16.mxu0 %v10270_v23  ;;  %3878 = vmatprep.mubr.bf16.mxu1 %v10270_v23  ;;  %v622_v51 = vld [vmem:[%s13325_s1 + $0xc68] sm:$0xff]  ;;  %v8315_v55 = vcombine.high %v613_v48, %v621_v49  ;;  %v8314_v62 = vcombine.low %v613_v48, %v621_v49  ;;  %v725_v48 = vld [vmem:[%s13325_s1 + $0xfa0] sm:$0xff] }
 0x155   : > { %v8317_v56 = vcombine.high %v614_v50, %v622_v51  ;;  %v8316_v63 = vcombine.low %v614_v50, %v622_v51  ;;  %v733_v49 = vld [vmem:[%s13325_s1 + $0xfe0] sm:$0xff]  ;;  %v726_v50 = vld [vmem:[%s13325_s1 + $0xfa8] sm:$0xff] }
 0x156   : > { %3767 = vmatpush1.bf16.msra.mxu0 %v8202_v58  ;;  %3849 = vmatpush1.bf16.msra.mxu1 %v8204_v59  ;;  %v629_v58 = vld [vmem:[%s13325_s1 + $0xca0] sm:$0xff]  ;;  %v734_v51 = vld [vmem:[%s13325_s1 + $0xfe8] sm:$0xff] }
 0x157   : > { %3768 = vmatprep.subr.bf16.mxu0 %v8219_v60  ;;  %3850 = vmatprep.subr.bf16.mxu1 %v8221_v61  ;;  %v637_v59 = vld [vmem:[%s13325_s1 + $0xce0] sm:$0xff]  ;;  %v630_v60 = vld [vmem:[%s13325_s1 + $0xca8] sm:$0xff] }
 0x158   : > { %v638_v61 = vld [vmem:[%s13325_s1 + $0xce8] sm:$0xff]  ;;  %v8331_v0 = vcombine.high %v629_v58, %v637_v59  ;;  %v8330_v6 = vcombine.low %v629_v58, %v637_v59  ;;  %v231_v58 = vld [vmem:[%s13325_s1 + $0x30] sm:$0xff] }
 0x159   : > { %v8333_v1 = vcombine.high %v630_v60, %v638_v61  ;;  %v8332_v7 = vcombine.low %v630_v60, %v638_v61  ;;  %v239_v59 = vld [vmem:[%s13325_s1 + $0x70] sm:$0xff]  ;;  %v232_v60 = vld [vmem:[%s13325_s1 + $0x38] sm:$0xff] }
 0x15a   : > { %3769 = vmatpush1.bf16.msra.mxu0 %v8218_v2  ;;  %3851 = vmatpush1.bf16.msra.mxu1 %v8220_v3  ;;  %v645_v2 = vld [vmem:[%s13325_s1 + $0xd20] sm:$0xff]  ;;  %v240_v61 = vld [vmem:[%s13325_s1 + $0x78] sm:$0xff] }
 0x15b   : > { %3770 = vmatprep.subr.bf16.mxu0 %v8235_v4  ;;  %3852 = vmatprep.subr.bf16.mxu1 %v8237_v5  ;;  %v653_v3 = vld [vmem:[%s13325_s1 + $0xd60] sm:$0xff]  ;;  %v646_v4 = vld [vmem:[%s13325_s1 + $0xd28] sm:$0xff] }
 0x15c   : > { %v654_v5 = vld [vmem:[%s13325_s1 + $0xd68] sm:$0xff]  ;;  %v8347_v8 = vcombine.high %v645_v2, %v653_v3  ;;  %v8346_v16 = vcombine.low %v645_v2, %v653_v3  ;;  %v247_v2 = vld [vmem:[%s13325_s1 + $0xb0] sm:$0xff] }
 0x15d   : > { %v8349_v9 = vcombine.high %v646_v4, %v654_v5  ;;  %v8348_v17 = vcombine.low %v646_v4, %v654_v5  ;;  %v255_v3 = vld [vmem:[%s13325_s1 + $0xf0] sm:$0xff]  ;;  %v248_v4 = vld [vmem:[%s13325_s1 + $0xb8] sm:$0xff] }
 0x15e   : > { %3771 = vmatpush1.bf16.msra.mxu0 %v8234_v10  ;;  %3853 = vmatpush1.bf16.msra.mxu1 %v8236_v11  ;;  %v661_v10 = vld [vmem:[%s13325_s1 + $0xda0] sm:$0xff]  ;;  %v256_v5 = vld [vmem:[%s13325_s1 + $0xf8] sm:$0xff] }
 0x15f   : > { %3772 = vmatprep.subr.bf16.mxu0 %v8251_v13  ;;  %3854 = vmatprep.subr.bf16.mxu1 %v8253_v14  ;;  %v669_v11 = vld [vmem:[%s13325_s1 + $0xde0] sm:$0xff]  ;;  %v662_v13 = vld [vmem:[%s13325_s1 + $0xda8] sm:$0xff] }
 0x160   : > { %v670_v14 = vld [vmem:[%s13325_s1 + $0xde8] sm:$0xff]  ;;  %v8363_v18 = vcombine.high %v661_v10, %v669_v11  ;;  %v8362_v25 = vcombine.low %v661_v10, %v669_v11  ;;  %v263_v10 = vld [vmem:[%s13325_s1 + $0x130] sm:$0xff] }
 0x161   : > { %v8365_v53 = vcombine.high %v662_v13, %v670_v14  ;;  %v8364_v26 = vcombine.low %v662_v13, %v670_v14  ;;  %v271_v11 = vld [vmem:[%s13325_s1 + $0x170] sm:$0xff]  ;;  %v264_v13 = vld [vmem:[%s13325_s1 + $0x138] sm:$0xff] }
 0x162   : > { %3773 = vmatpush1.bf16.msra.mxu0 %v8250_v19  ;;  %3855 = vmatpush1.bf16.msra.mxu1 %v8252_v20  ;;  %v677_v19 = vld [vmem:[%s13325_s1 + $0xe20] sm:$0xff]  ;;  %v272_v14 = vld [vmem:[%s13325_s1 + $0x178] sm:$0xff] }
 0x163   : > { %3774 = vmatprep.subr.bf16.mxu0 %v8267_v21  ;;  %3856 = vmatprep.subr.bf16.mxu1 %v8269_v22  ;;  %v685_v20 = vld [vmem:[%s13325_s1 + $0xe60] sm:$0xff]  ;;  %v678_v21 = vld [vmem:[%s13325_s1 + $0xe28] sm:$0xff] }
 0x164   : > { %v11112_v31 = vpop.f32.mrb[0].mxu0  ;;  %v11120_v35 = vpop.f32.mrb[0].mxu1  ;;  %v686_v22 = vld [vmem:[%s13325_s1 + $0xe68] sm:$0xff]  ;;  %v8379_v27 = vcombine.high %v677_v19, %v685_v20  ;;  %v8378_v33 = vcombine.low %v677_v19, %v685_v20  ;;  %v279_v19 = vld [vmem:[%s13325_s1 + $0x1b0] sm:$0xff] }
 0x165   : > { %v11122_v36 = vpop.f32.mrb[1].mxu0  ;;  %v11130_v39 = vpop.f32.mrb[1].mxu1  ;;  %v8381_v28 = vcombine.high %v678_v21, %v686_v22  ;;  %v8380_v34 = vcombine.low %v678_v21, %v686_v22  ;;  %v287_v20 = vld [vmem:[%s13325_s1 + $0x1f0] sm:$0xff]  ;;  %v280_v21 = vld [vmem:[%s13325_s1 + $0x1b8] sm:$0xff] }
 0x166   : > { %v3474_v40 = vpop.f32.mrb[2].mxu0  ;;  %3775 = vmatpush1.bf16.msra.mxu0 %v8266_v29  ;;  %v3556_v42 = vpop.f32.mrb[2].mxu1  ;;  %3857 = vmatpush1.bf16.msra.mxu1 %v8268_v30  ;;  %v693_v29 = vld [vmem:[%s13325_s1 + $0xea0] sm:$0xff]  ;;  %v288_v22 = vld [vmem:[%s13325_s1 + $0x1f8] sm:$0xff] }
 0x167   : > { %v3475_v43 = vpop.f32.mrb[3].mxu0  ;;  %3776 = vmatprep.subr.bf16.mxu0 %v8283_v15  ;;  %v3557_v46 = vpop.f32.mrb[3].mxu1  ;;  %3858 = vmatprep.subr.bf16.mxu1 %v8285_v32  ;;  %v701_v30 = vld [vmem:[%s13325_s1 + $0xee0] sm:$0xff]  ;;  %v694_v15 = vld [vmem:[%s13325_s1 + $0xea8] sm:$0xff] }
 0x168   : > { %v702_v32 = vld [vmem:[%s13325_s1 + $0xee8] sm:$0xff]  ;;  %v8395_v37 = vcombine.high %v693_v29, %v701_v30  ;;  %v709_v40 = vld [vmem:[%s13325_s1 + $0xf20] sm:$0xff] }
 0x169   : > { %v8397_v38 = vcombine.high %v694_v15, %v702_v32  ;;  %v710_v42 = vld [vmem:[%s13325_s1 + $0xf28] sm:$0xff] }
 0x16a   : > { %3777 = vmatpush1.bf16.msra.mxu0 %v8282_v41  ;;  %3859 = vmatpush1.bf16.msra.mxu1 %v8284_v44  ;;  %v717_v41 = vld [vmem:[%s13325_s1 + $0xf60] sm:$0xff]  ;;  %v718_v43 = vld [vmem:[%s13325_s1 + $0xf68] sm:$0xff]  ;;  %v8394_v44 = vcombine.low %v693_v29, %v701_v30  ;;  %v295_v29 = vld [vmem:[%s13325_s1 + $0x230] sm:$0xff] }
 0x16b   : > { %3778 = vmatprep.subr.bf16.mxu0 %v8299_v45  ;;  %3860 = vmatprep.subr.bf16.mxu1 %v8301_v47  ;;  %v8396_v45 = vcombine.low %v694_v15, %v702_v32  ;;  %v8411_v46 = vcombine.high %v709_v40, %v717_v41  ;;  %v8413_v47 = vcombine.high %v710_v42, %v718_v43  ;;  %v303_v30 = vld [vmem:[%s13325_s1 + $0x270] sm:$0xff]  ;;  %v304_v15 = vld [vmem:[%s13325_s1 + $0x278] sm:$0xff] }
 0x16c   : > { %v7982_v32 = vcombine.low %v279_v19, %v287_v20 }
 0x16e   : > { %3779 = vmatpush1.bf16.msra.mxu0 %v8298_v52  ;;  %3861 = vmatpush1.bf16.msra.mxu1 %v8300_v54  ;;  %v8410_v52 = vcombine.low %v709_v40, %v717_v41  ;;  %v8412_v54 = vcombine.low %v710_v42, %v718_v43  ;;  %v319_v40 = vld [vmem:[%s13325_s1 + $0x2f0] sm:$0xff]  ;;  %v312_v41 = vld [vmem:[%s13325_s1 + $0x2b8] sm:$0xff]  ;;  %v7998_v43 = vcombine.low %v295_v29, %v303_v30 }
 0x16f   : > { %3780 = vmatprep.subr.bf16.mxu0 %v8315_v55  ;;  %3862 = vmatprep.subr.bf16.mxu1 %v8317_v56  ;;  %v8427_v55 = vcombine.high %v725_v48, %v733_v49  ;;  %v8429_v56 = vcombine.high %v726_v50, %v734_v51  ;;  %v320_v42 = vld [vmem:[%s13325_s1 + $0x2f8] sm:$0xff] }
 0x172   : > { %3781 = vmatpush1.bf16.msra.mxu0 %v8314_v62  ;;  %3863 = vmatpush1.bf16.msra.mxu1 %v8316_v63  ;;  %v8426_v62 = vcombine.low %v725_v48, %v733_v49  ;;  %v8428_v63 = vcombine.low %v726_v50, %v734_v51  ;;  %v335_v48 = vld [vmem:[%s13325_s1 + $0x370] sm:$0xff]  ;;  %v328_v49 = vld [vmem:[%s13325_s1 + $0x338] sm:$0xff] }
 0x173   : > { %3782 = vmatprep.subr.bf16.mxu0 %v8331_v0  ;;  %3864 = vmatprep.subr.bf16.mxu1 %v8333_v1  ;;  %v7935_v0 = vcombine.high %v231_v58, %v239_v59  ;;  %v7937_v1 = vcombine.high %v232_v60, %v240_v61  ;;  %v336_v50 = vld [vmem:[%s13325_s1 + $0x378] sm:$0xff] }
 0x176   : > { %3783 = vmatpush1.bf16.msra.mxu0 %v8330_v6  ;;  %3865 = vmatpush1.bf16.msra.mxu1 %v8332_v7  ;;  %v7934_v6 = vcombine.low %v231_v58, %v239_v59  ;;  %v7936_v7 = vcombine.low %v232_v60, %v240_v61  ;;  %v351_v58 = vld [vmem:[%s13325_s1 + $0x3f0] sm:$0xff]  ;;  %v344_v59 = vld [vmem:[%s13325_s1 + $0x3b8] sm:$0xff] }
 0x177   : > { %3784 = vmatprep.subr.bf16.mxu0 %v8347_v8  ;;  %3866 = vmatprep.subr.bf16.mxu1 %v8349_v9  ;;  %v7951_v8 = vcombine.high %v247_v2, %v255_v3  ;;  %v7953_v9 = vcombine.high %v248_v4, %v256_v5  ;;  %v352_v60 = vld [vmem:[%s13325_s1 + $0x3f8] sm:$0xff] }
 0x17a   : > { %3785 = vmatpush1.bf16.msra.mxu0 %v8346_v16  ;;  %3867 = vmatpush1.bf16.msra.mxu1 %v8348_v17  ;;  %v7950_v16 = vcombine.low %v247_v2, %v255_v3  ;;  %v7952_v17 = vcombine.low %v248_v4, %v256_v5  ;;  %v367_v2 = vld [vmem:[%s13325_s1 + $0x470] sm:$0xff]  ;;  %v360_v3 = vld [vmem:[%s13325_s1 + $0x438] sm:$0xff] }
 0x17b   : > { %3786 = vmatprep.subr.bf16.mxu0 %v8363_v18  ;;  %3868 = vmatprep.subr.bf16.mxu1 %v8365_v53  ;;  %v7967_v18 = vcombine.high %v263_v10, %v271_v11  ;;  %v7969_v53 = vcombine.high %v264_v13, %v272_v14  ;;  %v368_v4 = vld [vmem:[%s13325_s1 + $0x478] sm:$0xff] }
 0x17e   : > { %3787 = vmatpush1.bf16.msra.mxu0 %v8362_v25  ;;  %3869 = vmatpush1.bf16.msra.mxu1 %v8364_v26  ;;  %v7966_v25 = vcombine.low %v263_v10, %v271_v11  ;;  %v7968_v26 = vcombine.low %v264_v13, %v272_v14  ;;  %v383_v10 = vld [vmem:[%s13325_s1 + $0x4f0] sm:$0xff]  ;;  %v376_v11 = vld [vmem:[%s13325_s1 + $0x4b8] sm:$0xff] }
 0x17f   : > { %3788 = vmatprep.subr.bf16.mxu0 %v8379_v27  ;;  %3870 = vmatprep.subr.bf16.mxu1 %v8381_v28  ;;  %v7983_v27 = vcombine.high %v279_v19, %v287_v20  ;;  %v7985_v28 = vcombine.high %v280_v21, %v288_v22  ;;  %v384_v13 = vld [vmem:[%s13325_s1 + $0x4f8] sm:$0xff]  ;;  %v399_v19 = vld [vmem:[%s13325_s1 + $0x570] sm:$0xff] }
 0x180   : > { %v392_v20 = vld [vmem:[%s13325_s1 + $0x538] sm:$0xff] }
 0x182   : > { %3789 = vmatpush1.bf16.msra.mxu0 %v8378_v33  ;;  %3871 = vmatpush1.bf16.msra.mxu1 %v8380_v34  ;;  %v7984_v33 = vcombine.low %v280_v21, %v288_v22  ;;  %v7999_v34 = vcombine.high %v295_v29, %v303_v30  ;;  %v400_v21 = vld [vmem:[%s13325_s1 + $0x578] sm:$0xff]  ;;  %v415_v29 = vld [vmem:[%s13325_s1 + $0x5f0] sm:$0xff] }
 0x183   : > { %3790 = vmatprep.subr.bf16.mxu0 %v8395_v37  ;;  %3872 = vmatprep.subr.bf16.mxu1 %v8397_v38  ;;  %v311_v38 = vld [vmem:[%s13325_s1 + $0x2b0] sm:$0xff]  ;;  %v408_v30 = vld [vmem:[%s13325_s1 + $0x5b8] sm:$0xff] }
 0x184   : > { %v8014_v51 = vcombine.low %v311_v38, %v319_v40 }
 0x186   : > { %3791 = vmatpush1.bf16.msra.mxu0 %v8394_v44  ;;  %3873 = vmatpush1.bf16.msra.mxu1 %v8396_v45  ;;  %v8015_v45 = vcombine.high %v311_v38, %v319_v40  ;;  %v431_v38 = vld [vmem:[%s13325_s1 + $0x670] sm:$0xff]  ;;  %v424_v40 = vld [vmem:[%s13325_s1 + $0x638] sm:$0xff] }
 0x187   : > { %3792 = vmatprep.subr.bf16.mxu0 %v8411_v46  ;;  %3874 = vmatprep.subr.bf16.mxu1 %v8413_v47  ;;  %v8017_v46 = vcombine.high %v312_v41, %v320_v42  ;;  %v327_v47 = vld [vmem:[%s13325_s1 + $0x330] sm:$0xff] }
 0x188   : > { %v8030_v61 = vcombine.low %v327_v47, %v335_v48 }
 0x18a   : > { %3793 = vmatpush1.bf16.msra.mxu0 %v8410_v52  ;;  %3875 = vmatpush1.bf16.msra.mxu1 %v8412_v54  ;;  %v8016_v52 = vcombine.low %v312_v41, %v320_v42  ;;  %v8031_v54 = vcombine.high %v327_v47, %v335_v48  ;;  %v432_v41 = vld [vmem:[%s13325_s1 + $0x678] sm:$0xff]  ;;  %v447_v47 = vld [vmem:[%s13325_s1 + $0x6f0] sm:$0xff] }
 0x18b   : > { %3794 = vmatprep.subr.bf16.mxu0 %v8427_v55  ;;  %3876 = vmatprep.subr.bf16.mxu1 %v8429_v56  ;;  %v8033_v55 = vcombine.high %v328_v49, %v336_v50  ;;  %v343_v56 = vld [vmem:[%s13325_s1 + $0x3b0] sm:$0xff]  ;;  %v440_v48 = vld [vmem:[%s13325_s1 + $0x6b8] sm:$0xff] }
 0x18c   : > { %v8046_v5 = vcombine.low %v343_v56, %v351_v58 }
 0x18e   : > { %3795 = vmatpush1.bf16.msra.mxu0 %v8426_v62  ;;  %3877 = vmatpush1.bf16.msra.mxu1 %v8428_v63  ;;  %v8032_v62 = vcombine.low %v328_v49, %v336_v50  ;;  %v8047_v63 = vcombine.high %v343_v56, %v351_v58  ;;  %v448_v49 = vld [vmem:[%s13325_s1 + $0x6f8] sm:$0xff]  ;;  %v463_v56 = vld [vmem:[%s13325_s1 + $0x770] sm:$0xff] }
 0x18f   : > { %3887 = vmatprep.subr.bf16.mxu0 %v7935_v0  ;;  %3969 = vmatprep.subr.bf16.mxu1 %v7937_v1  ;;  %v8049_v0 = vcombine.high %v344_v59, %v352_v60  ;;  %v359_v1 = vld [vmem:[%s13325_s1 + $0x430] sm:$0xff]  ;;  %v456_v58 = vld [vmem:[%s13325_s1 + $0x738] sm:$0xff] }
 0x190   : > { %v8062_v14 = vcombine.low %v359_v1, %v367_v2 }
 0x191   : > { %3797 = vmatmul.mubr.bf16.vlgmr.msra.gmra.mrb[8].mxu0 %v10458_v24  ;;  %3879 = vmatmul.mubr.bf16.vlgmr.msra.gmra.mrb[8].mxu1 %v10458_v24 }
 0x192   : > { %3888 = vmatpush1.bf16.msra.mxu0 %v7934_v6  ;;  %3970 = vmatpush1.bf16.msra.mxu1 %v7936_v7  ;;  %v8048_v6 = vcombine.low %v344_v59, %v352_v60  ;;  %v8063_v7 = vcombine.high %v359_v1, %v367_v2  ;;  %v464_v59 = vld [vmem:[%s13325_s1 + $0x778] sm:$0xff]  ;;  %v479_v1 = vld [vmem:[%s13325_s1 + $0x7f0] sm:$0xff] }
 0x193   : > { %3889 = vmatprep.subr.bf16.mxu0 %v7951_v8  ;;  %3971 = vmatprep.subr.bf16.mxu1 %v7953_v9  ;;  %v8065_v8 = vcombine.high %v360_v3, %v368_v4  ;;  %v375_v9 = vld [vmem:[%s13325_s1 + $0x4b0] sm:$0xff]  ;;  %v472_v2 = vld [vmem:[%s13325_s1 + $0x7b8] sm:$0xff] }
 0x194   : > { %3919 = vmatprep.mubr.bf16.mxu0 %v10119_v57  ;;  %4001 = vmatprep.mubr.bf16.mxu1 %v10119_v57  ;;  %v296_v57 = vld [vmem:[%s13325_s1 + $0x238] sm:$0xff]  ;;  %v8078_v22 = vcombine.low %v375_v9, %v383_v10 }
 0x195   : > { %v8001_v37 = vcombine.high %v296_v57, %v304_v15  ;;  %v8000_v44 = vcombine.low %v296_v57, %v304_v15  ;;  %v416_v57 = vld [vmem:[%s13325_s1 + $0x5f8] sm:$0xff] }
 0x196   : > { %3890 = vmatpush1.bf16.msra.mxu0 %v7950_v16  ;;  %3972 = vmatpush1.bf16.msra.mxu1 %v7952_v17  ;;  %v8064_v16 = vcombine.low %v360_v3, %v368_v4  ;;  %v8079_v17 = vcombine.high %v375_v9, %v383_v10  ;;  %v480_v3 = vld [vmem:[%s13325_s1 + $0x7f8] sm:$0xff]  ;;  %v495_v9 = vld [vmem:[%s13325_s1 + $0x870] sm:$0xff] }
 0x197   : > { %3891 = vmatprep.subr.bf16.mxu0 %v7967_v18  ;;  %3973 = vmatprep.subr.bf16.mxu1 %v7969_v53  ;;  %v8081_v18 = vcombine.high %v376_v11, %v384_v13  ;;  %v391_v53 = vld [vmem:[%s13325_s1 + $0x530] sm:$0xff]  ;;  %v488_v10 = vld [vmem:[%s13325_s1 + $0x838] sm:$0xff] }
 0x198   : > { %v8094_v15 = vcombine.low %v391_v53, %v399_v19 }
 0x19a   : > { %3892 = vmatpush1.bf16.msra.mxu0 %v7966_v25  ;;  %3974 = vmatpush1.bf16.msra.mxu1 %v7968_v26  ;;  %v8080_v25 = vcombine.low %v376_v11, %v384_v13  ;;  %v8095_v26 = vcombine.high %v391_v53, %v399_v19  ;;  %v496_v11 = vld [vmem:[%s13325_s1 + $0x878] sm:$0xff]  ;;  %v511_v53 = vld [vmem:[%s13325_s1 + $0x8f0] sm:$0xff] }
 0x19b   : > { %3893 = vmatprep.subr.bf16.mxu0 %v7983_v27  ;;  %3975 = vmatprep.subr.bf16.mxu1 %v7985_v28  ;;  %v8097_v27 = vcombine.high %v392_v20, %v400_v21  ;;  %v407_v28 = vld [vmem:[%s13325_s1 + $0x5b0] sm:$0xff]  ;;  %v504_v19 = vld [vmem:[%s13325_s1 + $0x8b8] sm:$0xff] }
 0x19c   : > { %v8110_v42 = vcombine.low %v407_v28, %v415_v29 }
 0x19e   : > { %3894 = vmatpush1.bf16.msra.mxu0 %v7982_v32  ;;  %3976 = vmatpush1.bf16.msra.mxu1 %v7984_v33  ;;  %v8096_v32 = vcombine.low %v392_v20, %v400_v21  ;;  %v8111_v33 = vcombine.high %v407_v28, %v415_v29  ;;  %v512_v20 = vld [vmem:[%s13325_s1 + $0x8f8] sm:$0xff]  ;;  %v527_v28 = vld [vmem:[%s13325_s1 + $0x970] sm:$0xff] }
 0x19f   : > { %3895 = vmatprep.subr.bf16.mxu0 %v7999_v34  ;;  %3977 = vmatprep.subr.bf16.mxu1 %v8001_v37  ;;  %v8113_v34 = vcombine.high %v408_v30, %v416_v57  ;;  %v423_v37 = vld [vmem:[%s13325_s1 + $0x630] sm:$0xff]  ;;  %v520_v29 = vld [vmem:[%s13325_s1 + $0x938] sm:$0xff] }
 0x1a0   : > { %v8126_v50 = vcombine.low %v423_v37, %v431_v38 }
 0x1a2   : > { %3896 = vmatpush1.bf16.msra.mxu0 %v7998_v43  ;;  %3978 = vmatpush1.bf16.msra.mxu1 %v8000_v44  ;;  %v8112_v43 = vcombine.low %v408_v30, %v416_v57  ;;  %v8127_v44 = vcombine.high %v423_v37, %v431_v38  ;;  %v528_v30 = vld [vmem:[%s13325_s1 + $0x978] sm:$0xff]  ;;  %v543_v37 = vld [vmem:[%s13325_s1 + $0x9f0] sm:$0xff] }
 0x1a3   : > { %3897 = vmatprep.subr.bf16.mxu0 %v8015_v45  ;;  %3979 = vmatprep.subr.bf16.mxu1 %v8017_v46  ;;  %v8129_v45 = vcombine.high %v424_v40, %v432_v41  ;;  %v439_v46 = vld [vmem:[%s13325_s1 + $0x6b0] sm:$0xff]  ;;  %v544_v38 = vld [vmem:[%s13325_s1 + $0x9f8] sm:$0xff] }
 0x1a4   : > { %v8142_v60 = vcombine.low %v439_v46, %v447_v47 }
 0x1a6   : > { %3898 = vmatpush1.bf16.msra.mxu0 %v8014_v51  ;;  %3980 = vmatpush1.bf16.msra.mxu1 %v8016_v52  ;;  %v8128_v51 = vcombine.low %v424_v40, %v432_v41  ;;  %v8143_v52 = vcombine.high %v439_v46, %v447_v47  ;;  %v8224_v41 = vcombine.low %v520_v29, %v528_v30  ;;  %v560_v46 = vld [vmem:[%s13325_s1 + $0xa78] sm:$0xff] }
 0x1a7   : > { %3899 = vmatprep.subr.bf16.mxu0 %v8031_v54  ;;  %3981 = vmatprep.subr.bf16.mxu1 %v8033_v55  ;;  %v8145_v54 = vcombine.high %v440_v48, %v448_v49  ;;  %v455_v55 = vld [vmem:[%s13325_s1 + $0x730] sm:$0xff] }
 0x1a8   : > { %v8158_v4 = vcombine.low %v455_v55, %v463_v56 }
 0x1aa   : > { %3900 = vmatpush1.bf16.msra.mxu0 %v8030_v61  ;;  %3982 = vmatpush1.bf16.msra.mxu1 %v8032_v62  ;;  %v8144_v61 = vcombine.low %v440_v48, %v448_v49  ;;  %v8159_v62 = vcombine.high %v455_v55, %v463_v56  ;;  %v576_v55 = vld [vmem:[%s13325_s1 + $0xaf8] sm:$0xff] }
 0x1ab   : > { %3901 = vmatprep.subr.bf16.mxu0 %v8047_v63  ;;  %3983 = vmatprep.subr.bf16.mxu1 %v8049_v0  ;;  %v8161_v63 = vcombine.high %v456_v58, %v464_v59  ;;  %v471_v0 = vld [vmem:[%s13325_s1 + $0x7b0] sm:$0xff] }
 0x1ac   : > { %v8174_v13 = vcombine.low %v471_v0, %v479_v1 }
 0x1ae   : > { %3902 = vmatpush1.bf16.msra.mxu0 %v8046_v5  ;;  %3984 = vmatpush1.bf16.msra.mxu1 %v8048_v6  ;;  %v8160_v5 = vcombine.low %v456_v58, %v464_v59  ;;  %v8175_v6 = vcombine.high %v471_v0, %v479_v1  ;;  %v592_v0 = vld [vmem:[%s13325_s1 + $0xb78] sm:$0xff] }
 0x1af   : > { %3903 = vmatprep.subr.bf16.mxu0 %v8063_v7  ;;  %3985 = vmatprep.subr.bf16.mxu1 %v8065_v8  ;;  %v8177_v7 = vcombine.high %v472_v2, %v480_v3  ;;  %v487_v8 = vld [vmem:[%s13325_s1 + $0x830] sm:$0xff] }
 0x1b0   : > { %v8190_v21 = vcombine.low %v487_v8, %v495_v9 }
 0x1b2   : > { %3904 = vmatpush1.bf16.msra.mxu0 %v8062_v14  ;;  %3986 = vmatpush1.bf16.msra.mxu1 %v8064_v16  ;;  %v8176_v14 = vcombine.low %v472_v2, %v480_v3  ;;  %v8191_v16 = vcombine.high %v487_v8, %v495_v9 }
 0x1b3   : > { %3905 = vmatprep.subr.bf16.mxu0 %v8079_v17  ;;  %3987 = vmatprep.subr.bf16.mxu1 %v8081_v18  ;;  %v8193_v17 = vcombine.high %v488_v10, %v496_v11  ;;  %v503_v18 = vld [vmem:[%s13325_s1 + $0x8b0] sm:$0xff] }
 0x1b4   : > { %v8206_v57 = vcombine.low %v503_v18, %v511_v53 }
 0x1b6   : > { %3906 = vmatpush1.bf16.msra.mxu0 %v8078_v22  ;;  %3988 = vmatpush1.bf16.msra.mxu1 %v8080_v25  ;;  %v8192_v22 = vcombine.low %v488_v10, %v496_v11  ;;  %v8207_v25 = vcombine.high %v503_v18, %v511_v53  ;;  %v600_v10 = vld [vmem:[%s13325_s1 + $0xbb8] sm:$0xff] }
 0x1b7   : > { %3907 = vmatprep.subr.bf16.mxu0 %v8095_v26  ;;  %3989 = vmatprep.subr.bf16.mxu1 %v8097_v27  ;;  %v8209_v26 = vcombine.high %v504_v19, %v512_v20  ;;  %v519_v27 = vld [vmem:[%s13325_s1 + $0x930] sm:$0xff]  ;;  %v608_v11 = vld [vmem:[%s13325_s1 + $0xbf8] sm:$0xff] }
 0x1b8   : > { %v8222_v40 = vcombine.low %v519_v27, %v527_v28 }
 0x1ba   : > { %3908 = vmatpush1.bf16.msra.mxu0 %v8094_v15  ;;  %3990 = vmatpush1.bf16.msra.mxu1 %v8096_v32  ;;  %v8208_v15 = vcombine.low %v504_v19, %v512_v20  ;;  %v8223_v32 = vcombine.high %v519_v27, %v527_v28  ;;  %v624_v27 = vld [vmem:[%s13325_s1 + $0xc78] sm:$0xff] }
 0x1bb   : > { %3909 = vmatprep.subr.bf16.mxu0 %v8111_v33  ;;  %3991 = vmatprep.subr.bf16.mxu1 %v8113_v34  ;;  %v8225_v33 = vcombine.high %v520_v29, %v528_v30  ;;  %v535_v34 = vld [vmem:[%s13325_s1 + $0x9b0] sm:$0xff]  ;;  %v8304_v29 = vcombine.low %v600_v10, %v608_v11 }
 0x1bc   : > { %v8238_v47 = vcombine.low %v535_v34, %v543_v37 }
 0x1be   : > { %3910 = vmatpush1.bf16.msra.mxu0 %v8110_v42  ;;  %3992 = vmatpush1.bf16.msra.mxu1 %v8112_v43  ;;  %v8239_v42 = vcombine.high %v535_v34, %v543_v37  ;;  %v640_v34 = vld [vmem:[%s13325_s1 + $0xcf8] sm:$0xff] }
 0x1bf   : > { %3911 = vmatprep.subr.bf16.mxu0 %v8127_v44  ;;  %3993 = vmatprep.subr.bf16.mxu1 %v8129_v45  ;;  %v551_v44 = vld [vmem:[%s13325_s1 + $0xa30] sm:$0xff] }
 0x1c0   : > { %v559_v45 = vld [vmem:[%s13325_s1 + $0xa70] sm:$0xff] }
 0x1c1   : > { %v8255_v49 = vcombine.high %v551_v44, %v559_v45  ;;  %v8254_v56 = vcombine.low %v551_v44, %v559_v45  ;;  %v656_v44 = vld [vmem:[%s13325_s1 + $0xd78] sm:$0xff] }
 0x1c2   : > { %3912 = vmatpush1.bf16.msra.mxu0 %v8126_v50  ;;  %3994 = vmatpush1.bf16.msra.mxu1 %v8128_v51  ;;  %v567_v51 = vld [vmem:[%s13325_s1 + $0xab0] sm:$0xff] }
 0x1c3   : > { %3913 = vmatprep.subr.bf16.mxu0 %v8143_v52  ;;  %3995 = vmatprep.subr.bf16.mxu1 %v8145_v54  ;;  %v575_v52 = vld [vmem:[%s13325_s1 + $0xaf0] sm:$0xff]  ;;  %v568_v54 = vld [vmem:[%s13325_s1 + $0xab8] sm:$0xff] }
 0x1c4   : > { %v8271_v59 = vcombine.high %v567_v51, %v575_v52  ;;  %v8270_v1 = vcombine.low %v567_v51, %v575_v52  ;;  %v8272_v2 = vcombine.low %v568_v54, %v576_v55  ;;  %v672_v51 = vld [vmem:[%s13325_s1 + $0xdf8] sm:$0xff] }
 0x1c6   : > { %3914 = vmatpush1.bf16.msra.mxu0 %v8142_v60  ;;  %3996 = vmatpush1.bf16.msra.mxu1 %v8144_v61  ;;  %v8273_v60 = vcombine.high %v568_v54, %v576_v55  ;;  %v583_v61 = vld [vmem:[%s13325_s1 + $0xb30] sm:$0xff] }
 0x1c7   : > { %3915 = vmatprep.subr.bf16.mxu0 %v8159_v62  ;;  %3997 = vmatprep.subr.bf16.mxu1 %v8161_v63  ;;  %v591_v62 = vld [vmem:[%s13325_s1 + $0xb70] sm:$0xff]  ;;  %v584_v63 = vld [vmem:[%s13325_s1 + $0xb38] sm:$0xff] }
 0x1c8   : > { %v8287_v3 = vcombine.high %v583_v61, %v591_v62  ;;  %v8288_v53 = vcombine.low %v584_v63, %v592_v0 }
 0x1ca   : > { %3916 = vmatpush1.bf16.msra.mxu0 %v8158_v4  ;;  %3998 = vmatpush1.bf16.msra.mxu1 %v8160_v5  ;;  %v8289_v5 = vcombine.high %v584_v63, %v592_v0 }
 0x1cb   : > { %3917 = vmatprep.subr.bf16.mxu0 %v8175_v6  ;;  %3999 = vmatprep.subr.bf16.mxu1 %v8177_v7  ;;  %v599_v6 = vld [vmem:[%s13325_s1 + $0xbb0] sm:$0xff] }
 0x1cc   : > { %v607_v7 = vld [vmem:[%s13325_s1 + $0xbf0] sm:$0xff] }
 0x1cd   : > { %v8303_v19 = vcombine.high %v599_v6, %v607_v7  ;;  %v8302_v28 = vcombine.low %v599_v6, %v607_v7  ;;  %v696_v7 = vld [vmem:[%s13325_s1 + $0xeb8] sm:$0xff] }
 0x1ce   : > { %3918 = vmatpush1.bf16.msra.mxu0 %v8174_v13  ;;  %4000 = vmatpush1.bf16.msra.mxu1 %v8176_v14 }
 0x1cf   : > { %3928 = vmatprep.subr.bf16.mxu0 %v8191_v16  ;;  %4010 = vmatprep.subr.bf16.mxu1 %v8193_v17  ;;  %v8286_v16 = vcombine.low %v583_v61, %v591_v62  ;;  %v680_v61 = vld [vmem:[%s13325_s1 + $0xe38] sm:$0xff] }
 0x1d0   : > { %v688_v62 = vld [vmem:[%s13325_s1 + $0xe78] sm:$0xff] }
 0x1d1   : > { %3920 = vmatmul.mubr.bf16.vlgmr.msra.gmra.mrb[12].mxu0 %v10245_v12  ;;  %4002 = vmatmul.mubr.bf16.vlgmr.msra.gmra.mrb[12].mxu1 %v10245_v12  ;;  %v536_v12 = vld [vmem:[%s13325_s1 + $0x9b8] sm:$0xff] }
 0x1d2   : > { %3929 = vmatpush1.bf16.msra.mxu0 %v8190_v21  ;;  %4011 = vmatpush1.bf16.msra.mxu1 %v8192_v22  ;;  %v8241_v43 = vcombine.high %v536_v12, %v544_v38  ;;  %v8240_v48 = vcombine.low %v536_v12, %v544_v38  ;;  %v8305_v21 = vcombine.high %v600_v10, %v608_v11  ;;  %v615_v22 = vld [vmem:[%s13325_s1 + $0xc30] sm:$0xff]  ;;  %v704_v10 = vld [vmem:[%s13325_s1 + $0xef8] sm:$0xff] }
 0x1d3   : > { %3930 = vmatprep.subr.bf16.mxu0 %v8207_v25  ;;  %4012 = vmatprep.subr.bf16.mxu1 %v8209_v26  ;;  %v623_v25 = vld [vmem:[%s13325_s1 + $0xc70] sm:$0xff]  ;;  %v616_v26 = vld [vmem:[%s13325_s1 + $0xc38] sm:$0xff] }
 0x1d4   : > { %3960 = vmatprep.mubr.bf16.mxu0 %v10270_v23  ;;  %4042 = vmatprep.mubr.bf16.mxu1 %v10270_v23  ;;  %v552_v23 = vld [vmem:[%s13325_s1 + $0xa38] sm:$0xff]  ;;  %v8319_v30 = vcombine.high %v615_v22, %v623_v25  ;;  %v8318_v37 = vcombine.low %v615_v22, %v623_v25  ;;  %v8320_v12 = vcombine.low %v616_v26, %v624_v27  ;;  %v11624_v22 = vld [vmem:[%s13326_s2] sm:$0xff] }
 0x1d5   : > { %v8257_v50 = vcombine.high %v552_v23, %v560_v46  ;;  %v8256_v58 = vcombine.low %v552_v23, %v560_v46 }
 0x1d6   : > { %3931 = vmatpush1.bf16.msra.mxu0 %v8206_v57  ;;  %4013 = vmatpush1.bf16.msra.mxu1 %v8208_v15  ;;  %v8321_v57 = vcombine.high %v616_v26, %v624_v27  ;;  %v631_v15 = vld [vmem:[%s13325_s1 + $0xcb0] sm:$0xff]  ;;  %v8400_v26 = vcombine.low %v696_v7, %v704_v10 }
 0x1d7   : > { %3932 = vmatprep.subr.bf16.mxu0 %v8223_v32  ;;  %4014 = vmatprep.subr.bf16.mxu1 %v8225_v33  ;;  %v639_v32 = vld [vmem:[%s13325_s1 + $0xcf0] sm:$0xff]  ;;  %v632_v33 = vld [vmem:[%s13325_s1 + $0xcb8] sm:$0xff] }
 0x1d8   : > { %v8335_v38 = vcombine.high %v631_v15, %v639_v32  ;;  %v8334_v45 = vcombine.low %v631_v15, %v639_v32  ;;  %v8336_v23 = vcombine.low %v632_v33, %v640_v34  ;;  %v728_v15 = vld [vmem:[%s13325_s1 + $0xfb8] sm:$0xff] }
 0x1d9   : > { %v736_v32 = vld [vmem:[%s13325_s1 + $0xff8] sm:$0xff] }
 0x1da   : > { %3933 = vmatpush1.bf16.msra.mxu0 %v8222_v40  ;;  %4015 = vmatpush1.bf16.msra.mxu1 %v8224_v41  ;;  %v8337_v40 = vcombine.high %v632_v33, %v640_v34  ;;  %v647_v41 = vld [vmem:[%s13325_s1 + $0xd30] sm:$0xff] }
 0x1db   : > { %3934 = vmatprep.subr.bf16.mxu0 %v8239_v42  ;;  %4016 = vmatprep.subr.bf16.mxu1 %v8241_v43  ;;  %v655_v42 = vld [vmem:[%s13325_s1 + $0xd70] sm:$0xff]  ;;  %v648_v43 = vld [vmem:[%s13325_s1 + $0xd38] sm:$0xff] }
 0x1dc   : > { %v8351_v46 = vcombine.high %v647_v41, %v655_v42  ;;  %v8350_v52 = vcombine.low %v647_v41, %v655_v42  ;;  %v8352_v54 = vcombine.low %v648_v43, %v656_v44  ;;  %v8432_v41 = vcombine.low %v728_v15, %v736_v32  ;;  %v9106_v42 = vld [vmem:[%s13327_s3 + $0x4] ss:$16 sps:$4 sm:$0xff]  }
 0x1de   : > { %3935 = vmatpush1.bf16.msra.mxu0 %v8238_v47  ;;  %4017 = vmatpush1.bf16.msra.mxu1 %v8240_v48  ;;  %v8353_v47 = vcombine.high %v648_v43, %v656_v44  ;;  %v663_v48 = vld [vmem:[%s13325_s1 + $0xdb0] sm:$0xff]  ;;  %v9109_v43 = vld [vmem:[%s13327_s3 + $0xc] ss:$16 sps:$4 sm:$0xff]  }
 0x1df   : > { %3936 = vmatprep.subr.bf16.mxu0 %v8255_v49  ;;  %4018 = vmatprep.subr.bf16.mxu1 %v8257_v50  ;;  %v671_v49 = vld [vmem:[%s13325_s1 + $0xdf0] sm:$0xff]  ;;  %v664_v50 = vld [vmem:[%s13325_s1 + $0xdb8] sm:$0xff] }
 0x1e0   : > { %v8367_v55 = vcombine.high %v663_v48, %v671_v49  ;;  %v8366_v63 = vcombine.low %v663_v48, %v671_v49  ;;  %v8368_v0 = vcombine.low %v664_v50, %v672_v51  ;;  %v9110_v48 = vld [vmem:[%s13327_s3 + $0x20] ss:$16 sps:$4 sm:$0xff]   ;;  %v9113_v49 = vld [vmem:[%s13327_s3 + $0x28] ss:$16 sps:$4 sm:$0xff]  }
 0x1e2   : > { %3937 = vmatpush1.bf16.msra.mxu0 %v8254_v56  ;;  %4019 = vmatpush1.bf16.msra.mxu1 %v8256_v58  ;;  %v8369_v56 = vcombine.high %v664_v50, %v672_v51  ;;  %v679_v58 = vld [vmem:[%s13325_s1 + $0xe30] sm:$0xff] }
 0x1e3   : > { %3938 = vmatprep.subr.bf16.mxu0 %v8271_v59  ;;  %4020 = vmatprep.subr.bf16.mxu1 %v8273_v60  ;;  %v687_v59 = vld [vmem:[%s13325_s1 + $0xe70] sm:$0xff]  ;;  %v741_v60 = vlaneseq }
 0x1e4   : > { %v11512_v4 = vpop.f32.mrb[4].mxu0  ;;  %v11520_v8 = vpop.f32.mrb[4].mxu1  ;;  %v8382_v11 = vcombine.low %v679_v58, %v687_v59  ;;  %v9118_v50 = vld [vmem:[%s13327_s3 + $0x44] ss:$16 sps:$4 sm:$0xff]   ;;  %v9116_v51 = vld [vmem:[%s13327_s3 + $0x40] ss:$16 sps:$4 sm:$0xff]  }
 0x1e5   : > { %v11522_v9 = vpop.f32.mrb[5].mxu0  ;;  %v11530_v13 = vpop.f32.mrb[5].mxu1  ;;  %v11598_v6 = vshrl.u32 %v741_v60, 7  ;;  %v9133_v60 = vld [vmem:[%s13327_s3 + $0x8c] ss:$16 sps:$4 sm:$0xff]  }
 0x1e6   : > { %v3638_v14 = vpop.f32.mrb[6].mxu0  ;;  %3939 = vmatpush1.bf16.msra.mxu0 %v8270_v1  ;;  %v3720_v17 = vpop.f32.mrb[6].mxu1  ;;  %4021 = vmatpush1.bf16.msra.mxu1 %v8272_v2  ;;  %v8383_v1 = vcombine.high %v679_v58, %v687_v59  ;;  %v8385_v2 = vcombine.high %v680_v61, %v688_v62  ;;  %v9125_v58 = vld [vmem:[%s13327_s3 + $0x68] ss:$16 sps:$4 sm:$0xff]   ;;  %v9130_v59 = vld [vmem:[%s13327_s3 + $0x84] ss:$16 sps:$4 sm:$0xff]  }
 0x1e7   : > { %v3639_v18 = vpop.f32.mrb[7].mxu0  ;;  %3940 = vmatprep.subr.bf16.mxu0 %v8287_v3  ;;  %v3721_v20 = vpop.f32.mrb[7].mxu1  ;;  %4022 = vmatprep.subr.bf16.mxu1 %v8289_v5  ;;  %v695_v3 = vld [vmem:[%s13325_s1 + $0xeb0] sm:$0xff]  ;;  %v8384_v14 = vcombine.low %v680_v61, %v688_v62  ;;  %v8401_v17 = vcombine.high %v696_v7, %v704_v10  ;;  %v9131_v62 = vld [vmem:[%s13327_s3 + $0x88] ss:$16 sps:$4 sm:$0xff]  }
 0x1e8   : > { %v703_v5 = vld [vmem:[%s13325_s1 + $0xef0] sm:$0xff]  ;;  %v712_v20 = vld [vmem:[%s13325_s1 + $0xf38] sm:$0xff] }
 0x1e9   : > { %v711_v18 = vld [vmem:[%s13325_s1 + $0xf30] sm:$0xff]  ;;  %v8398_v25 = vcombine.low %v695_v3, %v703_v5  ;;  %v9143_v10 = vld [vmem:[%s13327_s3 + $0xc8] ss:$16 sps:$4 sm:$0xff]  }
 0x1ea   : > { %3941 = vmatpush1.bf16.msra.mxu0 %v8286_v16  ;;  %4023 = vmatpush1.bf16.msra.mxu1 %v8288_v53  ;;  %v8399_v16 = vcombine.high %v695_v3, %v703_v5  ;;  %v719_v53 = vld [vmem:[%s13325_s1 + $0xf70] sm:$0xff]  ;;  %v9145_v5 = vld [vmem:[%s13327_s3 + $0xcc] ss:$16 sps:$4 sm:$0xff]  }
 0x1eb   : > { %3942 = vmatprep.subr.bf16.mxu0 %v8303_v19  ;;  %4024 = vmatprep.subr.bf16.mxu1 %v8305_v21  ;;  %v11613_v19 = vsub.s32 1, %v11598_v6  ;;  %v720_v21 = vld [vmem:[%s13325_s1 + $0xf78] sm:$0xff]  ;;  %v8415_v27 = vcombine.high %v711_v18, %v719_v53  ;;  %v8414_v33 = vcombine.low %v711_v18, %v719_v53  ;;  %v9128_v61 = vld [vmem:[%s13327_s3 + $0x80] ss:$16 sps:$4 sm:$0xff]   ;;  %v9142_v3 = vld [vmem:[%s13327_s3 + $0xc4] ss:$16 sps:$4 sm:$0xff]  }
 0x1ec   : > { %v8416_v34 = vcombine.low %v712_v20, %v720_v21  ;;  %v9140_v7 = vld [vmem:[%s13327_s3 + $0xc0] ss:$16 sps:$4 sm:$0xff]   ;;  %v9154_v18 = vld [vmem:[%s13327_s3 + $0x104] ss:$16 sps:$4 sm:$0xff]   ;;  %v9157_v53 = vld [vmem:[%s13327_s3 + $0x10c] ss:$16 sps:$4 sm:$0xff]  }
 0x1ee   : > { %3943 = vmatpush1.bf16.msra.mxu0 %v8302_v28  ;;  %4025 = vmatpush1.bf16.msra.mxu1 %v8304_v29  ;;  %v8417_v28 = vcombine.high %v712_v20, %v720_v21  ;;  %v727_v29 = vld [vmem:[%s13325_s1 + $0xfb0] sm:$0xff]  ;;  %v9155_v21 = vld [vmem:[%s13327_s3 + $0x108] ss:$16 sps:$4 sm:$0xff]  }
 0x1ef   : > { %3944 = vmatprep.subr.bf16.mxu0 %v8319_v30  ;;  %4026 = vmatprep.subr.bf16.mxu1 %v8321_v57  ;;  %v735_v30 = vld [vmem:[%s13325_s1 + $0xff0] sm:$0xff]  ;;  %v748_v57 = vrot.slane %v11624_v22, %v11613_v19 }
 0x1f0   : > { %v9152_v20 = vld [vmem:[%s13327_s3 + $0x100] ss:$16 sps:$4 sm:$0xff]  }
 0x1f2   : > { %3945 = vmatpush1.bf16.msra.mxu0 %v8318_v37  ;;  %4027 = vmatpush1.bf16.msra.mxu1 %v8320_v12  ;;  %v8431_v37 = vcombine.high %v727_v29, %v735_v30  ;;  %v8433_v12 = vcombine.high %v728_v15, %v736_v32  ;;  %v9167_v15 = vld [vmem:[%s13327_s3 + $0x148] ss:$16 sps:$4 sm:$0xff]   ;;  %v9172_v32 = vld [vmem:[%s13327_s3 + $0x164] ss:$16 sps:$4 sm:$0xff]  }
 0x1f3   : > { %3946 = vmatprep.subr.bf16.mxu0 %v8335_v38  ;;  %4028 = vmatprep.subr.bf16.mxu1 %v8337_v40  ;;  %v8954_v38 = vadd.f32 %v11122_v36, %v748_v57  ;;  %v8430_v40 = vcombine.low %v727_v29, %v735_v30  ;;  %v9104_v36 = vld [vmem:[%s13327_s3] ss:$16 sps:$4 sm:$0xff]   ;;  %v9166_v29 = vld [vmem:[%s13327_s3 + $0x144] ss:$16 sps:$4 sm:$0xff]   ;;  %v9169_v30 = vld [vmem:[%s13327_s3 + $0x14c] ss:$16 sps:$4 sm:$0xff]  }
 0x1f4   : > { %v9164_v57 = vld [vmem:[%s13327_s3 + $0x140] ss:$16 sps:$4 sm:$0xff]  }
 0x1f5   : > { %v4052_v44 = vmax.f32 %v8954_v38, 0.0  ;;  %v9181_v38 = vld [vmem:[%s13327_s3 + $0x18c] ss:$16 sps:$4 sm:$0xff]  }
 0x1f6   : > { %3947 = vmatpush1.bf16.msra.mxu0 %v8334_v45  ;;  %4029 = vmatpush1.bf16.msra.mxu1 %v8336_v23  ;;  %v9107_v45 = vld [vmem:[%s13327_s3 + $0x8] ss:$16 sps:$4 sm:$0xff]   ;;  %v9112_v23 = vld [vmem:[%s13327_s3 + $0x24] ss:$16 sps:$4 sm:$0xff]  }
 0x1f7   : > { %3948 = vmatprep.subr.bf16.mxu0 %v8351_v46  ;;  %4030 = vmatprep.subr.bf16.mxu1 %v8353_v47  ;;  %v4068_v46 = vpack.c.bf16 %v4052_v44, %v4052_v44  ;;  %v9115_v47 = vld [vmem:[%s13327_s3 + $0x2c] ss:$16 sps:$4 sm:$0xff]  }
 0x1f8   : > { %v9187_v44 = vld [vmem:[%s13327_s3 + $0x1ac] ss:$16 sps:$4 sm:$0xff]  }
 0x1fa   : > { %3949 = vmatpush1.bf16.msra.mxu0 %v8350_v52  ;;  %4031 = vmatpush1.bf16.msra.mxu1 %v8352_v54  ;;  %v9119_v52 = vld [vmem:[%s13327_s3 + $0x48] ss:$16 sps:$4 sm:$0xff]   ;;  %v9124_v54 = vld [vmem:[%s13327_s3 + $0x64] ss:$16 sps:$4 sm:$0xff]  }
 0x1fb   : > { %3950 = vmatprep.subr.bf16.mxu0 %v8367_v55  ;;  %4032 = vmatprep.subr.bf16.mxu1 %v8369_v56  ;;  %v9127_v55 = vld [vmem:[%s13327_s3 + $0x6c] ss:$16 sps:$4 sm:$0xff]   ;;  %v9122_v56 = vld [vmem:[%s13327_s3 + $0x60] ss:$16 sps:$4 sm:$0xff]  }
 0x1fe   : > { %3951 = vmatpush1.bf16.msra.mxu0 %v8366_v63  ;;  %4033 = vmatpush1.bf16.msra.mxu1 %v8368_v0  ;;  %v9136_v63 = vld [vmem:[%s13327_s3 + $0xa4] ss:$16 sps:$4 sm:$0xff]   ;;  %v9139_v0 = vld [vmem:[%s13327_s3 + $0xac] ss:$16 sps:$4 sm:$0xff]  }
 0x1ff   : > { %3952 = vmatprep.subr.bf16.mxu0 %v8383_v1  ;;  %4034 = vmatprep.subr.bf16.mxu1 %v8385_v2  ;;  %v9134_v1 = vld [vmem:[%s13327_s3 + $0xa0] ss:$16 sps:$4 sm:$0xff]   ;;  %v9137_v2 = vld [vmem:[%s13327_s3 + $0xa8] ss:$16 sps:$4 sm:$0xff]  }
 0x202   : > { %3953 = vmatpush1.bf16.msra.mxu0 %v8382_v11  ;;  %4035 = vmatpush1.bf16.msra.mxu1 %v8384_v14  ;;  %v9148_v11 = vld [vmem:[%s13327_s3 + $0xe4] ss:$16 sps:$4 sm:$0xff]   ;;  %v9151_v14 = vld [vmem:[%s13327_s3 + $0xec] ss:$16 sps:$4 sm:$0xff]  }
 0x203   : > { %3954 = vmatprep.subr.bf16.mxu0 %v8399_v16  ;;  %4036 = vmatprep.subr.bf16.mxu1 %v8401_v17  ;;  %v9146_v16 = vld [vmem:[%s13327_s3 + $0xe0] ss:$16 sps:$4 sm:$0xff]   ;;  %v9149_v17 = vld [vmem:[%s13327_s3 + $0xe8] ss:$16 sps:$4 sm:$0xff]  }
 0x206   : > { %3955 = vmatpush1.bf16.msra.mxu0 %v8398_v25  ;;  %4037 = vmatpush1.bf16.msra.mxu1 %v8400_v26  ;;  %v9160_v25 = vld [vmem:[%s13327_s3 + $0x124] ss:$16 sps:$4 sm:$0xff]   ;;  %v9163_v26 = vld [vmem:[%s13327_s3 + $0x12c] ss:$16 sps:$4 sm:$0xff]  }
 0x207   : > { %3956 = vmatprep.subr.bf16.mxu0 %v8415_v27  ;;  %4038 = vmatprep.subr.bf16.mxu1 %v8417_v28  ;;  %v9158_v27 = vld [vmem:[%s13327_s3 + $0x120] ss:$16 sps:$4 sm:$0xff]   ;;  %v9161_v28 = vld [vmem:[%s13327_s3 + $0x128] ss:$16 sps:$4 sm:$0xff]  }
 0x20a   : > { %3957 = vmatpush1.bf16.msra.mxu0 %v8414_v33  ;;  %4039 = vmatpush1.bf16.msra.mxu1 %v8416_v34  ;;  %v9175_v33 = vld [vmem:[%s13327_s3 + $0x16c] ss:$16 sps:$4 sm:$0xff]   ;;  %v9170_v34 = vld [vmem:[%s13327_s3 + $0x160] ss:$16 sps:$4 sm:$0xff]  }
 0x20b   : > { %3958 = vmatprep.subr.bf16.mxu0 %v8431_v37  ;;  %4040 = vmatprep.subr.bf16.mxu1 %v8433_v12  ;;  %v9173_v37 = vld [vmem:[%s13327_s3 + $0x168] ss:$16 sps:$4 sm:$0xff]   ;;  %v9178_v12 = vld [vmem:[%s13327_s3 + $0x184] ss:$16 sps:$4 sm:$0xff]  }
 0x20e   : > { %3959 = vmatpush1.bf16.msra.mxu0 %v8430_v40  ;;  %4041 = vmatpush1.bf16.msra.mxu1 %v8432_v41  ;;  %v9176_v40 = vld [vmem:[%s13327_s3 + $0x180] ss:$16 sps:$4 sm:$0xff]   ;;  %v11797_v41 = vsub.s32 0, %v11598_v6 }
 0x20f   : > { %7177 = vmatprep.subr.bf16.mxu0 %v9106_v42  ;;  %7505 = vmatprep.subr.bf16.mxu1 %v9109_v43  ;;  %v9179_v42 = vld [vmem:[%s13327_s3 + $0x188] ss:$16 sps:$4 sm:$0xff]   ;;  %v9184_v43 = vld [vmem:[%s13327_s3 + $0x1a4] ss:$16 sps:$4 sm:$0xff]  }
 0x211   : > { %3961 = vmatmul.mubr.bf16.vlgmr.msra.gmra.mrb[12].mxu0 %v10458_v24  ;;  %4043 = vmatmul.mubr.bf16.vlgmr.msra.gmra.mrb[12].mxu1 %v10458_v24  ;;  %v9121_v24 = vld [vmem:[%s13327_s3 + $0x4c] ss:$16 sps:$4 sm:$0xff]  }
 0x212   : > { %7178 = vmatpush1.bf16.msra.mxu0 %v9104_v36  ;;  %7209 = vmatprep.mubr.bf16.mxu0 %v4068_v46  ;;  %v11809_v36 = vsub.s32 3, %v11598_v6 }
 0x213   : > { %7506 = vmatpush1.bf16.msra.mxu1 %v9107_v45  ;;  %7537 = vmatprep.mubr.bf16.mxu1 %v4068_v46  ;;  %v9182_v45 = vld [vmem:[%s13327_s3 + $0x1a0] ss:$16 sps:$4 sm:$0xff]   ;;  %v9185_v46 = vld [vmem:[%s13327_s3 + $0x1a8] ss:$16 sps:$4 sm:$0xff]  }
 0x214   : > { %7179 = vmatprep.subr.bf16.mxu0 %v9112_v23  ;;  %7507 = vmatprep.subr.bf16.mxu1 %v9115_v47  ;;  %v744_v23 = vrot.slane %v11624_v22, %v11797_v41  ;;  %v9190_v47 = vld [vmem:[%s13327_s3 + $0x1c4] ss:$16 sps:$4 sm:$0xff]  }
 0x216   : > { %7180 = vmatpush1.bf16.msra.mxu0 %v9110_v48  ;;  %v9193_v48 = vld [vmem:[%s13327_s3 + $0x1cc] ss:$16 sps:$4 sm:$0xff]  }
 0x217   : > { %7508 = vmatpush1.bf16.msra.mxu1 %v9113_v49  ;;  %7181 = vmatprep.subr.bf16.mxu0 %v9118_v50  ;;  %v756_v49 = vrot.slane %v11624_v22, %v11809_v36  ;;  %v9188_v50 = vld [vmem:[%s13327_s3 + $0x1c0] ss:$16 sps:$4 sm:$0xff]  }
 0x218   : > { %7509 = vmatprep.subr.bf16.mxu1 %v9121_v24  ;;  %v8953_v24 = vadd.f32 %v11112_v31, %v744_v23  ;;  %v9194_v31 = vld [vmem:[%s13327_s3 + $0x1e0] ss:$16 sps:$4 sm:$0xff]   ;;  %v9247_v23 = vld [vmem:[%s13327_s3 + $0x2ec] ss:$16 sps:$4 sm:$0xff]  }
 0x21a   : > { %7182 = vmatpush1.bf16.msra.mxu0 %v9116_v51  ;;  %v9191_v51 = vld [vmem:[%s13327_s3 + $0x1c8] ss:$16 sps:$4 sm:$0xff]  }
 0x21b   : > { %7510 = vmatpush1.bf16.msra.mxu1 %v9119_v52  ;;  %7183 = vmatprep.subr.bf16.mxu0 %v9124_v54  ;;  %v9196_v52 = vld [vmem:[%s13327_s3 + $0x1e4] ss:$16 sps:$4 sm:$0xff]   ;;  %v9199_v54 = vld [vmem:[%s13327_s3 + $0x1ec] ss:$16 sps:$4 sm:$0xff]  }
 0x21c   : > { %7511 = vmatprep.subr.bf16.mxu1 %v9127_v55  ;;  %v8956_v55 = vadd.f32 %v11130_v39, %v756_v49  ;;  %v9205_v39 = vld [vmem:[%s13327_s3 + $0x20c] ss:$16 sps:$4 sm:$0xff]  }
 0x21d   : > { %v9253_v49 = vld [vmem:[%s13327_s3 + $0x30c] ss:$16 sps:$4 sm:$0xff]  }
 0x21e   : > { %7184 = vmatpush1.bf16.msra.mxu0 %v9122_v56  ;;  %v4051_v56 = vmax.f32 %v8953_v24, 0.0  ;;  %v9251_v24 = vld [vmem:[%s13327_s3 + $0x308] ss:$16 sps:$4 sm:$0xff]  }
 0x21f   : > { %7512 = vmatpush1.bf16.msra.mxu1 %v9125_v58  ;;  %7185 = vmatprep.subr.bf16.mxu0 %v9130_v59  ;;  %v9197_v58 = vld [vmem:[%s13327_s3 + $0x1e8] ss:$16 sps:$4 sm:$0xff]   ;;  %v9202_v59 = vld [vmem:[%s13327_s3 + $0x204] ss:$16 sps:$4 sm:$0xff]  }
 0x220   : > { %7513 = vmatprep.subr.bf16.mxu1 %v9133_v60  ;;  %v4054_v60 = vmax.f32 %v8956_v55, 0.0  ;;  %v9257_v55 = vld [vmem:[%s13327_s3 + $0x328] ss:$16 sps:$4 sm:$0xff]  }
 0x222   : > { %7186 = vmatpush1.bf16.msra.mxu0 %v9128_v61  ;;  %v9200_v61 = vld [vmem:[%s13327_s3 + $0x200] ss:$16 sps:$4 sm:$0xff]  }
 0x223   : > { %7514 = vmatpush1.bf16.msra.mxu1 %v9131_v62  ;;  %7187 = vmatprep.subr.bf16.mxu0 %v9136_v63  ;;  %v4067_v62 = vpack.c.bf16 %v4051_v56, %v4051_v56  ;;  %v9203_v63 = vld [vmem:[%s13327_s3 + $0x208] ss:$16 sps:$4 sm:$0xff]   ;;  %v9265_v56 = vld [vmem:[%s13327_s3 + $0x34c] ss:$16 sps:$4 sm:$0xff]  }
 0x224   : > { %7515 = vmatprep.subr.bf16.mxu1 %v9139_v0  ;;  %v9208_v0 = vld [vmem:[%s13327_s3 + $0x224] ss:$16 sps:$4 sm:$0xff]  }
 0x226   : > { %7188 = vmatpush1.bf16.msra.mxu0 %v9134_v1  ;;  %v4070_v1 = vpack.c.bf16 %v4054_v60, %v4054_v60  ;;  %v9271_v60 = vld [vmem:[%s13327_s3 + $0x36c] ss:$16 sps:$4 sm:$0xff]  }
 0x227   : > { %7516 = vmatpush1.bf16.msra.mxu1 %v9137_v2  ;;  %7189 = vmatprep.subr.bf16.mxu0 %v9142_v3  ;;  %v9211_v2 = vld [vmem:[%s13327_s3 + $0x22c] ss:$16 sps:$4 sm:$0xff]   ;;  %v9206_v3 = vld [vmem:[%s13327_s3 + $0x220] ss:$16 sps:$4 sm:$0xff]  }
 0x228   : > { %7517 = vmatprep.subr.bf16.mxu1 %v9145_v5  ;;  %v9209_v5 = vld [vmem:[%s13327_s3 + $0x228] ss:$16 sps:$4 sm:$0xff]  }
 0x22a   : > { %7190 = vmatpush1.bf16.msra.mxu0 %v9140_v7  ;;  %v9214_v7 = vld [vmem:[%s13327_s3 + $0x244] ss:$16 sps:$4 sm:$0xff]  }
 0x22b   : > { %7518 = vmatpush1.bf16.msra.mxu1 %v9143_v10  ;;  %7191 = vmatprep.subr.bf16.mxu0 %v9148_v11  ;;  %v9217_v10 = vld [vmem:[%s13327_s3 + $0x24c] ss:$16 sps:$4 sm:$0xff]   ;;  %v9212_v11 = vld [vmem:[%s13327_s3 + $0x240] ss:$16 sps:$4 sm:$0xff]  }
 0x22c   : > { %7519 = vmatprep.subr.bf16.mxu1 %v9151_v14  ;;  %v9215_v14 = vld [vmem:[%s13327_s3 + $0x248] ss:$16 sps:$4 sm:$0xff]  }
 0x22e   : > { %7192 = vmatpush1.bf16.msra.mxu0 %v9146_v16  ;;  %v9220_v16 = vld [vmem:[%s13327_s3 + $0x264] ss:$16 sps:$4 sm:$0xff]  }
 0x22f   : > { %7520 = vmatpush1.bf16.msra.mxu1 %v9149_v17  ;;  %7193 = vmatprep.subr.bf16.mxu0 %v9154_v18  ;;  %v9223_v17 = vld [vmem:[%s13327_s3 + $0x26c] ss:$16 sps:$4 sm:$0xff]   ;;  %v9218_v18 = vld [vmem:[%s13327_s3 + $0x260] ss:$16 sps:$4 sm:$0xff]  }
 0x230   : > { %7521 = vmatprep.subr.bf16.mxu1 %v9157_v53  ;;  %v9221_v53 = vld [vmem:[%s13327_s3 + $0x268] ss:$16 sps:$4 sm:$0xff]  }
 0x232   : > { %7194 = vmatpush1.bf16.msra.mxu0 %v9152_v20  ;;  %v9226_v20 = vld [vmem:[%s13327_s3 + $0x284] ss:$16 sps:$4 sm:$0xff]  }
 0x233   : > { %7522 = vmatpush1.bf16.msra.mxu1 %v9155_v21  ;;  %7195 = vmatprep.subr.bf16.mxu0 %v9160_v25  ;;  %v9229_v21 = vld [vmem:[%s13327_s3 + $0x28c] ss:$16 sps:$4 sm:$0xff]   ;;  %v9224_v25 = vld [vmem:[%s13327_s3 + $0x280] ss:$16 sps:$4 sm:$0xff]  }
 0x234   : > { %7523 = vmatprep.subr.bf16.mxu1 %v9163_v26  ;;  %v9227_v26 = vld [vmem:[%s13327_s3 + $0x288] ss:$16 sps:$4 sm:$0xff]  }
 0x236   : > { %7196 = vmatpush1.bf16.msra.mxu0 %v9158_v27  ;;  %v9232_v27 = vld [vmem:[%s13327_s3 + $0x2a4] ss:$16 sps:$4 sm:$0xff]  }
 0x237   : > { %7524 = vmatpush1.bf16.msra.mxu1 %v9161_v28  ;;  %7197 = vmatprep.subr.bf16.mxu0 %v9166_v29  ;;  %v9235_v28 = vld [vmem:[%s13327_s3 + $0x2ac] ss:$16 sps:$4 sm:$0xff]   ;;  %v9230_v29 = vld [vmem:[%s13327_s3 + $0x2a0] ss:$16 sps:$4 sm:$0xff]  }
 0x238   : > { %7525 = vmatprep.subr.bf16.mxu1 %v9169_v30  ;;  %v9233_v30 = vld [vmem:[%s13327_s3 + $0x2a8] ss:$16 sps:$4 sm:$0xff]  }
 0x23a   : > { %7198 = vmatpush1.bf16.msra.mxu0 %v9164_v57  ;;  %v9238_v57 = vld [vmem:[%s13327_s3 + $0x2c4] ss:$16 sps:$4 sm:$0xff]  }
 0x23b   : > { %7526 = vmatpush1.bf16.msra.mxu1 %v9167_v15  ;;  %7199 = vmatprep.subr.bf16.mxu0 %v9172_v32  ;;  %v9241_v32 = vld [vmem:[%s13327_s3 + $0x2cc] ss:$16 sps:$4 sm:$0xff]  }
 0x23c   : > { %7527 = vmatprep.subr.bf16.mxu1 %v9175_v33 }
 0x23e   : > { %7200 = vmatpush1.bf16.msra.mxu0 %v9170_v34 }
 0x23f   : > { %7528 = vmatpush1.bf16.msra.mxu1 %v9173_v37  ;;  %7201 = vmatprep.subr.bf16.mxu0 %v9178_v12 }
 0x240   : > { %7529 = vmatprep.subr.bf16.mxu1 %v9181_v38  ;;  %v9236_v38 = vld [vmem:[%s13327_s3 + $0x2c0] ss:$16 sps:$4 sm:$0xff]  }
 0x242   : > { %7202 = vmatpush1.bf16.msra.mxu0 %v9176_v40 }
 0x243   : > { %7530 = vmatpush1.bf16.msra.mxu1 %v9179_v42  ;;  %7203 = vmatprep.subr.bf16.mxu0 %v9184_v43  ;;  %v9239_v43 = vld [vmem:[%s13327_s3 + $0x2c8] ss:$16 sps:$4 sm:$0xff]  }
 0x244   : > { %7531 = vmatprep.subr.bf16.mxu1 %v9187_v44  ;;  %v9244_v44 = vld [vmem:[%s13327_s3 + $0x2e4] ss:$16 sps:$4 sm:$0xff]  }
 0x246   : > { %7204 = vmatpush1.bf16.msra.mxu0 %v9182_v45 }
 0x247   : > { %7532 = vmatpush1.bf16.msra.mxu1 %v9185_v46  ;;  %7205 = vmatprep.subr.bf16.mxu0 %v9190_v47  ;;  %v9242_v46 = vld [vmem:[%s13327_s3 + $0x2e0] ss:$16 sps:$4 sm:$0xff]   ;;  %v9245_v47 = vld [vmem:[%s13327_s3 + $0x2e8] ss:$16 sps:$4 sm:$0xff]  }
 0x248   : > { %7533 = vmatprep.subr.bf16.mxu1 %v9193_v48  ;;  %v9250_v48 = vld [vmem:[%s13327_s3 + $0x304] ss:$16 sps:$4 sm:$0xff]  }
 0x24a   : > { %7206 = vmatpush1.bf16.msra.mxu0 %v9188_v50  ;;  %v9248_v50 = vld [vmem:[%s13327_s3 + $0x300] ss:$16 sps:$4 sm:$0xff]  }
 0x24b   : > { %7534 = vmatpush1.bf16.msra.mxu1 %v9191_v51  ;;  %7207 = vmatprep.subr.bf16.mxu0 %v9196_v52  ;;  %v9256_v51 = vld [vmem:[%s13327_s3 + $0x324] ss:$16 sps:$4 sm:$0xff]   ;;  %v9259_v52 = vld [vmem:[%s13327_s3 + $0x32c] ss:$16 sps:$4 sm:$0xff]  }
 0x24c   : > { %7535 = vmatprep.subr.bf16.mxu1 %v9199_v54  ;;  %v9254_v54 = vld [vmem:[%s13327_s3 + $0x320] ss:$16 sps:$4 sm:$0xff]  }
 0x24e   : > { %7208 = vmatpush1.bf16.msra.mxu0 %v9194_v31  ;;  %v9262_v31 = vld [vmem:[%s13327_s3 + $0x344] ss:$16 sps:$4 sm:$0xff]  }
 0x24f   : > { %7536 = vmatpush1.bf16.msra.mxu1 %v9197_v58  ;;  %7218 = vmatprep.subr.bf16.mxu0 %v9202_v59  ;;  %v9260_v58 = vld [vmem:[%s13327_s3 + $0x340] ss:$16 sps:$4 sm:$0xff]   ;;  %v9263_v59 = vld [vmem:[%s13327_s3 + $0x348] ss:$16 sps:$4 sm:$0xff]  }
 0x250   : > { %7546 = vmatprep.subr.bf16.mxu1 %v9205_v39  ;;  %v9268_v39 = vld [vmem:[%s13327_s3 + $0x364] ss:$16 sps:$4 sm:$0xff]  }
 0x251   : > { %7210 = vmatmul.mubr.bf16.vlgmr.msra.gmra.mrb[16].mxu0 %v4067_v62 }
 0x252   : > { %7538 = vmatmul.mubr.bf16.vlgmr.msra.gmra.mrb[16].mxu1 %v4067_v62  ;;  %7219 = vmatpush1.bf16.msra.mxu0 %v9200_v61  ;;  %v9266_v61 = vld [vmem:[%s13327_s3 + $0x360] ss:$16 sps:$4 sm:$0xff]   ;;  %v9269_v62 = vld [vmem:[%s13327_s3 + $0x368] ss:$16 sps:$4 sm:$0xff]  }
 0x253   : > { %7250 = vmatprep.mubr.bf16.mxu0 %v4070_v1  ;;  %7547 = vmatpush1.bf16.msra.mxu1 %v9203_v63  ;;  %v9274_v63 = vld [vmem:[%s13327_s3 + $0x384] ss:$16 sps:$4 sm:$0xff]  }
 0x254   : > { %7578 = vmatprep.mubr.bf16.mxu1 %v4070_v1  ;;  %7220 = vmatprep.subr.bf16.mxu0 %v9208_v0  ;;  %v9277_v0 = vld [vmem:[%s13327_s3 + $0x38c] ss:$16 sps:$4 sm:$0xff]   ;;  %v9272_v1 = vld [vmem:[%s13327_s3 + $0x380] ss:$16 sps:$4 sm:$0xff]  }
 0x255   : > { %7548 = vmatprep.subr.bf16.mxu1 %v9211_v2  ;;  %v12009_v2 = vsub.s32 2, %v11598_v6 }
 0x256   : > { %7221 = vmatpush1.bf16.msra.mxu0 %v9206_v3  ;;  %v9275_v3 = vld [vmem:[%s13327_s3 + $0x388] ss:$16 sps:$4 sm:$0xff]  }
 0x257   : > { %7549 = vmatpush1.bf16.msra.mxu1 %v9209_v5  ;;  %7222 = vmatprep.subr.bf16.mxu0 %v9214_v7  ;;  %v9280_v5 = vld [vmem:[%s13327_s3 + $0x3a4] ss:$16 sps:$4 sm:$0xff]   ;;  %v9283_v7 = vld [vmem:[%s13327_s3 + $0x3ac] ss:$16 sps:$4 sm:$0xff]  }
 0x258   : > { %7550 = vmatprep.subr.bf16.mxu1 %v9217_v10  ;;  %v763_v10 = vsub.s32 5, %v11598_v6 }
 0x25a   : > { %7223 = vmatpush1.bf16.msra.mxu0 %v9212_v11  ;;  %v9278_v11 = vld [vmem:[%s13327_s3 + $0x3a0] ss:$16 sps:$4 sm:$0xff]  }
 0x25b   : > { %7551 = vmatpush1.bf16.msra.mxu1 %v9215_v14  ;;  %7224 = vmatprep.subr.bf16.mxu0 %v9220_v16  ;;  %v752_v14 = vrot.slane %v11624_v22, %v12009_v2  ;;  %v9281_v16 = vld [vmem:[%s13327_s3 + $0x3a8] ss:$16 sps:$4 sm:$0xff]  }
 0x25c   : > { %7552 = vmatprep.subr.bf16.mxu1 %v9223_v17  ;;  %v9286_v17 = vld [vmem:[%s13327_s3 + $0x3c4] ss:$16 sps:$4 sm:$0xff]  }
 0x25e   : > { %7225 = vmatpush1.bf16.msra.mxu0 %v9218_v18  ;;  %v9289_v18 = vld [vmem:[%s13327_s3 + $0x3cc] ss:$16 sps:$4 sm:$0xff]  }
 0x25f   : > { %7553 = vmatpush1.bf16.msra.mxu1 %v9221_v53  ;;  %7226 = vmatprep.subr.bf16.mxu0 %v9226_v20  ;;  %v764_v53 = vrot.slane %v11624_v22, %v763_v10  ;;  %v9284_v20 = vld [vmem:[%s13327_s3 + $0x3c0] ss:$16 sps:$4 sm:$0xff]  }
 0x260   : > { %7554 = vmatprep.subr.bf16.mxu1 %v9229_v21  ;;  %v8955_v21 = vadd.f32 %v11120_v35, %v752_v14  ;;  %v9290_v35 = vld [vmem:[%s13327_s3 + $0x3e0] ss:$16 sps:$4 sm:$0xff]   ;;  %v9349_v14 = vld [vmem:[%s13327_s3 + $0x50c] ss:$16 sps:$4 sm:$0xff]  }
 0x262   : > { %7227 = vmatpush1.bf16.msra.mxu0 %v9224_v25  ;;  %v9287_v25 = vld [vmem:[%s13327_s3 + $0x3c8] ss:$16 sps:$4 sm:$0xff]  }
 0x263   : > { %7555 = vmatpush1.bf16.msra.mxu1 %v9227_v26  ;;  %7228 = vmatprep.subr.bf16.mxu0 %v9232_v27  ;;  %v9292_v26 = vld [vmem:[%s13327_s3 + $0x3e4] ss:$16 sps:$4 sm:$0xff]   ;;  %v9295_v27 = vld [vmem:[%s13327_s3 + $0x3ec] ss:$16 sps:$4 sm:$0xff]  }
 0x264   : > { %v11922_v15 = vpop.f32.mrb[8].mxu0  ;;  %7556 = vmatprep.subr.bf16.mxu1 %v9235_v28  ;;  %v11927_v33 = vpop.f32.mrb[8].mxu1  ;;  %v8958_v28 = vadd.f32 %v11522_v9, %v764_v53  ;;  %v9301_v9 = vld [vmem:[%s13327_s3 + $0x40c] ss:$16 sps:$4 sm:$0xff]  }
 0x265   : > { %v11929_v34 = vpop.f32.mrb[9].mxu0  ;;  %v11931_v37 = vpop.f32.mrb[9].mxu1  ;;  %v9355_v53 = vld [vmem:[%s13327_s3 + $0x52c] ss:$16 sps:$4 sm:$0xff]  }
 0x266   : > { %v3802_v12 = vpop.f32.mrb[10].mxu0  ;;  %7229 = vmatpush1.bf16.msra.mxu0 %v9230_v29  ;;  %v3884_v40 = vpop.f32.mrb[10].mxu1  ;;  %v4053_v29 = vmax.f32 %v8955_v21, 0.0  ;;  %v9353_v21 = vld [vmem:[%s13327_s3 + $0x528] ss:$16 sps:$4 sm:$0xff]  }
 0x267   : > { %7557 = vmatpush1.bf16.msra.mxu1 %v9233_v30  ;;  %v3803_v42 = vpop.f32.mrb[11].mxu0  ;;  %7230 = vmatprep.subr.bf16.mxu0 %v9238_v57  ;;  %v3885_v45 = vpop.f32.mrb[11].mxu1  ;;  %v9293_v30 = vld [vmem:[%s13327_s3 + $0x3e8] ss:$16 sps:$4 sm:$0xff]   ;;  %v9298_v57 = vld [vmem:[%s13327_s3 + $0x404] ss:$16 sps:$4 sm:$0xff]  }
 0x268   : > { %7558 = vmatprep.subr.bf16.mxu1 %v9241_v32  ;;  %v4056_v32 = vmax.f32 %v8958_v28, 0.0  ;;  %v9296_v12 = vld [vmem:[%s13327_s3 + $0x400] ss:$16 sps:$4 sm:$0xff]   ;;  %v9299_v40 = vld [vmem:[%s13327_s3 + $0x408] ss:$16 sps:$4 sm:$0xff]  }
 0x269   : > { %v9304_v42 = vld [vmem:[%s13327_s3 + $0x424] ss:$16 sps:$4 sm:$0xff]   ;;  %v9302_v45 = vld [vmem:[%s13327_s3 + $0x420] ss:$16 sps:$4 sm:$0xff]   ;;  %v9359_v28 = vld [vmem:[%s13327_s3 + $0x548] ss:$16 sps:$4 sm:$0xff]  }
 0x26a   : > { %7231 = vmatpush1.bf16.msra.mxu0 %v9236_v38  ;;  %v4069_v38 = vpack.c.bf16 %v4053_v29, %v4053_v29  ;;  %v9367_v29 = vld [vmem:[%s13327_s3 + $0x56c] ss:$16 sps:$4 sm:$0xff]  }
 0x26b   : > { %7559 = vmatpush1.bf16.msra.mxu1 %v9239_v43  ;;  %7232 = vmatprep.subr.bf16.mxu0 %v9244_v44  ;;  %v4072_v43 = vpack.c.bf16 %v4056_v32, %v4056_v32  ;;  %v9307_v44 = vld [vmem:[%s13327_s3 + $0x42c] ss:$16 sps:$4 sm:$0xff]  }
 0x26c   : > { %7560 = vmatprep.subr.bf16.mxu1 %v9247_v23  ;;  %v9305_v23 = vld [vmem:[%s13327_s3 + $0x428] ss:$16 sps:$4 sm:$0xff]   ;;  %v9373_v32 = vld [vmem:[%s13327_s3 + $0x58c] ss:$16 sps:$4 sm:$0xff]  }
 0x26e   : > { %7233 = vmatpush1.bf16.msra.mxu0 %v9242_v46  ;;  %v9310_v46 = vld [vmem:[%s13327_s3 + $0x444] ss:$16 sps:$4 sm:$0xff]  }
 0x26f   : > { %7561 = vmatpush1.bf16.msra.mxu1 %v9245_v47  ;;  %7234 = vmatprep.subr.bf16.mxu0 %v9250_v48  ;;  %v9313_v47 = vld [vmem:[%s13327_s3 + $0x44c] ss:$16 sps:$4 sm:$0xff]   ;;  %v9308_v48 = vld [vmem:[%s13327_s3 + $0x440] ss:$16 sps:$4 sm:$0xff]  }
 0x270   : > { %7562 = vmatprep.subr.bf16.mxu1 %v9253_v49  ;;  %v9311_v49 = vld [vmem:[%s13327_s3 + $0x448] ss:$16 sps:$4 sm:$0xff]  }
 0x272   : > { %7235 = vmatpush1.bf16.msra.mxu0 %v9248_v50  ;;  %v9316_v50 = vld [vmem:[%s13327_s3 + $0x464] ss:$16 sps:$4 sm:$0xff]  }
 0x273   : > { %7563 = vmatpush1.bf16.msra.mxu1 %v9251_v24  ;;  %7236 = vmatprep.subr.bf16.mxu0 %v9256_v51  ;;  %v9319_v24 = vld [vmem:[%s13327_s3 + $0x46c] ss:$16 sps:$4 sm:$0xff]   ;;  %v9314_v51 = vld [vmem:[%s13327_s3 + $0x460] ss:$16 sps:$4 sm:$0xff]  }
 0x274   : > { %7564 = vmatprep.subr.bf16.mxu1 %v9259_v52  ;;  %v9317_v52 = vld [vmem:[%s13327_s3 + $0x468] ss:$16 sps:$4 sm:$0xff]  }
 0x276   : > { %7237 = vmatpush1.bf16.msra.mxu0 %v9254_v54  ;;  %v9322_v54 = vld [vmem:[%s13327_s3 + $0x484] ss:$16 sps:$4 sm:$0xff]  }
 0x277   : > { %7565 = vmatpush1.bf16.msra.mxu1 %v9257_v55  ;;  %7238 = vmatprep.subr.bf16.mxu0 %v9262_v31  ;;  %v9325_v55 = vld [vmem:[%s13327_s3 + $0x48c] ss:$16 sps:$4 sm:$0xff]   ;;  %v9320_v31 = vld [vmem:[%s13327_s3 + $0x480] ss:$16 sps:$4 sm:$0xff]  }
 0x278   : > { %7566 = vmatprep.subr.bf16.mxu1 %v9265_v56  ;;  %v9323_v56 = vld [vmem:[%s13327_s3 + $0x488] ss:$16 sps:$4 sm:$0xff]  }
 0x27a   : > { %7239 = vmatpush1.bf16.msra.mxu0 %v9260_v58  ;;  %v9328_v58 = vld [vmem:[%s13327_s3 + $0x4a4] ss:$16 sps:$4 sm:$0xff]  }
 0x27b   : > { %7567 = vmatpush1.bf16.msra.mxu1 %v9263_v59  ;;  %7240 = vmatprep.subr.bf16.mxu0 %v9268_v39  ;;  %v9331_v59 = vld [vmem:[%s13327_s3 + $0x4ac] ss:$16 sps:$4 sm:$0xff]   ;;  %v9326_v39 = vld [vmem:[%s13327_s3 + $0x4a0] ss:$16 sps:$4 sm:$0xff]  }
 0x27c   : > { %7568 = vmatprep.subr.bf16.mxu1 %v9271_v60  ;;  %v9329_v60 = vld [vmem:[%s13327_s3 + $0x4a8] ss:$16 sps:$4 sm:$0xff]  }
 0x27e   : > { %7241 = vmatpush1.bf16.msra.mxu0 %v9266_v61  ;;  %v9334_v61 = vld [vmem:[%s13327_s3 + $0x4c4] ss:$16 sps:$4 sm:$0xff]  }
 0x27f   : > { %7569 = vmatpush1.bf16.msra.mxu1 %v9269_v62  ;;  %7242 = vmatprep.subr.bf16.mxu0 %v9274_v63  ;;  %v9337_v62 = vld [vmem:[%s13327_s3 + $0x4cc] ss:$16 sps:$4 sm:$0xff]   ;;  %v9332_v63 = vld [vmem:[%s13327_s3 + $0x4c0] ss:$16 sps:$4 sm:$0xff]  }
 0x280   : > { %7570 = vmatprep.subr.bf16.mxu1 %v9277_v0  ;;  %v9335_v0 = vld [vmem:[%s13327_s3 + $0x4c8] ss:$16 sps:$4 sm:$0xff]  }
 0x282   : > { %7243 = vmatpush1.bf16.msra.mxu0 %v9272_v1  ;;  %v9340_v1 = vld [vmem:[%s13327_s3 + $0x4e4] ss:$16 sps:$4 sm:$0xff]  }
 0x283   : > { %7571 = vmatpush1.bf16.msra.mxu1 %v9275_v3  ;;  %7244 = vmatprep.subr.bf16.mxu0 %v9280_v5  ;;  %v9343_v3 = vld [vmem:[%s13327_s3 + $0x4ec] ss:$16 sps:$4 sm:$0xff]   ;;  %v9338_v5 = vld [vmem:[%s13327_s3 + $0x4e0] ss:$16 sps:$4 sm:$0xff]  }
 0x284   : > { %7572 = vmatprep.subr.bf16.mxu1 %v9283_v7  ;;  %v9341_v7 = vld [vmem:[%s13327_s3 + $0x4e8] ss:$16 sps:$4 sm:$0xff]  }
 0x286   : > { %7245 = vmatpush1.bf16.msra.mxu0 %v9278_v11  ;;  %v9346_v11 = vld [vmem:[%s13327_s3 + $0x504] ss:$16 sps:$4 sm:$0xff]  }
 0x287   : > { %7573 = vmatpush1.bf16.msra.mxu1 %v9281_v16  ;;  %7246 = vmatprep.subr.bf16.mxu0 %v9286_v17  ;;  %v9344_v16 = vld [vmem:[%s13327_s3 + $0x500] ss:$16 sps:$4 sm:$0xff]   ;;  %v9347_v17 = vld [vmem:[%s13327_s3 + $0x508] ss:$16 sps:$4 sm:$0xff]  }
 0x288   : > { %7574 = vmatprep.subr.bf16.mxu1 %v9289_v18  ;;  %v9352_v18 = vld [vmem:[%s13327_s3 + $0x524] ss:$16 sps:$4 sm:$0xff]  }
 0x28a   : > { %7247 = vmatpush1.bf16.msra.mxu0 %v9284_v20  ;;  %v9350_v20 = vld [vmem:[%s13327_s3 + $0x520] ss:$16 sps:$4 sm:$0xff]  }
 0x28b   : > { %7575 = vmatpush1.bf16.msra.mxu1 %v9287_v25  ;;  %7248 = vmatprep.subr.bf16.mxu0 %v9292_v26  ;;  %v9358_v25 = vld [vmem:[%s13327_s3 + $0x544] ss:$16 sps:$4 sm:$0xff]   ;;  %v9361_v26 = vld [vmem:[%s13327_s3 + $0x54c] ss:$16 sps:$4 sm:$0xff]  }
 0x28c   : > { %7576 = vmatprep.subr.bf16.mxu1 %v9295_v27  ;;  %v9356_v27 = vld [vmem:[%s13327_s3 + $0x540] ss:$16 sps:$4 sm:$0xff]  }
 0x28e   : > { %7249 = vmatpush1.bf16.msra.mxu0 %v9290_v35  ;;  %v9364_v35 = vld [vmem:[%s13327_s3 + $0x564] ss:$16 sps:$4 sm:$0xff]  }
 0x28f   : > { %7577 = vmatpush1.bf16.msra.mxu1 %v9293_v30  ;;  %7259 = vmatprep.subr.bf16.mxu0 %v9298_v57  ;;  %v9362_v30 = vld [vmem:[%s13327_s3 + $0x560] ss:$16 sps:$4 sm:$0xff]   ;;  %v9365_v57 = vld [vmem:[%s13327_s3 + $0x568] ss:$16 sps:$4 sm:$0xff]  }
 0x290   : > { %7587 = vmatprep.subr.bf16.mxu1 %v9301_v9  ;;  %v9370_v9 = vld [vmem:[%s13327_s3 + $0x584] ss:$16 sps:$4 sm:$0xff]  }
 0x291   : > { %7251 = vmatmul.mubr.bf16.vlgmr.msra.gmra.mrb[16].mxu0 %v4069_v38 }
 0x292   : > { %7579 = vmatmul.mubr.bf16.vlgmr.msra.gmra.mrb[16].mxu1 %v4069_v38  ;;  %7260 = vmatpush1.bf16.msra.mxu0 %v9296_v12  ;;  %v9368_v12 = vld [vmem:[%s13327_s3 + $0x580] ss:$16 sps:$4 sm:$0xff]   ;;  %v759_v38 = vsub.s32 4, %v11598_v6 }
 0x293   : > { %7291 = vmatprep.mubr.bf16.mxu0 %v4072_v43  ;;  %7588 = vmatpush1.bf16.msra.mxu1 %v9299_v40  ;;  %v9371_v40 = vld [vmem:[%s13327_s3 + $0x588] ss:$16 sps:$4 sm:$0xff]  }
 0x294   : > { %7619 = vmatprep.mubr.bf16.mxu1 %v4072_v43  ;;  %7261 = vmatprep.subr.bf16.mxu0 %v9304_v42  ;;  %v9376_v42 = vld [vmem:[%s13327_s3 + $0x5a4] ss:$16 sps:$4 sm:$0xff]   ;;  %v9379_v43 = vld [vmem:[%s13327_s3 + $0x5ac] ss:$16 sps:$4 sm:$0xff]  }
 0x295   : > { %7589 = vmatprep.subr.bf16.mxu1 %v9307_v44  ;;  %v771_v44 = vsub.s32 7, %v11598_v6 }
 0x296   : > { %7262 = vmatpush1.bf16.msra.mxu0 %v9302_v45  ;;  %v9374_v45 = vld [vmem:[%s13327_s3 + $0x5a0] ss:$16 sps:$4 sm:$0xff]  }
 0x297   : > { %7590 = vmatpush1.bf16.msra.mxu1 %v9305_v23  ;;  %7263 = vmatprep.subr.bf16.mxu0 %v9310_v46  ;;  %v760_v23 = vrot.slane %v11624_v22, %v759_v38  ;;  %v9377_v46 = vld [vmem:[%s13327_s3 + $0x5a8] ss:$16 sps:$4 sm:$0xff]  }
 0x298   : > { %7591 = vmatprep.subr.bf16.mxu1 %v9313_v47  ;;  %v9382_v47 = vld [vmem:[%s13327_s3 + $0x5c4] ss:$16 sps:$4 sm:$0xff]  }
 0x29a   : > { %7264 = vmatpush1.bf16.msra.mxu0 %v9308_v48  ;;  %v9385_v48 = vld [vmem:[%s13327_s3 + $0x5cc] ss:$16 sps:$4 sm:$0xff]  }
 0x29b   : > { %7592 = vmatpush1.bf16.msra.mxu1 %v9311_v49  ;;  %7265 = vmatprep.subr.bf16.mxu0 %v9316_v50  ;;  %v772_v49 = vrot.slane %v11624_v22, %v771_v44  ;;  %v9380_v50 = vld [vmem:[%s13327_s3 + $0x5c0] ss:$16 sps:$4 sm:$0xff]   ;;  %v9391_v22 = vld [vmem:[%s13327_s3 + $0x5ec] ss:$16 sps:$4 sm:$0xff]  }
 0x29c   : > { %7593 = vmatprep.subr.bf16.mxu1 %v9319_v24  ;;  %v8957_v24 = vadd.f32 %v11512_v4, %v760_v23  ;;  %v9386_v4 = vld [vmem:[%s13327_s3 + $0x5e0] ss:$16 sps:$4 sm:$0xff]   ;;  %v9431_v23 = vld [vmem:[%s13327_s3 + $0x6c8] ss:$16 sps:$4 sm:$0xff]  }
 0x29e   : > { %7266 = vmatpush1.bf16.msra.mxu0 %v9314_v51  ;;  %v9383_v51 = vld [vmem:[%s13327_s3 + $0x5c8] ss:$16 sps:$4 sm:$0xff]  }
 0x29f   : > { %7594 = vmatpush1.bf16.msra.mxu1 %v9317_v52  ;;  %7267 = vmatprep.subr.bf16.mxu0 %v9322_v54  ;;  %v9388_v52 = vld [vmem:[%s13327_s3 + $0x5e4] ss:$16 sps:$4 sm:$0xff]   ;;  %v8960_v54 = vadd.f32 %v11530_v13, %v772_v49  ;;  %v9397_v13 = vld [vmem:[%s13327_s3 + $0x60c] ss:$16 sps:$4 sm:$0xff]   ;;  %v9434_v49 = vld [vmem:[%s13327_s3 + $0x6e0] ss:$16 sps:$4 sm:$0xff]  }
 0x2a0   : > { %7595 = vmatprep.subr.bf16.mxu1 %v9325_v55  ;;  %v4055_v55 = vmax.f32 %v8957_v24, 0.0  ;;  %v9442_v24 = vld [vmem:[%s13327_s3 + $0x704] ss:$16 sps:$4 sm:$0xff]  }
 0x2a2   : > { %7268 = vmatpush1.bf16.msra.mxu0 %v9320_v31  ;;  %v9389_v31 = vld [vmem:[%s13327_s3 + $0x5e8] ss:$16 sps:$4 sm:$0xff]  }
 0x2a3   : > { %7596 = vmatpush1.bf16.msra.mxu1 %v9323_v56  ;;  %7269 = vmatprep.subr.bf16.mxu0 %v9328_v58  ;;  %v9394_v56 = vld [vmem:[%s13327_s3 + $0x604] ss:$16 sps:$4 sm:$0xff]   ;;  %v4058_v58 = vmax.f32 %v8960_v54, 0.0 }
 0x2a4   : > { %7597 = vmatprep.subr.bf16.mxu1 %v9331_v59  ;;  %v9392_v59 = vld [vmem:[%s13327_s3 + $0x600] ss:$16 sps:$4 sm:$0xff]   ;;  %v9448_v54 = vld [vmem:[%s13327_s3 + $0x724] ss:$16 sps:$4 sm:$0xff]  }
 0x2a6   : > { %7270 = vmatpush1.bf16.msra.mxu0 %v9326_v39  ;;  %v4071_v39 = vpack.c.bf16 %v4055_v55, %v4055_v55  ;;  %v9446_v55 = vld [vmem:[%s13327_s3 + $0x720] ss:$16 sps:$4 sm:$0xff]  }
 0x2a7   : > { %7598 = vmatpush1.bf16.msra.mxu1 %v9329_v60  ;;  %7271 = vmatprep.subr.bf16.mxu0 %v9334_v61  ;;  %v9395_v60 = vld [vmem:[%s13327_s3 + $0x608] ss:$16 sps:$4 sm:$0xff]   ;;  %v9400_v61 = vld [vmem:[%s13327_s3 + $0x624] ss:$16 sps:$4 sm:$0xff]  }
 0x2a8   : > { %7599 = vmatprep.subr.bf16.mxu1 %v9337_v62  ;;  %v4074_v62 = vpack.c.bf16 %v4058_v58, %v4058_v58  ;;  %v9452_v58 = vld [vmem:[%s13327_s3 + $0x740] ss:$16 sps:$4 sm:$0xff]  }
 0x2aa   : > { %7272 = vmatpush1.bf16.msra.mxu0 %v9332_v63  ;;  %v9403_v63 = vld [vmem:[%s13327_s3 + $0x62c] ss:$16 sps:$4 sm:$0xff]  }
 0x2ab   : > { %7600 = vmatpush1.bf16.msra.mxu1 %v9335_v0  ;;  %7273 = vmatprep.subr.bf16.mxu0 %v9340_v1  ;;  %v9398_v0 = vld [vmem:[%s13327_s3 + $0x620] ss:$16 sps:$4 sm:$0xff]   ;;  %v9401_v1 = vld [vmem:[%s13327_s3 + $0x628] ss:$16 sps:$4 sm:$0xff]  }
 0x2ac   : > { %7601 = vmatprep.subr.bf16.mxu1 %v9343_v3  ;;  %v9406_v3 = vld [vmem:[%s13327_s3 + $0x644] ss:$16 sps:$4 sm:$0xff]  }
 0x2ae   : > { %7274 = vmatpush1.bf16.msra.mxu0 %v9338_v5  ;;  %v9409_v5 = vld [vmem:[%s13327_s3 + $0x64c] ss:$16 sps:$4 sm:$0xff]  }
 0x2af   : > { %7602 = vmatpush1.bf16.msra.mxu1 %v9341_v7  ;;  %7275 = vmatprep.subr.bf16.mxu0 %v9346_v11  ;;  %v9404_v7 = vld [vmem:[%s13327_s3 + $0x640] ss:$16 sps:$4 sm:$0xff]   ;;  %v9407_v11 = vld [vmem:[%s13327_s3 + $0x648] ss:$16 sps:$4 sm:$0xff]  }
 0x2b0   : > { %7603 = vmatprep.subr.bf16.mxu1 %v9349_v14  ;;  %v9412_v14 = vld [vmem:[%s13327_s3 + $0x664] ss:$16 sps:$4 sm:$0xff]  }
 0x2b2   : > { %7276 = vmatpush1.bf16.msra.mxu0 %v9344_v16  ;;  %v9415_v16 = vld [vmem:[%s13327_s3 + $0x66c] ss:$16 sps:$4 sm:$0xff]  }
 0x2b3   : > { %7604 = vmatpush1.bf16.msra.mxu1 %v9347_v17  ;;  %7277 = vmatprep.subr.bf16.mxu0 %v9352_v18  ;;  %v9410_v17 = vld [vmem:[%s13327_s3 + $0x660] ss:$16 sps:$4 sm:$0xff]   ;;  %v9413_v18 = vld [vmem:[%s13327_s3 + $0x668] ss:$16 sps:$4 sm:$0xff]  }
 0x2b4   : > { %7605 = vmatprep.subr.bf16.mxu1 %v9355_v53  ;;  %v9418_v53 = vld [vmem:[%s13327_s3 + $0x684] ss:$16 sps:$4 sm:$0xff]  }
 0x2b6   : > { %7278 = vmatpush1.bf16.msra.mxu0 %v9350_v20  ;;  %v9421_v20 = vld [vmem:[%s13327_s3 + $0x68c] ss:$16 sps:$4 sm:$0xff]  }
 0x2b7   : > { %7606 = vmatpush1.bf16.msra.mxu1 %v9353_v21  ;;  %7279 = vmatprep.subr.bf16.mxu0 %v9358_v25  ;;  %v9416_v21 = vld [vmem:[%s13327_s3 + $0x680] ss:$16 sps:$4 sm:$0xff]   ;;  %v9419_v25 = vld [vmem:[%s13327_s3 + $0x688] ss:$16 sps:$4 sm:$0xff]  }
 0x2b8   : > { %7607 = vmatprep.subr.bf16.mxu1 %v9361_v26  ;;  %v9424_v26 = vld [vmem:[%s13327_s3 + $0x6a4] ss:$16 sps:$4 sm:$0xff]  }
 0x2ba   : > { %7280 = vmatpush1.bf16.msra.mxu0 %v9356_v27  ;;  %v9427_v27 = vld [vmem:[%s13327_s3 + $0x6ac] ss:$16 sps:$4 sm:$0xff]  }
 0x2bb   : > { %7608 = vmatpush1.bf16.msra.mxu1 %v9359_v28  ;;  %7281 = vmatprep.subr.bf16.mxu0 %v9364_v35  ;;  %v9422_v28 = vld [vmem:[%s13327_s3 + $0x6a0] ss:$16 sps:$4 sm:$0xff]   ;;  %v9425_v35 = vld [vmem:[%s13327_s3 + $0x6a8] ss:$16 sps:$4 sm:$0xff]  }
 0x2bc   : > { %7609 = vmatprep.subr.bf16.mxu1 %v9367_v29  ;;  %v9430_v29 = vld [vmem:[%s13327_s3 + $0x6c4] ss:$16 sps:$4 sm:$0xff]  }
 0x2be   : > { %7282 = vmatpush1.bf16.msra.mxu0 %v9362_v30 }
 0x2bf   : > { %7610 = vmatpush1.bf16.msra.mxu1 %v9365_v57  ;;  %7283 = vmatprep.subr.bf16.mxu0 %v9370_v9  ;;  %v9433_v57 = vld [vmem:[%s13327_s3 + $0x6cc] ss:$16 sps:$4 sm:$0xff]  }
 0x2c0   : > { %7611 = vmatprep.subr.bf16.mxu1 %v9373_v32 }
 0x2c2   : > { %7284 = vmatpush1.bf16.msra.mxu0 %v9368_v12 }
 0x2c3   : > { %7612 = vmatpush1.bf16.msra.mxu1 %v9371_v40  ;;  %7285 = vmatprep.subr.bf16.mxu0 %v9376_v42  ;;  %v9428_v42 = vld [vmem:[%s13327_s3 + $0x6c0] ss:$16 sps:$4 sm:$0xff]  }
 0x2c4   : > { %7613 = vmatprep.subr.bf16.mxu1 %v9379_v43 }
 0x2c6   : > { %7286 = vmatpush1.bf16.msra.mxu0 %v9374_v45 }
 0x2c7   : > { %7614 = vmatpush1.bf16.msra.mxu1 %v9377_v46  ;;  %7287 = vmatprep.subr.bf16.mxu0 %v9382_v47  ;;  %v9436_v46 = vld [vmem:[%s13327_s3 + $0x6e4] ss:$16 sps:$4 sm:$0xff]  }
 0x2c8   : > { %7615 = vmatprep.subr.bf16.mxu1 %v9385_v48  ;;  %v9439_v48 = vld [vmem:[%s13327_s3 + $0x6ec] ss:$16 sps:$4 sm:$0xff]  }
 0x2ca   : > { %7288 = vmatpush1.bf16.msra.mxu0 %v9380_v50  ;;  %v9437_v50 = vld [vmem:[%s13327_s3 + $0x6e8] ss:$16 sps:$4 sm:$0xff]  }
 0x2cb   : > { %7616 = vmatpush1.bf16.msra.mxu1 %v9383_v51  ;;  %7289 = vmatprep.subr.bf16.mxu0 %v9388_v52  ;;  %v9445_v51 = vld [vmem:[%s13327_s3 + $0x70c] ss:$16 sps:$4 sm:$0xff]   ;;  %v9440_v52 = vld [vmem:[%s13327_s3 + $0x700] ss:$16 sps:$4 sm:$0xff]  }
 0x2cc   : > { %7617 = vmatprep.subr.bf16.mxu1 %v9391_v22  ;;  %v9443_v22 = vld [vmem:[%s13327_s3 + $0x708] ss:$16 sps:$4 sm:$0xff]  }
 0x2ce   : > { %7290 = vmatpush1.bf16.msra.mxu0 %v9386_v4  ;;  %v9451_v4 = vld [vmem:[%s13327_s3 + $0x72c] ss:$16 sps:$4 sm:$0xff]  }
 0x2cf   : > { %7618 = vmatpush1.bf16.msra.mxu1 %v9389_v31  ;;  %7300 = vmatprep.subr.bf16.mxu0 %v9394_v56  ;;  %v9449_v31 = vld [vmem:[%s13327_s3 + $0x728] ss:$16 sps:$4 sm:$0xff]   ;;  %v9454_v56 = vld [vmem:[%s13327_s3 + $0x744] ss:$16 sps:$4 sm:$0xff]  }
 0x2d0   : > { %7628 = vmatprep.subr.bf16.mxu1 %v9397_v13  ;;  %v9457_v13 = vld [vmem:[%s13327_s3 + $0x74c] ss:$16 sps:$4 sm:$0xff]  }
 0x2d1   : > { %7292 = vmatmul.mubr.bf16.vlgmr.msra.gmra.mrb[16].mxu0 %v4071_v39 }
 0x2d2   : > { %7620 = vmatmul.mubr.bf16.vlgmr.msra.gmra.mrb[16].mxu1 %v4071_v39  ;;  %7301 = vmatpush1.bf16.msra.mxu0 %v9392_v59  ;;  %v9455_v59 = vld [vmem:[%s13327_s3 + $0x748] ss:$16 sps:$4 sm:$0xff]   ;;  %v9460_v39 = vld [vmem:[%s13327_s3 + $0x764] ss:$16 sps:$4 sm:$0xff]  }
 0x2d3   : > { %7332 = vmatprep.mubr.bf16.mxu0 %v4074_v62  ;;  %7629 = vmatpush1.bf16.msra.mxu1 %v9395_v60  ;;  %v9463_v60 = vld [vmem:[%s13327_s3 + $0x76c] ss:$16 sps:$4 sm:$0xff]  }
 0x2d4   : > { %7660 = vmatprep.mubr.bf16.mxu1 %v4074_v62  ;;  %7302 = vmatprep.subr.bf16.mxu0 %v9400_v61  ;;  %v9458_v61 = vld [vmem:[%s13327_s3 + $0x760] ss:$16 sps:$4 sm:$0xff]   ;;  %v9461_v62 = vld [vmem:[%s13327_s3 + $0x768] ss:$16 sps:$4 sm:$0xff]  }
 0x2d5   : > { %7630 = vmatprep.subr.bf16.mxu1 %v9403_v63  ;;  %v9466_v63 = vld [vmem:[%s13327_s3 + $0x784] ss:$16 sps:$4 sm:$0xff]  }
 0x2d6   : > { %7303 = vmatpush1.bf16.msra.mxu0 %v9398_v0  ;;  %v9469_v0 = vld [vmem:[%s13327_s3 + $0x78c] ss:$16 sps:$4 sm:$0xff]  }
 0x2d7   : > { %7631 = vmatpush1.bf16.msra.mxu1 %v9401_v1  ;;  %7304 = vmatprep.subr.bf16.mxu0 %v9406_v3  ;;  %v9464_v1 = vld [vmem:[%s13327_s3 + $0x780] ss:$16 sps:$4 sm:$0xff]   ;;  %v767_v3 = vsub.s32 6, %v11598_v6 }
 0x2d8   : > { %7632 = vmatprep.subr.bf16.mxu1 %v9409_v5  ;;  %v9467_v5 = vld [vmem:[%s13327_s3 + $0x788] ss:$16 sps:$4 sm:$0xff]   ;;  %v9860_v6 = vld [vmem:[%s13327_s3 + $0xfc0] ss:$16 sps:$4 sm:$0xff]  }
 0x2da   : > { %7305 = vmatpush1.bf16.msra.mxu0 %v9404_v7  ;;  %v9472_v7 = vld [vmem:[%s13327_s3 + $0x7a4] ss:$16 sps:$4 sm:$0xff]  }
 0x2db   : > { %7633 = vmatpush1.bf16.msra.mxu1 %v9407_v11  ;;  %7306 = vmatprep.subr.bf16.mxu0 %v9412_v14  ;;  %v9475_v11 = vld [vmem:[%s13327_s3 + $0x7ac] ss:$16 sps:$4 sm:$0xff]  }
 0x2dc   : > { %7634 = vmatprep.subr.bf16.mxu1 %v9415_v16  ;;  %v12434_v14 = vld [vmem:[%s13326_s2 + $0x8] sm:$0xff]  ;;  %v9470_v16 = vld [vmem:[%s13327_s3 + $0x7a0] ss:$16 sps:$4 sm:$0xff]  }
 0x2de   : > { %7307 = vmatpush1.bf16.msra.mxu0 %v9410_v17  ;;  %v9872_v17 = vld [vmem:[%s13326_s2] sm:$0xff] }
 0x2df   : > { %7635 = vmatpush1.bf16.msra.mxu1 %v9413_v18  ;;  %7308 = vmatprep.subr.bf16.mxu0 %v9418_v53  ;;  %v768_v18 = vrot.slane %v9872_v17, %v767_v3  ;;  %v9473_v53 = vld [vmem:[%s13327_s3 + $0x7a8] ss:$16 sps:$4 sm:$0xff]   ;;  %v9535_v17 = vld [vmem:[%s13327_s3 + $0x8ec] ss:$16 sps:$4 sm:$0xff]  }
 0x2e0   : > { %7636 = vmatprep.subr.bf16.mxu1 %v9421_v20  ;;  %v9478_v20 = vld [vmem:[%s13327_s3 + $0x7c4] ss:$16 sps:$4 sm:$0xff]  }
 0x2e2   : > { %7309 = vmatpush1.bf16.msra.mxu0 %v9416_v21  ;;  %v9481_v21 = vld [vmem:[%s13327_s3 + $0x7cc] ss:$16 sps:$4 sm:$0xff]  }
 0x2e3   : > { %7637 = vmatpush1.bf16.msra.mxu1 %v9419_v25  ;;  %7310 = vmatprep.subr.bf16.mxu0 %v9424_v26  ;;  %v780_v25 = vrot.slane %v12434_v14, %v11613_v19  ;;  %v9476_v26 = vld [vmem:[%s13327_s3 + $0x7c0] ss:$16 sps:$4 sm:$0xff]  }
 0x2e4   : > { %v12335_v30 = vpop.f32.mrb[12].mxu0  ;;  %7638 = vmatprep.subr.bf16.mxu1 %v9427_v27  ;;  %v12340_v9 = vpop.f32.mrb[12].mxu1  ;;  %v8959_v27 = vadd.f32 %v11520_v8, %v768_v18  ;;  %v9482_v8 = vld [vmem:[%s13327_s3 + $0x7e0] ss:$16 sps:$4 sm:$0xff]  }
 0x2e5   : > { %v12342_v32 = vpop.f32.mrb[13].mxu0  ;;  %v12344_v12 = vpop.f32.mrb[13].mxu1  ;;  %v9530_v18 = vld [vmem:[%s13327_s3 + $0x8e0] ss:$16 sps:$4 sm:$0xff]  }
 0x2e6   : > { %v3966_v40 = vpop.f32.mrb[14].mxu0  ;;  %7311 = vmatpush1.bf16.msra.mxu0 %v9422_v28  ;;  %v4048_v43 = vpop.f32.mrb[14].mxu1  ;;  %v9479_v28 = vld [vmem:[%s13327_s3 + $0x7c8] ss:$16 sps:$4 sm:$0xff]  }
 0x2e7   : > { %7639 = vmatpush1.bf16.msra.mxu1 %v9425_v35  ;;  %v3967_v45 = vpop.f32.mrb[15].mxu0  ;;  %7312 = vmatprep.subr.bf16.mxu0 %v9430_v29  ;;  %v4049_v47 = vpop.f32.mrb[15].mxu1  ;;  %v9484_v35 = vld [vmem:[%s13327_s3 + $0x7e4] ss:$16 sps:$4 sm:$0xff]   ;;  %v9487_v29 = vld [vmem:[%s13327_s3 + $0x7ec] ss:$16 sps:$4 sm:$0xff]  }
 0x2e8   : > { %7640 = vmatprep.subr.bf16.mxu1 %v9433_v57  ;;  %v8962_v57 = vadd.f32 %v11929_v34, %v780_v25  ;;  %v4057_v40 = vmax.f32 %v8959_v27, 0.0  ;;  %v9490_v43 = vld [vmem:[%s13327_s3 + $0x804] ss:$16 sps:$4 sm:$0xff]   ;;  %v9493_v34 = vld [vmem:[%s13327_s3 + $0x80c] ss:$16 sps:$4 sm:$0xff]  }
 0x2e9   : > { %v9491_v47 = vld [vmem:[%s13327_s3 + $0x808] ss:$16 sps:$4 sm:$0xff]   ;;  %v9536_v25 = vld [vmem:[%s13327_s3 + $0x900] ss:$16 sps:$4 sm:$0xff]   ;;  %v9544_v27 = vld [vmem:[%s13327_s3 + $0x924] ss:$16 sps:$4 sm:$0xff]  }
 0x2ea   : > { %7313 = vmatpush1.bf16.msra.mxu0 %v9428_v42  ;;  %v9485_v42 = vld [vmem:[%s13327_s3 + $0x7e8] ss:$16 sps:$4 sm:$0xff]   ;;  %v4060_v45 = vmax.f32 %v8962_v57, 0.0  ;;  %v9550_v57 = vld [vmem:[%s13327_s3 + $0x944] ss:$16 sps:$4 sm:$0xff]  }
 0x2eb   : > { %7641 = vmatpush1.bf16.msra.mxu1 %v9431_v23  ;;  %7314 = vmatprep.subr.bf16.mxu0 %v9436_v46  ;;  %v9488_v23 = vld [vmem:[%s13327_s3 + $0x800] ss:$16 sps:$4 sm:$0xff]   ;;  %v4073_v46 = vpack.c.bf16 %v4057_v40, %v4057_v40 }
 0x2ec   : > { %7642 = vmatprep.subr.bf16.mxu1 %v9439_v48  ;;  %v9496_v48 = vld [vmem:[%s13327_s3 + $0x824] ss:$16 sps:$4 sm:$0xff]   ;;  %v9548_v40 = vld [vmem:[%s13327_s3 + $0x940] ss:$16 sps:$4 sm:$0xff]  }
 0x2ee   : > { %7315 = vmatpush1.bf16.msra.mxu0 %v9434_v49  ;;  %v4076_v49 = vpack.c.bf16 %v4060_v45, %v4060_v45  ;;  %v9554_v45 = vld [vmem:[%s13327_s3 + $0x960] ss:$16 sps:$4 sm:$0xff]  }
 0x2ef   : > { %7643 = vmatpush1.bf16.msra.mxu1 %v9437_v50  ;;  %7316 = vmatprep.subr.bf16.mxu0 %v9442_v24  ;;  %v9499_v50 = vld [vmem:[%s13327_s3 + $0x82c] ss:$16 sps:$4 sm:$0xff]   ;;  %v9494_v24 = vld [vmem:[%s13327_s3 + $0x820] ss:$16 sps:$4 sm:$0xff]  }
 0x2f0   : > { %7644 = vmatprep.subr.bf16.mxu1 %v9445_v51  ;;  %v9497_v51 = vld [vmem:[%s13327_s3 + $0x828] ss:$16 sps:$4 sm:$0xff]  }
 0x2f2   : > { %7317 = vmatpush1.bf16.msra.mxu0 %v9440_v52  ;;  %v9502_v52 = vld [vmem:[%s13327_s3 + $0x844] ss:$16 sps:$4 sm:$0xff]  }
 0x2f3   : > { %7645 = vmatpush1.bf16.msra.mxu1 %v9443_v22  ;;  %7318 = vmatprep.subr.bf16.mxu0 %v9448_v54  ;;  %v9505_v22 = vld [vmem:[%s13327_s3 + $0x84c] ss:$16 sps:$4 sm:$0xff]   ;;  %v9500_v54 = vld [vmem:[%s13327_s3 + $0x840] ss:$16 sps:$4 sm:$0xff]  }
 0x2f4   : > { %7646 = vmatprep.subr.bf16.mxu1 %v9451_v4  ;;  %v9503_v4 = vld [vmem:[%s13327_s3 + $0x848] ss:$16 sps:$4 sm:$0xff]  }
 0x2f6   : > { %7319 = vmatpush1.bf16.msra.mxu0 %v9446_v55  ;;  %v9508_v55 = vld [vmem:[%s13327_s3 + $0x864] ss:$16 sps:$4 sm:$0xff]  }
 0x2f7   : > { %7647 = vmatpush1.bf16.msra.mxu1 %v9449_v31  ;;  %7320 = vmatprep.subr.bf16.mxu0 %v9454_v56  ;;  %v9511_v31 = vld [vmem:[%s13327_s3 + $0x86c] ss:$16 sps:$4 sm:$0xff]   ;;  %v9506_v56 = vld [vmem:[%s13327_s3 + $0x860] ss:$16 sps:$4 sm:$0xff]  }
 0x2f8   : > { %7648 = vmatprep.subr.bf16.mxu1 %v9457_v13  ;;  %v9509_v13 = vld [vmem:[%s13327_s3 + $0x868] ss:$16 sps:$4 sm:$0xff]  }
 0x2fa   : > { %7321 = vmatpush1.bf16.msra.mxu0 %v9452_v58  ;;  %v9514_v58 = vld [vmem:[%s13327_s3 + $0x884] ss:$16 sps:$4 sm:$0xff]  }
 0x2fb   : > { %7649 = vmatpush1.bf16.msra.mxu1 %v9455_v59  ;;  %7322 = vmatprep.subr.bf16.mxu0 %v9460_v39  ;;  %v9517_v59 = vld [vmem:[%s13327_s3 + $0x88c] ss:$16 sps:$4 sm:$0xff]   ;;  %v9512_v39 = vld [vmem:[%s13327_s3 + $0x880] ss:$16 sps:$4 sm:$0xff]  }
 0x2fc   : > { %7650 = vmatprep.subr.bf16.mxu1 %v9463_v60  ;;  %v9515_v60 = vld [vmem:[%s13327_s3 + $0x888] ss:$16 sps:$4 sm:$0xff]  }
 0x2fe   : > { %7323 = vmatpush1.bf16.msra.mxu0 %v9458_v61  ;;  %v9520_v61 = vld [vmem:[%s13327_s3 + $0x8a4] ss:$16 sps:$4 sm:$0xff]  }
 0x2ff   : > { %7651 = vmatpush1.bf16.msra.mxu1 %v9461_v62  ;;  %7324 = vmatprep.subr.bf16.mxu0 %v9466_v63  ;;  %v9523_v62 = vld [vmem:[%s13327_s3 + $0x8ac] ss:$16 sps:$4 sm:$0xff]   ;;  %v9518_v63 = vld [vmem:[%s13327_s3 + $0x8a0] ss:$16 sps:$4 sm:$0xff]  }
 0x300   : > { %7652 = vmatprep.subr.bf16.mxu1 %v9469_v0  ;;  %v9521_v0 = vld [vmem:[%s13327_s3 + $0x8a8] ss:$16 sps:$4 sm:$0xff]  }
 0x302   : > { %7325 = vmatpush1.bf16.msra.mxu0 %v9464_v1  ;;  %v9526_v1 = vld [vmem:[%s13327_s3 + $0x8c4] ss:$16 sps:$4 sm:$0xff]  }
 0x303   : > { %7653 = vmatpush1.bf16.msra.mxu1 %v9467_v5  ;;  %7326 = vmatprep.subr.bf16.mxu0 %v9472_v7  ;;  %v9529_v5 = vld [vmem:[%s13327_s3 + $0x8cc] ss:$16 sps:$4 sm:$0xff]   ;;  %v9524_v7 = vld [vmem:[%s13327_s3 + $0x8c0] ss:$16 sps:$4 sm:$0xff]  }
 0x304   : > { %7654 = vmatprep.subr.bf16.mxu1 %v9475_v11  ;;  %v9527_v11 = vld [vmem:[%s13327_s3 + $0x8c8] ss:$16 sps:$4 sm:$0xff]  }
 0x306   : > { %7327 = vmatpush1.bf16.msra.mxu0 %v9470_v16  ;;  %v9532_v16 = vld [vmem:[%s13327_s3 + $0x8e4] ss:$16 sps:$4 sm:$0xff]  }
 0x307   : > { %7655 = vmatpush1.bf16.msra.mxu1 %v9473_v53  ;;  %7328 = vmatprep.subr.bf16.mxu0 %v9478_v20  ;;  %v9533_v53 = vld [vmem:[%s13327_s3 + $0x8e8] ss:$16 sps:$4 sm:$0xff]   ;;  %v9538_v20 = vld [vmem:[%s13327_s3 + $0x904] ss:$16 sps:$4 sm:$0xff]  }
 0x308   : > { %7656 = vmatprep.subr.bf16.mxu1 %v9481_v21  ;;  %v9541_v21 = vld [vmem:[%s13327_s3 + $0x90c] ss:$16 sps:$4 sm:$0xff]  }
 0x30a   : > { %7329 = vmatpush1.bf16.msra.mxu0 %v9476_v26  ;;  %v9539_v26 = vld [vmem:[%s13327_s3 + $0x908] ss:$16 sps:$4 sm:$0xff]  }
 0x30b   : > { %7657 = vmatpush1.bf16.msra.mxu1 %v9479_v28  ;;  %7330 = vmatprep.subr.bf16.mxu0 %v9484_v35  ;;  %v9547_v28 = vld [vmem:[%s13327_s3 + $0x92c] ss:$16 sps:$4 sm:$0xff]   ;;  %v9542_v35 = vld [vmem:[%s13327_s3 + $0x920] ss:$16 sps:$4 sm:$0xff]  }
 0x30c   : > { %7658 = vmatprep.subr.bf16.mxu1 %v9487_v29  ;;  %v9545_v29 = vld [vmem:[%s13327_s3 + $0x928] ss:$16 sps:$4 sm:$0xff]  }
 0x30e   : > { %7331 = vmatpush1.bf16.msra.mxu0 %v9482_v8  ;;  %v9553_v8 = vld [vmem:[%s13327_s3 + $0x94c] ss:$16 sps:$4 sm:$0xff]  }
 0x30f   : > { %7659 = vmatpush1.bf16.msra.mxu1 %v9485_v42  ;;  %7341 = vmatprep.subr.bf16.mxu0 %v9490_v43  ;;  %v9551_v42 = vld [vmem:[%s13327_s3 + $0x948] ss:$16 sps:$4 sm:$0xff]   ;;  %v9556_v43 = vld [vmem:[%s13327_s3 + $0x964] ss:$16 sps:$4 sm:$0xff]  }
 0x310   : > { %7669 = vmatprep.subr.bf16.mxu1 %v9493_v34  ;;  %v9559_v34 = vld [vmem:[%s13327_s3 + $0x96c] ss:$16 sps:$4 sm:$0xff]  }
 0x311   : > { %7333 = vmatmul.mubr.bf16.vlgmr.msra.gmra.mrb[16].mxu0 %v4073_v46 }
 0x312   : > { %7661 = vmatmul.mubr.bf16.vlgmr.msra.gmra.mrb[16].mxu1 %v4073_v46  ;;  %7342 = vmatpush1.bf16.msra.mxu0 %v9488_v23  ;;  %v9557_v23 = vld [vmem:[%s13327_s3 + $0x968] ss:$16 sps:$4 sm:$0xff]   ;;  %v9562_v46 = vld [vmem:[%s13327_s3 + $0x984] ss:$16 sps:$4 sm:$0xff]  }
 0x313   : > { %7373 = vmatprep.mubr.bf16.mxu0 %v4076_v49  ;;  %7670 = vmatpush1.bf16.msra.mxu1 %v9491_v47  ;;  %v9565_v47 = vld [vmem:[%s13327_s3 + $0x98c] ss:$16 sps:$4 sm:$0xff]  }
 0x314   : > { %7701 = vmatprep.mubr.bf16.mxu1 %v4076_v49  ;;  %7343 = vmatprep.subr.bf16.mxu0 %v9496_v48  ;;  %v9560_v48 = vld [vmem:[%s13327_s3 + $0x980] ss:$16 sps:$4 sm:$0xff]   ;;  %v9563_v49 = vld [vmem:[%s13327_s3 + $0x988] ss:$16 sps:$4 sm:$0xff]  }
 0x315   : > { %7671 = vmatprep.subr.bf16.mxu1 %v9499_v50  ;;  %v9568_v50 = vld [vmem:[%s13327_s3 + $0x9a4] ss:$16 sps:$4 sm:$0xff]  }
 0x316   : > { %7344 = vmatpush1.bf16.msra.mxu0 %v9494_v24  ;;  %v9571_v24 = vld [vmem:[%s13327_s3 + $0x9ac] ss:$16 sps:$4 sm:$0xff]  }
 0x317   : > { %7672 = vmatpush1.bf16.msra.mxu1 %v9497_v51  ;;  %7345 = vmatprep.subr.bf16.mxu0 %v9502_v52  ;;  %v9566_v51 = vld [vmem:[%s13327_s3 + $0x9a0] ss:$16 sps:$4 sm:$0xff]   ;;  %v776_v52 = vrot.slane %v12434_v14, %v11797_v41 }
 0x318   : > { %7673 = vmatprep.subr.bf16.mxu1 %v9505_v22  ;;  %v9569_v22 = vld [vmem:[%s13327_s3 + $0x9a8] ss:$16 sps:$4 sm:$0xff]  }
 0x31a   : > { %7346 = vmatpush1.bf16.msra.mxu0 %v9500_v54  ;;  %v9574_v54 = vld [vmem:[%s13327_s3 + $0x9c4] ss:$16 sps:$4 sm:$0xff]  }
 0x31b   : > { %7674 = vmatpush1.bf16.msra.mxu1 %v9503_v4  ;;  %7347 = vmatprep.subr.bf16.mxu0 %v9508_v55  ;;  %v9577_v4 = vld [vmem:[%s13327_s3 + $0x9cc] ss:$16 sps:$4 sm:$0xff]   ;;  %v788_v55 = vrot.slane %v12434_v14, %v11809_v36 }
 0x31c   : > { %7675 = vmatprep.subr.bf16.mxu1 %v9511_v31  ;;  %v9572_v31 = vld [vmem:[%s13327_s3 + $0x9c0] ss:$16 sps:$4 sm:$0xff]  }
 0x31e   : > { %7348 = vmatpush1.bf16.msra.mxu0 %v9506_v56  ;;  %v8961_v56 = vadd.f32 %v11922_v15, %v776_v52  ;;  %v9578_v15 = vld [vmem:[%s13327_s3 + $0x9e0] ss:$16 sps:$4 sm:$0xff]   ;;  %v9634_v52 = vld [vmem:[%s13327_s3 + $0xb04] ss:$16 sps:$4 sm:$0xff]  }
 0x31f   : > { %7676 = vmatpush1.bf16.msra.mxu1 %v9509_v13  ;;  %7349 = vmatprep.subr.bf16.mxu0 %v9514_v58  ;;  %v9575_v13 = vld [vmem:[%s13327_s3 + $0x9c8] ss:$16 sps:$4 sm:$0xff]   ;;  %v9580_v58 = vld [vmem:[%s13327_s3 + $0x9e4] ss:$16 sps:$4 sm:$0xff]  }
 0x320   : > { %7677 = vmatprep.subr.bf16.mxu1 %v9517_v59  ;;  %v9583_v59 = vld [vmem:[%s13327_s3 + $0x9ec] ss:$16 sps:$4 sm:$0xff]  }
 0x322   : > { %7350 = vmatpush1.bf16.msra.mxu0 %v9512_v39  ;;  %v8964_v39 = vadd.f32 %v11931_v37, %v788_v55  ;;  %v9589_v37 = vld [vmem:[%s13327_s3 + $0xa0c] ss:$16 sps:$4 sm:$0xff]   ;;  %v9640_v55 = vld [vmem:[%s13327_s3 + $0xb24] ss:$16 sps:$4 sm:$0xff]  }
 0x323   : > { %7678 = vmatpush1.bf16.msra.mxu1 %v9515_v60  ;;  %7351 = vmatprep.subr.bf16.mxu0 %v9520_v61  ;;  %v4059_v60 = vmax.f32 %v8961_v56, 0.0  ;;  %v9581_v61 = vld [vmem:[%s13327_s3 + $0x9e8] ss:$16 sps:$4 sm:$0xff]   ;;  %v9638_v56 = vld [vmem:[%s13327_s3 + $0xb20] ss:$16 sps:$4 sm:$0xff]  }
 0x324   : > { %7679 = vmatprep.subr.bf16.mxu1 %v9523_v62  ;;  %v9586_v62 = vld [vmem:[%s13327_s3 + $0xa04] ss:$16 sps:$4 sm:$0xff]  }
 0x326   : > { %7352 = vmatpush1.bf16.msra.mxu0 %v9518_v63  ;;  %v4062_v63 = vmax.f32 %v8964_v39, 0.0  ;;  %v9644_v39 = vld [vmem:[%s13327_s3 + $0xb40] ss:$16 sps:$4 sm:$0xff]  }
 0x327   : > { %7680 = vmatpush1.bf16.msra.mxu1 %v9521_v0  ;;  %7353 = vmatprep.subr.bf16.mxu0 %v9526_v1  ;;  %v9584_v0 = vld [vmem:[%s13327_s3 + $0xa00] ss:$16 sps:$4 sm:$0xff]   ;;  %v4075_v1 = vpack.c.bf16 %v4059_v60, %v4059_v60  ;;  %v9652_v60 = vld [vmem:[%s13327_s3 + $0xb64] ss:$16 sps:$4 sm:$0xff]  }
 0x328   : > { %7681 = vmatprep.subr.bf16.mxu1 %v9529_v5  ;;  %v9587_v5 = vld [vmem:[%s13327_s3 + $0xa08] ss:$16 sps:$4 sm:$0xff]  }
 0x32a   : > { %7354 = vmatpush1.bf16.msra.mxu0 %v9524_v7  ;;  %v9592_v7 = vld [vmem:[%s13327_s3 + $0xa24] ss:$16 sps:$4 sm:$0xff]  }
 0x32b   : > { %7682 = vmatpush1.bf16.msra.mxu1 %v9527_v11  ;;  %7355 = vmatprep.subr.bf16.mxu0 %v9532_v16  ;;  %v4078_v11 = vpack.c.bf16 %v4062_v63, %v4062_v63  ;;  %v9595_v16 = vld [vmem:[%s13327_s3 + $0xa2c] ss:$16 sps:$4 sm:$0xff]   ;;  %v9658_v63 = vld [vmem:[%s13327_s3 + $0xb84] ss:$16 sps:$4 sm:$0xff]  }
 0x32c   : > { %7683 = vmatprep.subr.bf16.mxu1 %v9535_v17  ;;  %v9590_v17 = vld [vmem:[%s13327_s3 + $0xa20] ss:$16 sps:$4 sm:$0xff]  }
 0x32e   : > { %7356 = vmatpush1.bf16.msra.mxu0 %v9530_v18  ;;  %v9593_v18 = vld [vmem:[%s13327_s3 + $0xa28] ss:$16 sps:$4 sm:$0xff]  }
 0x32f   : > { %7684 = vmatpush1.bf16.msra.mxu1 %v9533_v53  ;;  %7357 = vmatprep.subr.bf16.mxu0 %v9538_v20  ;;  %v9598_v53 = vld [vmem:[%s13327_s3 + $0xa44] ss:$16 sps:$4 sm:$0xff]   ;;  %v9601_v20 = vld [vmem:[%s13327_s3 + $0xa4c] ss:$16 sps:$4 sm:$0xff]  }
 0x330   : > { %7685 = vmatprep.subr.bf16.mxu1 %v9541_v21  ;;  %v9596_v21 = vld [vmem:[%s13327_s3 + $0xa40] ss:$16 sps:$4 sm:$0xff]  }
 0x332   : > { %7358 = vmatpush1.bf16.msra.mxu0 %v9536_v25  ;;  %v9599_v25 = vld [vmem:[%s13327_s3 + $0xa48] ss:$16 sps:$4 sm:$0xff]  }
 0x333   : > { %7686 = vmatpush1.bf16.msra.mxu1 %v9539_v26  ;;  %7359 = vmatprep.subr.bf16.mxu0 %v9544_v27  ;;  %v9604_v26 = vld [vmem:[%s13327_s3 + $0xa64] ss:$16 sps:$4 sm:$0xff]   ;;  %v9607_v27 = vld [vmem:[%s13327_s3 + $0xa6c] ss:$16 sps:$4 sm:$0xff]  }
 0x334   : > { %7687 = vmatprep.subr.bf16.mxu1 %v9547_v28  ;;  %v9602_v28 = vld [vmem:[%s13327_s3 + $0xa60] ss:$16 sps:$4 sm:$0xff]  }
 0x336   : > { %7360 = vmatpush1.bf16.msra.mxu0 %v9542_v35  ;;  %v9605_v35 = vld [vmem:[%s13327_s3 + $0xa68] ss:$16 sps:$4 sm:$0xff]  }
 0x337   : > { %7688 = vmatpush1.bf16.msra.mxu1 %v9545_v29  ;;  %7361 = vmatprep.subr.bf16.mxu0 %v9550_v57  ;;  %v9610_v29 = vld [vmem:[%s13327_s3 + $0xa84] ss:$16 sps:$4 sm:$0xff]   ;;  %v9613_v57 = vld [vmem:[%s13327_s3 + $0xa8c] ss:$16 sps:$4 sm:$0xff]  }
 0x338   : > { %7689 = vmatprep.subr.bf16.mxu1 %v9553_v8  ;;  %v9608_v8 = vld [vmem:[%s13327_s3 + $0xa80] ss:$16 sps:$4 sm:$0xff]  }
 0x33a   : > { %7362 = vmatpush1.bf16.msra.mxu0 %v9548_v40  ;;  %v9611_v40 = vld [vmem:[%s13327_s3 + $0xa88] ss:$16 sps:$4 sm:$0xff]  }
 0x33b   : > { %7690 = vmatpush1.bf16.msra.mxu1 %v9551_v42  ;;  %7363 = vmatprep.subr.bf16.mxu0 %v9556_v43  ;;  %v9616_v42 = vld [vmem:[%s13327_s3 + $0xaa4] ss:$16 sps:$4 sm:$0xff]   ;;  %v9619_v43 = vld [vmem:[%s13327_s3 + $0xaac] ss:$16 sps:$4 sm:$0xff]  }
 0x33c   : > { %7691 = vmatprep.subr.bf16.mxu1 %v9559_v34  ;;  %v9614_v34 = vld [vmem:[%s13327_s3 + $0xaa0] ss:$16 sps:$4 sm:$0xff]  }
 0x33e   : > { %7364 = vmatpush1.bf16.msra.mxu0 %v9554_v45  ;;  %v9617_v45 = vld [vmem:[%s13327_s3 + $0xaa8] ss:$16 sps:$4 sm:$0xff]  }
 0x33f   : > { %7692 = vmatpush1.bf16.msra.mxu1 %v9557_v23  ;;  %7365 = vmatprep.subr.bf16.mxu0 %v9562_v46  ;;  %v9622_v23 = vld [vmem:[%s13327_s3 + $0xac4] ss:$16 sps:$4 sm:$0xff]   ;;  %v9625_v46 = vld [vmem:[%s13327_s3 + $0xacc] ss:$16 sps:$4 sm:$0xff]  }
 0x340   : > { %7693 = vmatprep.subr.bf16.mxu1 %v9565_v47  ;;  %v9620_v47 = vld [vmem:[%s13327_s3 + $0xac0] ss:$16 sps:$4 sm:$0xff]  }
 0x342   : > { %7366 = vmatpush1.bf16.msra.mxu0 %v9560_v48  ;;  %v9623_v48 = vld [vmem:[%s13327_s3 + $0xac8] ss:$16 sps:$4 sm:$0xff]  }
 0x343   : > { %7694 = vmatpush1.bf16.msra.mxu1 %v9563_v49  ;;  %7367 = vmatprep.subr.bf16.mxu0 %v9568_v50  ;;  %v9628_v49 = vld [vmem:[%s13327_s3 + $0xae4] ss:$16 sps:$4 sm:$0xff]   ;;  %v9631_v50 = vld [vmem:[%s13327_s3 + $0xaec] ss:$16 sps:$4 sm:$0xff]  }
 0x344   : > { %7695 = vmatprep.subr.bf16.mxu1 %v9571_v24  ;;  %v9626_v24 = vld [vmem:[%s13327_s3 + $0xae0] ss:$16 sps:$4 sm:$0xff]  }
 0x346   : > { %7368 = vmatpush1.bf16.msra.mxu0 %v9566_v51  ;;  %v9629_v51 = vld [vmem:[%s13327_s3 + $0xae8] ss:$16 sps:$4 sm:$0xff]  }
 0x347   : > { %7696 = vmatpush1.bf16.msra.mxu1 %v9569_v22  ;;  %7369 = vmatprep.subr.bf16.mxu0 %v9574_v54  ;;  %v9637_v22 = vld [vmem:[%s13327_s3 + $0xb0c] ss:$16 sps:$4 sm:$0xff]   ;;  %v9632_v54 = vld [vmem:[%s13327_s3 + $0xb00] ss:$16 sps:$4 sm:$0xff]  }
 0x348   : > { %7697 = vmatprep.subr.bf16.mxu1 %v9577_v4  ;;  %v9635_v4 = vld [vmem:[%s13327_s3 + $0xb08] ss:$16 sps:$4 sm:$0xff]  }
 0x34a   : > { %7370 = vmatpush1.bf16.msra.mxu0 %v9572_v31  ;;  %v9643_v31 = vld [vmem:[%s13327_s3 + $0xb2c] ss:$16 sps:$4 sm:$0xff]  }
 0x34b   : > { %7698 = vmatpush1.bf16.msra.mxu1 %v9575_v13  ;;  %7371 = vmatprep.subr.bf16.mxu0 %v9580_v58  ;;  %v9641_v13 = vld [vmem:[%s13327_s3 + $0xb28] ss:$16 sps:$4 sm:$0xff]   ;;  %v9646_v58 = vld [vmem:[%s13327_s3 + $0xb44] ss:$16 sps:$4 sm:$0xff]  }
 0x34c   : > { %7699 = vmatprep.subr.bf16.mxu1 %v9583_v59  ;;  %v9649_v59 = vld [vmem:[%s13327_s3 + $0xb4c] ss:$16 sps:$4 sm:$0xff]  }
 0x34e   : > { %7372 = vmatpush1.bf16.msra.mxu0 %v9578_v15  ;;  %v9647_v15 = vld [vmem:[%s13327_s3 + $0xb48] ss:$16 sps:$4 sm:$0xff]  }
 0x34f   : > { %7700 = vmatpush1.bf16.msra.mxu1 %v9581_v61  ;;  %7382 = vmatprep.subr.bf16.mxu0 %v9586_v62  ;;  %v9655_v61 = vld [vmem:[%s13327_s3 + $0xb6c] ss:$16 sps:$4 sm:$0xff]   ;;  %v9650_v62 = vld [vmem:[%s13327_s3 + $0xb60] ss:$16 sps:$4 sm:$0xff]  }
 0x350   : > { %7710 = vmatprep.subr.bf16.mxu1 %v9589_v37  ;;  %v9653_v37 = vld [vmem:[%s13327_s3 + $0xb68] ss:$16 sps:$4 sm:$0xff]  }
 0x351   : > { %7374 = vmatmul.mubr.bf16.vlgmr.msra.gmra.mrb[16].mxu0 %v4075_v1 }
 0x352   : > { %7702 = vmatmul.mubr.bf16.vlgmr.msra.gmra.mrb[16].mxu1 %v4075_v1  ;;  %7383 = vmatpush1.bf16.msra.mxu0 %v9584_v0  ;;  %v9661_v0 = vld [vmem:[%s13327_s3 + $0xb8c] ss:$16 sps:$4 sm:$0xff]   ;;  %v9656_v1 = vld [vmem:[%s13327_s3 + $0xb80] ss:$16 sps:$4 sm:$0xff]  }
 0x353   : > { %7414 = vmatprep.mubr.bf16.mxu0 %v4078_v11  ;;  %7711 = vmatpush1.bf16.msra.mxu1 %v9587_v5  ;;  %v9659_v5 = vld [vmem:[%s13327_s3 + $0xb88] ss:$16 sps:$4 sm:$0xff]  }
 0x354   : > { %7742 = vmatprep.mubr.bf16.mxu1 %v4078_v11  ;;  %7384 = vmatprep.subr.bf16.mxu0 %v9592_v7  ;;  %v9664_v7 = vld [vmem:[%s13327_s3 + $0xba4] ss:$16 sps:$4 sm:$0xff]   ;;  %v9667_v11 = vld [vmem:[%s13327_s3 + $0xbac] ss:$16 sps:$4 sm:$0xff]  }
 0x355   : > { %7712 = vmatprep.subr.bf16.mxu1 %v9595_v16  ;;  %v9662_v16 = vld [vmem:[%s13327_s3 + $0xba0] ss:$16 sps:$4 sm:$0xff]  }
 0x356   : > { %7385 = vmatpush1.bf16.msra.mxu0 %v9590_v17  ;;  %v784_v17 = vrot.slane %v12434_v14, %v12009_v2 }
 0x357   : > { %7713 = vmatpush1.bf16.msra.mxu1 %v9593_v18  ;;  %7386 = vmatprep.subr.bf16.mxu0 %v9598_v53  ;;  %v9665_v18 = vld [vmem:[%s13327_s3 + $0xba8] ss:$16 sps:$4 sm:$0xff]   ;;  %v9670_v53 = vld [vmem:[%s13327_s3 + $0xbc4] ss:$16 sps:$4 sm:$0xff]  }
 0x358   : > { %7714 = vmatprep.subr.bf16.mxu1 %v9601_v20  ;;  %v9673_v20 = vld [vmem:[%s13327_s3 + $0xbcc] ss:$16 sps:$4 sm:$0xff]  }
 0x35a   : > { %7387 = vmatpush1.bf16.msra.mxu0 %v9596_v21  ;;  %v796_v21 = vrot.slane %v12434_v14, %v763_v10  ;;  %v9679_v10 = vld [vmem:[%s13327_s3 + $0xbec] ss:$16 sps:$4 sm:$0xff]  }
 0x35b   : > { %7715 = vmatpush1.bf16.msra.mxu1 %v9599_v25  ;;  %7388 = vmatprep.subr.bf16.mxu0 %v9604_v26  ;;  %v9668_v25 = vld [vmem:[%s13327_s3 + $0xbc0] ss:$16 sps:$4 sm:$0xff]   ;;  %v8963_v26 = vadd.f32 %v11927_v33, %v784_v17  ;;  %v9731_v17 = vld [vmem:[%s13327_s3 + $0xd08] ss:$16 sps:$4 sm:$0xff]  }
 0x35c   : > { %7716 = vmatprep.subr.bf16.mxu1 %v9607_v27  ;;  %v9671_v27 = vld [vmem:[%s13327_s3 + $0xbc8] ss:$16 sps:$4 sm:$0xff]   ;;  %v9674_v33 = vld [vmem:[%s13327_s3 + $0xbe0] ss:$16 sps:$4 sm:$0xff]  }
 0x35e   : > { %7389 = vmatpush1.bf16.msra.mxu0 %v9602_v28  ;;  %v9676_v28 = vld [vmem:[%s13327_s3 + $0xbe4] ss:$16 sps:$4 sm:$0xff]  }
 0x35f   : > { %7717 = vmatpush1.bf16.msra.mxu1 %v9605_v35  ;;  %7390 = vmatprep.subr.bf16.mxu0 %v9610_v29  ;;  %v8966_v35 = vadd.f32 %v12342_v32, %v796_v21  ;;  %v4061_v29 = vmax.f32 %v8963_v26, 0.0  ;;  %v9685_v32 = vld [vmem:[%s13327_s3 + $0xc0c] ss:$16 sps:$4 sm:$0xff]   ;;  %v9737_v21 = vld [vmem:[%s13327_s3 + $0xd28] ss:$16 sps:$4 sm:$0xff]  }
 0x360   : > { %7718 = vmatprep.subr.bf16.mxu1 %v9613_v57  ;;  %v9677_v57 = vld [vmem:[%s13327_s3 + $0xbe8] ss:$16 sps:$4 sm:$0xff]   ;;  %v9745_v26 = vld [vmem:[%s13327_s3 + $0xd4c] ss:$16 sps:$4 sm:$0xff]  }
 0x362   : > { %7391 = vmatpush1.bf16.msra.mxu0 %v9608_v8  ;;  %v9682_v8 = vld [vmem:[%s13327_s3 + $0xc04] ss:$16 sps:$4 sm:$0xff]  }
 0x363   : > { %7719 = vmatpush1.bf16.msra.mxu1 %v9611_v40  ;;  %7392 = vmatprep.subr.bf16.mxu0 %v9616_v42  ;;  %v4064_v40 = vmax.f32 %v8966_v35, 0.0  ;;  %v9680_v42 = vld [vmem:[%s13327_s3 + $0xc00] ss:$16 sps:$4 sm:$0xff]   ;;  %v9751_v35 = vld [vmem:[%s13327_s3 + $0xd6c] ss:$16 sps:$4 sm:$0xff]  }
 0x364   : > { %7720 = vmatprep.subr.bf16.mxu1 %v9619_v43  ;;  %v4077_v43 = vpack.c.bf16 %v4061_v29, %v4061_v29  ;;  %v9749_v29 = vld [vmem:[%s13327_s3 + $0xd68] ss:$16 sps:$4 sm:$0xff]  }
 0x366   : > { %7393 = vmatpush1.bf16.msra.mxu0 %v9614_v34  ;;  %v9683_v34 = vld [vmem:[%s13327_s3 + $0xc08] ss:$16 sps:$4 sm:$0xff]  }
 0x367   : > { %7721 = vmatpush1.bf16.msra.mxu1 %v9617_v45  ;;  %7394 = vmatprep.subr.bf16.mxu0 %v9622_v23  ;;  %v9688_v45 = vld [vmem:[%s13327_s3 + $0xc24] ss:$16 sps:$4 sm:$0xff]   ;;  %v4080_v23 = vpack.c.bf16 %v4064_v40, %v4064_v40  ;;  %v9755_v40 = vld [vmem:[%s13327_s3 + $0xd88] ss:$16 sps:$4 sm:$0xff]  }
 0x368   : > { %7722 = vmatprep.subr.bf16.mxu1 %v9625_v46  ;;  %v9691_v46 = vld [vmem:[%s13327_s3 + $0xc2c] ss:$16 sps:$4 sm:$0xff]  }
 0x36a   : > { %7395 = vmatpush1.bf16.msra.mxu0 %v9620_v47  ;;  %v9686_v47 = vld [vmem:[%s13327_s3 + $0xc20] ss:$16 sps:$4 sm:$0xff]  }
 0x36b   : > { %7723 = vmatpush1.bf16.msra.mxu1 %v9623_v48  ;;  %7396 = vmatprep.subr.bf16.mxu0 %v9628_v49  ;;  %v9689_v48 = vld [vmem:[%s13327_s3 + $0xc28] ss:$16 sps:$4 sm:$0xff]   ;;  %v9694_v49 = vld [vmem:[%s13327_s3 + $0xc44] ss:$16 sps:$4 sm:$0xff]  }
 0x36c   : > { %7724 = vmatprep.subr.bf16.mxu1 %v9631_v50  ;;  %v9697_v50 = vld [vmem:[%s13327_s3 + $0xc4c] ss:$16 sps:$4 sm:$0xff]  }
 0x36e   : > { %7397 = vmatpush1.bf16.msra.mxu0 %v9626_v24  ;;  %v9692_v24 = vld [vmem:[%s13327_s3 + $0xc40] ss:$16 sps:$4 sm:$0xff]  }
 0x36f   : > { %7725 = vmatpush1.bf16.msra.mxu1 %v9629_v51  ;;  %7398 = vmatprep.subr.bf16.mxu0 %v9634_v52  ;;  %v9695_v51 = vld [vmem:[%s13327_s3 + $0xc48] ss:$16 sps:$4 sm:$0xff]   ;;  %v9700_v52 = vld [vmem:[%s13327_s3 + $0xc64] ss:$16 sps:$4 sm:$0xff]  }
 0x370   : > { %7726 = vmatprep.subr.bf16.mxu1 %v9637_v22  ;;  %v9703_v22 = vld [vmem:[%s13327_s3 + $0xc6c] ss:$16 sps:$4 sm:$0xff]  }
 0x372   : > { %7399 = vmatpush1.bf16.msra.mxu0 %v9632_v54  ;;  %v9698_v54 = vld [vmem:[%s13327_s3 + $0xc60] ss:$16 sps:$4 sm:$0xff]  }
 0x373   : > { %7727 = vmatpush1.bf16.msra.mxu1 %v9635_v4  ;;  %7400 = vmatprep.subr.bf16.mxu0 %v9640_v55  ;;  %v9701_v4 = vld [vmem:[%s13327_s3 + $0xc68] ss:$16 sps:$4 sm:$0xff]   ;;  %v9706_v55 = vld [vmem:[%s13327_s3 + $0xc84] ss:$16 sps:$4 sm:$0xff]  }
 0x374   : > { %7728 = vmatprep.subr.bf16.mxu1 %v9643_v31  ;;  %v9709_v31 = vld [vmem:[%s13327_s3 + $0xc8c] ss:$16 sps:$4 sm:$0xff]  }
 0x376   : > { %7401 = vmatpush1.bf16.msra.mxu0 %v9638_v56  ;;  %v9704_v56 = vld [vmem:[%s13327_s3 + $0xc80] ss:$16 sps:$4 sm:$0xff]  }
 0x377   : > { %7729 = vmatpush1.bf16.msra.mxu1 %v9641_v13  ;;  %7402 = vmatprep.subr.bf16.mxu0 %v9646_v58  ;;  %v9707_v13 = vld [vmem:[%s13327_s3 + $0xc88] ss:$16 sps:$4 sm:$0xff]   ;;  %v9712_v58 = vld [vmem:[%s13327_s3 + $0xca4] ss:$16 sps:$4 sm:$0xff]  }
 0x378   : > { %7730 = vmatprep.subr.bf16.mxu1 %v9649_v59  ;;  %v9715_v59 = vld [vmem:[%s13327_s3 + $0xcac] ss:$16 sps:$4 sm:$0xff]  }
 0x37a   : > { %7403 = vmatpush1.bf16.msra.mxu0 %v9644_v39  ;;  %v9710_v39 = vld [vmem:[%s13327_s3 + $0xca0] ss:$16 sps:$4 sm:$0xff]  }
 0x37b   : > { %7731 = vmatpush1.bf16.msra.mxu1 %v9647_v15  ;;  %7404 = vmatprep.subr.bf16.mxu0 %v9652_v60  ;;  %v9713_v15 = vld [vmem:[%s13327_s3 + $0xca8] ss:$16 sps:$4 sm:$0xff]   ;;  %v9718_v60 = vld [vmem:[%s13327_s3 + $0xcc4] ss:$16 sps:$4 sm:$0xff]  }
 0x37c   : > { %7732 = vmatprep.subr.bf16.mxu1 %v9655_v61  ;;  %v9721_v61 = vld [vmem:[%s13327_s3 + $0xccc] ss:$16 sps:$4 sm:$0xff]  }
 0x37e   : > { %7405 = vmatpush1.bf16.msra.mxu0 %v9650_v62  ;;  %v9716_v62 = vld [vmem:[%s13327_s3 + $0xcc0] ss:$16 sps:$4 sm:$0xff]  }
 0x37f   : > { %7733 = vmatpush1.bf16.msra.mxu1 %v9653_v37  ;;  %7406 = vmatprep.subr.bf16.mxu0 %v9658_v63  ;;  %v9719_v37 = vld [vmem:[%s13327_s3 + $0xcc8] ss:$16 sps:$4 sm:$0xff]   ;;  %v9724_v63 = vld [vmem:[%s13327_s3 + $0xce4] ss:$16 sps:$4 sm:$0xff]  }
 0x380   : > { %7734 = vmatprep.subr.bf16.mxu1 %v9661_v0  ;;  %v9727_v0 = vld [vmem:[%s13327_s3 + $0xcec] ss:$16 sps:$4 sm:$0xff]  }
 0x382   : > { %7407 = vmatpush1.bf16.msra.mxu0 %v9656_v1  ;;  %v9722_v1 = vld [vmem:[%s13327_s3 + $0xce0] ss:$16 sps:$4 sm:$0xff]  }
 0x383   : > { %7735 = vmatpush1.bf16.msra.mxu1 %v9659_v5  ;;  %7408 = vmatprep.subr.bf16.mxu0 %v9664_v7  ;;  %v9725_v5 = vld [vmem:[%s13327_s3 + $0xce8] ss:$16 sps:$4 sm:$0xff]   ;;  %v9730_v7 = vld [vmem:[%s13327_s3 + $0xd04] ss:$16 sps:$4 sm:$0xff]  }
 0x384   : > { %7736 = vmatprep.subr.bf16.mxu1 %v9667_v11  ;;  %v9733_v11 = vld [vmem:[%s13327_s3 + $0xd0c] ss:$16 sps:$4 sm:$0xff]  }
 0x386   : > { %7409 = vmatpush1.bf16.msra.mxu0 %v9662_v16  ;;  %v9728_v16 = vld [vmem:[%s13327_s3 + $0xd00] ss:$16 sps:$4 sm:$0xff]  }
 0x387   : > { %7737 = vmatpush1.bf16.msra.mxu1 %v9665_v18  ;;  %7410 = vmatprep.subr.bf16.mxu0 %v9670_v53  ;;  %v9736_v18 = vld [vmem:[%s13327_s3 + $0xd24] ss:$16 sps:$4 sm:$0xff]   ;;  %v9739_v53 = vld [vmem:[%s13327_s3 + $0xd2c] ss:$16 sps:$4 sm:$0xff]  }
 0x388   : > { %7738 = vmatprep.subr.bf16.mxu1 %v9673_v20  ;;  %v9734_v20 = vld [vmem:[%s13327_s3 + $0xd20] ss:$16 sps:$4 sm:$0xff]  }
 0x38a   : > { %7411 = vmatpush1.bf16.msra.mxu0 %v9668_v25  ;;  %v9742_v25 = vld [vmem:[%s13327_s3 + $0xd44] ss:$16 sps:$4 sm:$0xff]  }
 0x38b   : > { %7739 = vmatpush1.bf16.msra.mxu1 %v9671_v27  ;;  %7412 = vmatprep.subr.bf16.mxu0 %v9676_v28  ;;  %v9740_v27 = vld [vmem:[%s13327_s3 + $0xd40] ss:$16 sps:$4 sm:$0xff]   ;;  %v9743_v28 = vld [vmem:[%s13327_s3 + $0xd48] ss:$16 sps:$4 sm:$0xff]  }
 0x38c   : > { %7740 = vmatprep.subr.bf16.mxu1 %v9679_v10  ;;  %v9748_v10 = vld [vmem:[%s13327_s3 + $0xd64] ss:$16 sps:$4 sm:$0xff]  }
 0x38e   : > { %7413 = vmatpush1.bf16.msra.mxu0 %v9674_v33  ;;  %v9746_v33 = vld [vmem:[%s13327_s3 + $0xd60] ss:$16 sps:$4 sm:$0xff]  }
 0x38f   : > { %7741 = vmatpush1.bf16.msra.mxu1 %v9677_v57  ;;  %7423 = vmatprep.subr.bf16.mxu0 %v9682_v8  ;;  %v9754_v57 = vld [vmem:[%s13327_s3 + $0xd84] ss:$16 sps:$4 sm:$0xff]   ;;  %v9757_v8 = vld [vmem:[%s13327_s3 + $0xd8c] ss:$16 sps:$4 sm:$0xff]  }
 0x390   : > { %7751 = vmatprep.subr.bf16.mxu1 %v9685_v32  ;;  %v9752_v32 = vld [vmem:[%s13327_s3 + $0xd80] ss:$16 sps:$4 sm:$0xff]  }
 0x391   : > { %7415 = vmatmul.mubr.bf16.vlgmr.msra.gmra.mrb[16].mxu0 %v4077_v43 }
 0x392   : > { %7743 = vmatmul.mubr.bf16.vlgmr.msra.gmra.mrb[16].mxu1 %v4077_v43  ;;  %7424 = vmatpush1.bf16.msra.mxu0 %v9680_v42  ;;  %v9760_v42 = vld [vmem:[%s13327_s3 + $0xda4] ss:$16 sps:$4 sm:$0xff]   ;;  %v9763_v43 = vld [vmem:[%s13327_s3 + $0xdac] ss:$16 sps:$4 sm:$0xff]  }
 0x393   : > { %7455 = vmatprep.mubr.bf16.mxu0 %v4080_v23  ;;  %7752 = vmatpush1.bf16.msra.mxu1 %v9683_v34  ;;  %v9758_v34 = vld [vmem:[%s13327_s3 + $0xda0] ss:$16 sps:$4 sm:$0xff]  }
 0x394   : > { %7783 = vmatprep.mubr.bf16.mxu1 %v4080_v23  ;;  %7425 = vmatprep.subr.bf16.mxu0 %v9688_v45  ;;  %v792_v45 = vrot.slane %v12434_v14, %v759_v38  ;;  %v9761_v23 = vld [vmem:[%s13327_s3 + $0xda8] ss:$16 sps:$4 sm:$0xff]   ;;  %v9764_v38 = vld [vmem:[%s13327_s3 + $0xdc0] ss:$16 sps:$4 sm:$0xff]  }
 0x395   : > { %7753 = vmatprep.subr.bf16.mxu1 %v9691_v46  ;;  %v9766_v46 = vld [vmem:[%s13327_s3 + $0xdc4] ss:$16 sps:$4 sm:$0xff]  }
 0x396   : > { %7426 = vmatpush1.bf16.msra.mxu0 %v9686_v47  ;;  %v9769_v47 = vld [vmem:[%s13327_s3 + $0xdcc] ss:$16 sps:$4 sm:$0xff]  }
 0x397   : > { %7754 = vmatpush1.bf16.msra.mxu1 %v9689_v48  ;;  %7427 = vmatprep.subr.bf16.mxu0 %v9694_v49  ;;  %v804_v48 = vrot.slane %v12434_v14, %v771_v44  ;;  %v8965_v49 = vadd.f32 %v12335_v30, %v792_v45  ;;  %v9775_v44 = vld [vmem:[%s13327_s3 + $0xdec] ss:$16 sps:$4 sm:$0xff]   ;;  %v9770_v30 = vld [vmem:[%s13327_s3 + $0xde0] ss:$16 sps:$4 sm:$0xff]   ;;  %v9838_v45 = vld [vmem:[%s13327_s3 + $0xf44] ss:$16 sps:$4 sm:$0xff]  }
 0x398   : > { %7755 = vmatprep.subr.bf16.mxu1 %v9697_v50  ;;  %v9767_v50 = vld [vmem:[%s13327_s3 + $0xdc8] ss:$16 sps:$4 sm:$0xff]  }
 0x399   : > { %v8968_v14 = vadd.f32 %v12344_v12, %v804_v48  ;;  %v9781_v12 = vld [vmem:[%s13327_s3 + $0xe0c] ss:$16 sps:$4 sm:$0xff]   ;;  %v9844_v48 = vld [vmem:[%s13327_s3 + $0xf64] ss:$16 sps:$4 sm:$0xff]  }
 0x39a   : > { %7428 = vmatpush1.bf16.msra.mxu0 %v9692_v24  ;;  %v9772_v24 = vld [vmem:[%s13327_s3 + $0xde4] ss:$16 sps:$4 sm:$0xff]  }
 0x39b   : > { %7756 = vmatpush1.bf16.msra.mxu1 %v9695_v51  ;;  %7429 = vmatprep.subr.bf16.mxu0 %v9700_v52  ;;  %v4063_v51 = vmax.f32 %v8965_v49, 0.0  ;;  %v9773_v52 = vld [vmem:[%s13327_s3 + $0xde8] ss:$16 sps:$4 sm:$0xff]   ;;  %v9842_v49 = vld [vmem:[%s13327_s3 + $0xf60] ss:$16 sps:$4 sm:$0xff]  }
 0x39c   : > { %7757 = vmatprep.subr.bf16.mxu1 %v9703_v22  ;;  %v9778_v22 = vld [vmem:[%s13327_s3 + $0xe04] ss:$16 sps:$4 sm:$0xff]  }
 0x39e   : > { %7430 = vmatpush1.bf16.msra.mxu0 %v9698_v54  ;;  %v4066_v54 = vmax.f32 %v8968_v14, 0.0  ;;  %v9848_v14 = vld [vmem:[%s13327_s3 + $0xf80] ss:$16 sps:$4 sm:$0xff]  }
 0x39f   : > { %7758 = vmatpush1.bf16.msra.mxu1 %v9701_v4  ;;  %7431 = vmatprep.subr.bf16.mxu0 %v9706_v55  ;;  %v9776_v4 = vld [vmem:[%s13327_s3 + $0xe00] ss:$16 sps:$4 sm:$0xff]   ;;  %v4079_v55 = vpack.c.bf16 %v4063_v51, %v4063_v51  ;;  %v9856_v51 = vld [vmem:[%s13327_s3 + $0xfa4] ss:$16 sps:$4 sm:$0xff]  }
 0x3a0   : > { %7759 = vmatprep.subr.bf16.mxu1 %v9709_v31  ;;  %v9779_v31 = vld [vmem:[%s13327_s3 + $0xe08] ss:$16 sps:$4 sm:$0xff]  }
 0x3a2   : > { %7432 = vmatpush1.bf16.msra.mxu0 %v9704_v56  ;;  %v9784_v56 = vld [vmem:[%s13327_s3 + $0xe24] ss:$16 sps:$4 sm:$0xff]  }
 0x3a3   : > { %7760 = vmatpush1.bf16.msra.mxu1 %v9707_v13  ;;  %7433 = vmatprep.subr.bf16.mxu0 %v9712_v58  ;;  %v4082_v13 = vpack.c.bf16 %v4066_v54, %v4066_v54  ;;  %v9787_v58 = vld [vmem:[%s13327_s3 + $0xe2c] ss:$16 sps:$4 sm:$0xff]  }
 0x3a4   : > { %7761 = vmatprep.subr.bf16.mxu1 %v9715_v59  ;;  %v9782_v59 = vld [vmem:[%s13327_s3 + $0xe20] ss:$16 sps:$4 sm:$0xff]  }
 0x3a6   : > { %7434 = vmatpush1.bf16.msra.mxu0 %v9710_v39  ;;  %v9785_v39 = vld [vmem:[%s13327_s3 + $0xe28] ss:$16 sps:$4 sm:$0xff]  }
 0x3a7   : > { %7762 = vmatpush1.bf16.msra.mxu1 %v9713_v15  ;;  %7435 = vmatprep.subr.bf16.mxu0 %v9718_v60  ;;  %v9790_v15 = vld [vmem:[%s13327_s3 + $0xe44] ss:$16 sps:$4 sm:$0xff]   ;;  %v9793_v60 = vld [vmem:[%s13327_s3 + $0xe4c] ss:$16 sps:$4 sm:$0xff]  }
 0x3a8   : > { %7763 = vmatprep.subr.bf16.mxu1 %v9721_v61  ;;  %v9788_v61 = vld [vmem:[%s13327_s3 + $0xe40] ss:$16 sps:$4 sm:$0xff]  }
 0x3aa   : > { %7436 = vmatpush1.bf16.msra.mxu0 %v9716_v62  ;;  %v9791_v62 = vld [vmem:[%s13327_s3 + $0xe48] ss:$16 sps:$4 sm:$0xff]  }
 0x3ab   : > { %7764 = vmatpush1.bf16.msra.mxu1 %v9719_v37  ;;  %7437 = vmatprep.subr.bf16.mxu0 %v9724_v63  ;;  %v9796_v37 = vld [vmem:[%s13327_s3 + $0xe64] ss:$16 sps:$4 sm:$0xff]   ;;  %v9799_v63 = vld [vmem:[%s13327_s3 + $0xe6c] ss:$16 sps:$4 sm:$0xff]  }
 0x3ac   : > { %7765 = vmatprep.subr.bf16.mxu1 %v9727_v0  ;;  %v9794_v0 = vld [vmem:[%s13327_s3 + $0xe60] ss:$16 sps:$4 sm:$0xff]  }
 0x3ae   : > { %7438 = vmatpush1.bf16.msra.mxu0 %v9722_v1  ;;  %v9797_v1 = vld [vmem:[%s13327_s3 + $0xe68] ss:$16 sps:$4 sm:$0xff]  }
 0x3af   : > { %7766 = vmatpush1.bf16.msra.mxu1 %v9725_v5  ;;  %7439 = vmatprep.subr.bf16.mxu0 %v9730_v7  ;;  %v9802_v5 = vld [vmem:[%s13327_s3 + $0xe84] ss:$16 sps:$4 sm:$0xff]   ;;  %v9805_v7 = vld [vmem:[%s13327_s3 + $0xe8c] ss:$16 sps:$4 sm:$0xff]  }
 0x3b0   : > { %7767 = vmatprep.subr.bf16.mxu1 %v9733_v11  ;;  %v9800_v11 = vld [vmem:[%s13327_s3 + $0xe80] ss:$16 sps:$4 sm:$0xff]  }
 0x3b2   : > { %7440 = vmatpush1.bf16.msra.mxu0 %v9728_v16  ;;  %v9803_v16 = vld [vmem:[%s13327_s3 + $0xe88] ss:$16 sps:$4 sm:$0xff]  }
 0x3b3   : > { %7768 = vmatpush1.bf16.msra.mxu1 %v9731_v17  ;;  %7441 = vmatprep.subr.bf16.mxu0 %v9736_v18  ;;  %v9808_v17 = vld [vmem:[%s13327_s3 + $0xea4] ss:$16 sps:$4 sm:$0xff]   ;;  %v9811_v18 = vld [vmem:[%s13327_s3 + $0xeac] ss:$16 sps:$4 sm:$0xff]  }
 0x3b4   : > { %7769 = vmatprep.subr.bf16.mxu1 %v9739_v53  ;;  %v9806_v53 = vld [vmem:[%s13327_s3 + $0xea0] ss:$16 sps:$4 sm:$0xff]  }
 0x3b6   : > { %7442 = vmatpush1.bf16.msra.mxu0 %v9734_v20  ;;  %v9809_v20 = vld [vmem:[%s13327_s3 + $0xea8] ss:$16 sps:$4 sm:$0xff]  }
 0x3b7   : > { %7770 = vmatpush1.bf16.msra.mxu1 %v9737_v21  ;;  %7443 = vmatprep.subr.bf16.mxu0 %v9742_v25  ;;  %v9814_v21 = vld [vmem:[%s13327_s3 + $0xec4] ss:$16 sps:$4 sm:$0xff]   ;;  %v9817_v25 = vld [vmem:[%s13327_s3 + $0xecc] ss:$16 sps:$4 sm:$0xff]  }
 0x3b8   : > { %7771 = vmatprep.subr.bf16.mxu1 %v9745_v26  ;;  %v9812_v26 = vld [vmem:[%s13327_s3 + $0xec0] ss:$16 sps:$4 sm:$0xff]  }
 0x3ba   : > { %7444 = vmatpush1.bf16.msra.mxu0 %v9740_v27  ;;  %v9815_v27 = vld [vmem:[%s13327_s3 + $0xec8] ss:$16 sps:$4 sm:$0xff]  }
 0x3bb   : > { %7772 = vmatpush1.bf16.msra.mxu1 %v9743_v28  ;;  %7445 = vmatprep.subr.bf16.mxu0 %v9748_v10  ;;  %v9820_v28 = vld [vmem:[%s13327_s3 + $0xee4] ss:$16 sps:$4 sm:$0xff]   ;;  %v9823_v10 = vld [vmem:[%s13327_s3 + $0xeec] ss:$16 sps:$4 sm:$0xff]  }
 0x3bc   : > { %7773 = vmatprep.subr.bf16.mxu1 %v9751_v35  ;;  %v9818_v35 = vld [vmem:[%s13327_s3 + $0xee0] ss:$16 sps:$4 sm:$0xff]  }
 0x3be   : > { %7446 = vmatpush1.bf16.msra.mxu0 %v9746_v33  ;;  %v9821_v33 = vld [vmem:[%s13327_s3 + $0xee8] ss:$16 sps:$4 sm:$0xff]  }
 0x3bf   : > { %7774 = vmatpush1.bf16.msra.mxu1 %v9749_v29  ;;  %7447 = vmatprep.subr.bf16.mxu0 %v9754_v57  ;;  %v9826_v29 = vld [vmem:[%s13327_s3 + $0xf04] ss:$16 sps:$4 sm:$0xff]   ;;  %v9829_v57 = vld [vmem:[%s13327_s3 + $0xf0c] ss:$16 sps:$4 sm:$0xff]  }
 0x3c0   : > { %7775 = vmatprep.subr.bf16.mxu1 %v9757_v8  ;;  %v9824_v8 = vld [vmem:[%s13327_s3 + $0xf00] ss:$16 sps:$4 sm:$0xff]  }
 0x3c2   : > { %7448 = vmatpush1.bf16.msra.mxu0 %v9752_v32  ;;  %v9827_v32 = vld [vmem:[%s13327_s3 + $0xf08] ss:$16 sps:$4 sm:$0xff]  }
 0x3c3   : > { %7776 = vmatpush1.bf16.msra.mxu1 %v9755_v40  ;;  %7449 = vmatprep.subr.bf16.mxu0 %v9760_v42  ;;  %v9832_v40 = vld [vmem:[%s13327_s3 + $0xf24] ss:$16 sps:$4 sm:$0xff]   ;;  %v9835_v42 = vld [vmem:[%s13327_s3 + $0xf2c] ss:$16 sps:$4 sm:$0xff]  }
 0x3c4   : > { %7777 = vmatprep.subr.bf16.mxu1 %v9763_v43  ;;  %v9830_v43 = vld [vmem:[%s13327_s3 + $0xf20] ss:$16 sps:$4 sm:$0xff]  }
 0x3c6   : > { %7450 = vmatpush1.bf16.msra.mxu0 %v9758_v34  ;;  %v9833_v34 = vld [vmem:[%s13327_s3 + $0xf28] ss:$16 sps:$4 sm:$0xff]  }
 0x3c7   : > { %7778 = vmatpush1.bf16.msra.mxu1 %v9761_v23  ;;  %7451 = vmatprep.subr.bf16.mxu0 %v9766_v46  ;;  %v9841_v23 = vld [vmem:[%s13327_s3 + $0xf4c] ss:$16 sps:$4 sm:$0xff]   ;;  %v9836_v46 = vld [vmem:[%s13327_s3 + $0xf40] ss:$16 sps:$4 sm:$0xff]  }
 0x3c8   : > { %7779 = vmatprep.subr.bf16.mxu1 %v9769_v47  ;;  %v9839_v47 = vld [vmem:[%s13327_s3 + $0xf48] ss:$16 sps:$4 sm:$0xff]  }
 0x3ca   : > { %7452 = vmatpush1.bf16.msra.mxu0 %v9764_v38  ;;  %v9847_v38 = vld [vmem:[%s13327_s3 + $0xf6c] ss:$16 sps:$4 sm:$0xff]  }
 0x3cb   : > { %7780 = vmatpush1.bf16.msra.mxu1 %v9767_v50  ;;  %7453 = vmatprep.subr.bf16.mxu0 %v9772_v24  ;;  %v9845_v50 = vld [vmem:[%s13327_s3 + $0xf68] ss:$16 sps:$4 sm:$0xff]   ;;  %v9850_v24 = vld [vmem:[%s13327_s3 + $0xf84] ss:$16 sps:$4 sm:$0xff]  }
 0x3cc   : > { %7781 = vmatprep.subr.bf16.mxu1 %v9775_v44  ;;  %v9853_v44 = vld [vmem:[%s13327_s3 + $0xf8c] ss:$16 sps:$4 sm:$0xff]  }
 0x3ce   : > { %7454 = vmatpush1.bf16.msra.mxu0 %v9770_v30  ;;  %v9851_v30 = vld [vmem:[%s13327_s3 + $0xf88] ss:$16 sps:$4 sm:$0xff]  }
 0x3cf   : > { %7782 = vmatpush1.bf16.msra.mxu1 %v9773_v52  ;;  %7464 = vmatprep.subr.bf16.mxu0 %v9778_v22  ;;  %v9859_v52 = vld [vmem:[%s13327_s3 + $0xfac] ss:$16 sps:$4 sm:$0xff]   ;;  %v9854_v22 = vld [vmem:[%s13327_s3 + $0xfa0] ss:$16 sps:$4 sm:$0xff]  }
 0x3d0   : > { %7792 = vmatprep.subr.bf16.mxu1 %v9781_v12  ;;  %v9873_v12 = vld [vmem:[%s13326_s2 + $0x8] sm:$0xff] }
 0x3d1   : > { %7456 = vmatmul.mubr.bf16.vlgmr.msra.gmra.mrb[16].mxu0 %v4079_v55  ;;  %v800_v54 = vrot.slane %v9873_v12, %v767_v3 }
 0x3d2   : > { %7784 = vmatmul.mubr.bf16.vlgmr.msra.gmra.mrb[16].mxu1 %v4079_v55  ;;  %7465 = vmatpush1.bf16.msra.mxu0 %v9776_v4  ;;  %v9857_v4 = vld [vmem:[%s13327_s3 + $0xfa8] ss:$16 sps:$4 sm:$0xff]   ;;  %v9862_v55 = vld [vmem:[%s13327_s3 + $0xfc4] ss:$16 sps:$4 sm:$0xff]  }
 0x3d3   : > { %7496 = vmatprep.mubr.bf16.mxu0 %v4082_v13  ;;  %7793 = vmatpush1.bf16.msra.mxu1 %v9779_v31  ;;  %v9865_v31 = vld [vmem:[%s13327_s3 + $0xfcc] ss:$16 sps:$4 sm:$0xff]   ;;  %v8967_v3 = vadd.f32 %v12340_v9, %v800_v54  ;;  %v9866_v9 = vld [vmem:[%s13327_s3 + $0xfe0] ss:$16 sps:$4 sm:$0xff]  }
 0x3d4   : > { %7824 = vmatprep.mubr.bf16.mxu1 %v4082_v13  ;;  %7466 = vmatprep.subr.bf16.mxu0 %v9784_v56  ;;  %v9863_v56 = vld [vmem:[%s13327_s3 + $0xfc8] ss:$16 sps:$4 sm:$0xff]   ;;  %v9868_v13 = vld [vmem:[%s13327_s3 + $0xfe4] ss:$16 sps:$4 sm:$0xff]  }
 0x3d5   : > { %7794 = vmatprep.subr.bf16.mxu1 %v9787_v58  ;;  %v9871_v58 = vld [vmem:[%s13327_s3 + $0xfec] ss:$16 sps:$4 sm:$0xff]  }
 0x3d6   : > { %7467 = vmatpush1.bf16.msra.mxu0 %v9782_v59  ;;  %v4065_v59 = vmax.f32 %v8967_v3, 0.0 }
 0x3d7   : > { %7795 = vmatpush1.bf16.msra.mxu1 %v9785_v39  ;;  %7468 = vmatprep.subr.bf16.mxu0 %v9790_v15  ;;  %v9869_v39 = vld [vmem:[%s13327_s3 + $0xfe8] ss:$16 sps:$4 sm:$0xff]  }
 0x3d8   : > { %7796 = vmatprep.subr.bf16.mxu1 %v9793_v60  ;;  %v4081_v15 = vpack.c.bf16 %v4065_v59, %v4065_v59  ;;  %v4595_v60 = vld [vmem:[%s13328_s4] sm:$0xf] }
 0x3da   : > { %7469 = vmatpush1.bf16.msra.mxu0 %v9788_v61  ;;  %v4600_v61 = vrot.slane %v4595_v60, %v11797_v41 }
 0x3db   : > { %7797 = vmatpush1.bf16.msra.mxu1 %v9791_v62  ;;  %7470 = vmatprep.subr.bf16.mxu0 %v9796_v37  ;;  %v4608_v62 = vrot.slane %v4595_v60, %v12009_v2  ;;  %v4604_v37 = vrot.slane %v4595_v60, %v11613_v19 }
 0x3dc   : > { %7798 = vmatprep.subr.bf16.mxu1 %v9799_v63  ;;  %v4612_v63 = vrot.slane %v4595_v60, %v11809_v36 }
 0x3de   : > { %7471 = vmatpush1.bf16.msra.mxu0 %v9794_v0 }
 0x3df   : > { %7799 = vmatpush1.bf16.msra.mxu1 %v9797_v1  ;;  %7472 = vmatprep.subr.bf16.mxu0 %v9802_v5 }
 0x3e0   : > { %7800 = vmatprep.subr.bf16.mxu1 %v9805_v7 }
 0x3e2   : > { %7473 = vmatpush1.bf16.msra.mxu0 %v9800_v11 }
 0x3e3   : > { %7801 = vmatpush1.bf16.msra.mxu1 %v9803_v16  ;;  %7474 = vmatprep.subr.bf16.mxu0 %v9808_v17 }
 0x3e4   : > { %7802 = vmatprep.subr.bf16.mxu1 %v9811_v18 }
 0x3e6   : > { %7475 = vmatpush1.bf16.msra.mxu0 %v9806_v53 }
 0x3e7   : > { %7803 = vmatpush1.bf16.msra.mxu1 %v9809_v20  ;;  %7476 = vmatprep.subr.bf16.mxu0 %v9814_v21 }
 0x3e8   : > { %7804 = vmatprep.subr.bf16.mxu1 %v9817_v25 }
 0x3ea   : > { %7477 = vmatpush1.bf16.msra.mxu0 %v9812_v26 }
 0x3eb   : > { %7805 = vmatpush1.bf16.msra.mxu1 %v9815_v27  ;;  %7478 = vmatprep.subr.bf16.mxu0 %v9820_v28 }
 0x3ec   : > { %7806 = vmatprep.subr.bf16.mxu1 %v9823_v10 }
 0x3ee   : > { %7479 = vmatpush1.bf16.msra.mxu0 %v9818_v35 }
 0x3ef   : > { %7807 = vmatpush1.bf16.msra.mxu1 %v9821_v33  ;;  %7480 = vmatprep.subr.bf16.mxu0 %v9826_v29 }
 0x3f0   : > { %7808 = vmatprep.subr.bf16.mxu1 %v9829_v57 }
 0x3f2   : > { %7481 = vmatpush1.bf16.msra.mxu0 %v9824_v8 }
 0x3f3   : > { %7809 = vmatpush1.bf16.msra.mxu1 %v9827_v32  ;;  %7482 = vmatprep.subr.bf16.mxu0 %v9832_v40 }
 0x3f4   : > { %7810 = vmatprep.subr.bf16.mxu1 %v9835_v42 }
 0x3f6   : > { %7483 = vmatpush1.bf16.msra.mxu0 %v9830_v43 }
 0x3f7   : > { %7811 = vmatpush1.bf16.msra.mxu1 %v9833_v34  ;;  %7484 = vmatprep.subr.bf16.mxu0 %v9838_v45 }
 0x3f8   : > { %7812 = vmatprep.subr.bf16.mxu1 %v9841_v23 }
 0x3fa   : > { %7485 = vmatpush1.bf16.msra.mxu0 %v9836_v46 }
 0x3fb   : > { %7813 = vmatpush1.bf16.msra.mxu1 %v9839_v47  ;;  %7486 = vmatprep.subr.bf16.mxu0 %v9844_v48 }
 0x3fc   : > { %7814 = vmatprep.subr.bf16.mxu1 %v9847_v38 }
 0x3fe   : > { %7487 = vmatpush1.bf16.msra.mxu0 %v9842_v49 }
 0x3ff   : > { %7815 = vmatpush1.bf16.msra.mxu1 %v9845_v50  ;;  %7488 = vmatprep.subr.bf16.mxu0 %v9850_v24 }
 0x400   : > { %7816 = vmatprep.subr.bf16.mxu1 %v9853_v44 }
 0x402   : > { %7489 = vmatpush1.bf16.msra.mxu0 %v9848_v14 }
 0x403   : > { %7817 = vmatpush1.bf16.msra.mxu1 %v9851_v30  ;;  %7490 = vmatprep.subr.bf16.mxu0 %v9856_v51 }
 0x404   : > { %7818 = vmatprep.subr.bf16.mxu1 %v9859_v52 }
 0x406   : > { %7491 = vmatpush1.bf16.msra.mxu0 %v9854_v22 }
 0x407   : > { %7819 = vmatpush1.bf16.msra.mxu1 %v9857_v4  ;;  %7492 = vmatprep.subr.bf16.mxu0 %v9862_v55 }
 0x408   : > { %7820 = vmatprep.subr.bf16.mxu1 %v9865_v31 }
 0x40a   : > { %7493 = vmatpush1.bf16.msra.mxu0 %v9860_v6 }
 0x40b   : > { %7821 = vmatpush1.bf16.msra.mxu1 %v9863_v56  ;;  %7494 = vmatprep.subr.bf16.mxu0 %v9868_v13 }
 0x40c   : > { %7822 = vmatprep.subr.bf16.mxu1 %v9871_v58 }
 0x40e   : > { %7495 = vmatpush1.bf16.msra.mxu0 %v9866_v9 }
 0x40f   : > { %7823 = vmatpush1.bf16.msra.mxu1 %v9869_v39 }
 0x411   : > { %7497 = vmatmul.mubr.bf16.vlgmr.msra.gmra.mrb[16].mxu0 %v4081_v15 }
 0x412   : > { %7825 = vmatmul.mubr.bf16.vlgmr.msra.gmra.mrb[16].mxu1 %v4081_v15 }
 0x4e4   : > { %v7498_v0 = vpop.f32.mrb[16].mxu0 }
 0x4e5   : > { %v8969_v1 = vadd.f32 %v7498_v0, %v4600_v61  ;;  %v7826_v5 = vpop.f32.mrb[16].mxu1  ;;  %v7500_v7 = vpop.f32.mrb[17].mxu0 }
 0x4e6   : > { %v8971_v11 = vadd.f32 %v7826_v5, %v4608_v62  ;;  %v8970_v16 = vadd.f32 %v7500_v7, %v4604_v37  ;;  %v7828_v17 = vpop.f32.mrb[17].mxu1  ;;  %v7502_v18 = vpop.f32.mrb[18].mxu0 }
 0x4e7   : > { %7833 = vst [vmem:[%s217_s12] sm:$0xff] %v8969_v1  ;;  %v8972_v41 = vadd.f32 %v7828_v17, %v4612_v63  ;;  %v7830_v53 = vpop.f32.mrb[18].mxu1  ;;  %v7503_v2 = vpop.f32.mrb[19].mxu0 }
 0x4e8   : > { %7835 = vst [vmem:[%s217_s12 + $0x10] sm:$0xff] %v8971_v11  ;;  %7834 = vst [vmem:[%s217_s12 + $0x8] sm:$0xff] %v8970_v16  ;;  %v7831_v19 = vpop.f32.mrb[19].mxu1 }
 0x4e9   : > { %7836 = vst [vmem:[%s217_s12 + $0x18] sm:$0xff] %v8972_v41 }
 0x4ea   : > { %9887 = shalt.err (!%p9884_p3)
}
 0x4eb   : > { %s9888_s13 = scalar_lea.hbm %s13282_s17, 512  ;;  %s9892_s8 = scalar_lea.hbm %s13329_s5, 1024 }
 0x4ec   : > { %p9889_p4 = scmp.ne.s32.totalorder %s13282_s17, %s9888_s13  ;;  %p9893_p9 = scmp.lt.u32.totalorder %s13282_s17, %s13329_s5 }
 0x4ed   : > { %p9894_p10 = scmp.lt.u32.totalorder %s9892_s8, %s9888_s13  ;;  %p9896_p12 = scmp.lt.u32.totalorder %s9888_s13, %s13282_s17 }
 0x4ee   : > { %p9890_p7 = pnand %p9889_p4, %p10007_p5 }
 0x4ef   : > { %p9895_p11 = por %p9894_p10, %p9893_p9 }
 0x4f0   : > { %p9891_p8 = pneg %p9890_p7 }
 0x4f1   : > { %p9897_p13 = por %p9896_p12, %p9895_p11 }
 0x4f3   : > { %p9898_p0 = pnand %p9897_p13, %p9891_p8 }
 0x4f5   : > { %9901 = shalt.err (!%p9898_p0)
}
 0x4f6   : > { %9061 = dma.vmem_to_hbm [thread:$0]  (%p10007_p5), %s13284_s14, 512, %s13282_s17, %s7838_s22  }
 0x4f7 PF: > { %p9067_p1 = scmp.ge.s32.totalorder %s9936_s21, 2  ;;  %s7864_s11 = sand.u32 1, %s9924_s18  }
 0x4f8   : > { %s7865_s12 = scalar_lea.sflag [#allocation3], %s7864_s11 }
 0x4f9   : > { %p9064_p2 = pnand %p9067_p1, %p10011_p6 }
 0x4fb   : > { %9919 = dma.done.wait (!%p9064_p2), %s7865_s12, 512  }
 0x4fc   : > { %9921 = vsyncadd (!%p9064_p2), %s7865_s12, 4294966784  ;;  %p15_p3 = scmp.ge.s32.totalorder %s9994_s24, 4   ;;  %s13332_s18 = smov %s9928_s19 }
 0x4fd   : > { %s13333_s19 = smov %s9932_s20  ;;  %s13334_s20 = smov %s10005_s27 }
 0x4fe   : > { %s13335_s21 = smov %s9994_s24  ;;  %17 = sbr.rel (!%p15_p3) target bundleno = 3 (0x3), region = 75 }
 0x505   :  { %7870 = vsyncpa [#allocation3], 1 }
 0x506   :  { %7872 = vsyncpa [#allocation3 + $0x1], 1 }

</bundles_post_ra>
